<compile_context>
chip_gen: v7x
topology: tpu7x:2x2x1
jax: 0.10.0
libtpu: 0.0.40
codegen_flags: <defaults>
</compile_context>

<pallas_src>
import functools

import jax
import jax.numpy as jnp
from jax import lax
from jax.experimental import pallas as pl
from jax.experimental.pallas import tpu as pltpu

LN_EPS = 1e-5
NEG_INF = -1e9  # cross-window pairs: exp underflows to exactly 0.0 in f32


# ----------------------------- helpers (plain JAX, init/ref only) -----------------------------
def window_partition(x, ws):
    B, H, W, C = x.shape
    x = x.reshape(B, H // ws, ws, W // ws, ws, C)
    return x.transpose(0, 1, 3, 2, 4, 5).reshape(-1, ws, ws, C)


def window_reverse(wins, ws, H, W):
    B = wins.shape[0] // ((H // ws) * (W // ws))
    x = wins.reshape(B, H // ws, W // ws, ws, ws, -1)
    return x.transpose(0, 1, 3, 2, 4, 5).reshape(B, H, W, -1)


def relative_position_bias(table, ws, heads):
    coords = jnp.stack(jnp.meshgrid(jnp.arange(ws), jnp.arange(ws), indexing="ij"))
    cf = coords.reshape(2, -1)                                   # (2, N)
    rel = (cf[:, :, None] - cf[:, None, :]).transpose(1, 2, 0)   # (N, N, 2)
    rel = rel.at[:, :, 0].add(ws - 1)
    rel = rel.at[:, :, 1].add(ws - 1)
    rel = rel.at[:, :, 0].multiply(2 * ws - 1)
    idx = rel.sum(-1)                                            # (N, N)
    N = ws * ws
    bias = table[idx.reshape(-1)].reshape(N, N, heads)
    return bias.transpose(2, 0, 1).astype(jnp.float32)           # (heads, N, N)


def make_attn_mask(H, W, ws, shift):
    nW = (H // ws) * (W // ws)
    N = ws * ws
    if shift == 0:
        return jnp.zeros((nW, N, N), jnp.float32)
    img_mask = jnp.zeros((1, H, W, 1), jnp.float32)
    cnt = 0
    for hs in (slice(0, -ws), slice(-ws, -shift), slice(-shift, None)):
        for wsl in (slice(0, -ws), slice(-ws, -shift), slice(-shift, None)):
            img_mask = img_mask.at[:, hs, wsl, :].set(float(cnt))
            cnt += 1
    mw = window_partition(img_mask, ws).reshape(-1, N)
    am = mw[:, None, :] - mw[:, :, None]
    return jnp.where(am != 0, -100.0, 0.0).astype(jnp.float32)


def _layernorm(x, g, b):
    mu = jnp.mean(x, axis=-1, keepdims=True)
    var = jnp.mean(jnp.square(x - mu), axis=-1, keepdims=True)
    return (x - mu) * lax.rsqrt(var + LN_EPS) * g + b


def full_bias_mask(rel_bias, attn_mask, H, W, ws, shift):
    """Map (heads,N,N) rel-pos bias + (nW,N,N) shift mask onto the full (heads,L,L)
    original-token-order layout; cross-window pairs get NEG_INF."""
    L = H * W
    r = jnp.arange(L) // W
    c = jnp.arange(L) % W
    rr = (r - shift) % H                       # position after cyclic shift
    cc = (c - shift) % W
    win = (rr // ws) * (W // ws) + (cc // ws)  # window id of each original token
    n = (rr % ws) * ws + (cc % ws)             # within-window index
    same = win[:, None] == win[None, :]                               # (L, L)
    bias = rel_bias[:, n[:, None], n[None, :]]                        # (heads, L, L)
    sm = attn_mask[win[:, None], n[:, None], n[None, :]]              # (L, L)
    return jnp.where(same[None], bias + sm[None], NEG_INF).astype(jnp.float32)


# ------------------------------------ fused Pallas kernel ------------------------------------
def swin_layer_kernel(x_ref, wbig_ref, bbig_ref, bm_ref, hm_ref,
                      g1_ref, bt1_ref, bproj_ref, g2_ref, bt2_ref,
                      w1_ref, bb1_ref, w2_ref, bb2_ref, o_ref,
                      *, depth, heads, C, L, n_img):
    """One grid step: `n_img` images row-stacked as (n_img*L, C); runs all `depth`
    Swin blocks entirely in VMEM.  Residual stream f32; weight matmuls bf16->f32."""
    mm_dtype = wbig_ref.dtype
    x = x_ref[...].astype(jnp.float32)                                   # (n_img*L, C)
    hm = [hm_ref[h] for h in range(heads)]                               # per-head (1, C) lane masks

    for d in range(depth):                                               # static unroll (depth=2)
        # -------------------- (shifted-)window attention --------------------
        xn = _layernorm(x, g1_ref[d], bt1_ref[d])
        # single weight matmul; columns = [vp_0 | .. | vp_{H-1} | q*scale | k]
        # (vp slab 128-lane aligned; Wproj folded per head into Wv, scale folded into Wq)
        qkvp = jnp.dot(xn.astype(mm_dtype), wbig_ref[d],
                       preferred_element_type=jnp.float32) + bbig_ref[d]
        vp = qkvp[:, :heads * C]                                         # (n_img*L, heads*C)
        q = qkvp[:, heads * C:heads * C + C]                             # (n_img*L, C)
        k = qkvp[:, heads * C + C:]                                      # (n_img*L, C)
        bm_d = bm_ref[d]                                                 # (heads*L, L) bias+mask

        attn_imgs = []
        for im in range(n_img):                                          # static unroll, per image
            r0, r1 = im * L, (im + 1) * L
            q_i, k_i, vp_i = q[r0:r1], k[r0:r1], vp[r0:r1]
            # Row-stack per-head-masked queries -> ONE score matmul for all heads
            # (replaces `heads` K=8 matmuls with one M=heads*L, K=C, N=L matmul).
            q_stack = jnp.concatenate([q_i * hm[h] for h in range(heads)], axis=0)
            s = lax.dot_general(q_stack, k_i, (((1,), (1,)), ((), ())),
                                preferred_element_type=jnp.float32)      # (heads*L, L)
            s = s + bm_d                                                 # one dense bias/mask add
            # one softmax over the head-stacked slab (rows = (head, query) pairs)
            s = s - jnp.max(s, axis=-1, keepdims=True)
            p = jnp.exp(s)
            p = p * pl.reciprocal(jnp.sum(p, axis=-1, keepdims=True), approx=True)
            # PV: repeated K=L dots into one f32 accumulator (MRB-friendly on v7x).
            attn_i = jnp.dot(p[:L], vp_i[:, :C], preferred_element_type=jnp.float32)
            for h in range(1, heads):
                attn_i = attn_i + jnp.dot(p[h * L:(h + 1) * L],
                                          vp_i[:, h * C:(h + 1) * C],
                                          preferred_element_type=jnp.float32)
            attn_imgs.append(attn_i)
        attn = attn_imgs[0] if n_img == 1 else jnp.concatenate(attn_imgs, axis=0)
        x = x + attn + bproj_ref[d]                                      # drop_path=0 -> identity

        # ------------------------------- MLP --------------------------------
        xn2 = _layernorm(x, g2_ref[d], bt2_ref[d])
        h1 = jnp.dot(xn2.astype(mm_dtype), w1_ref[d],
                     preferred_element_type=jnp.float32) + bb1_ref[d]
        # exact-erf GELU to match nn.GELU; tanh-approx would move this onto the EUP.
        h1 = 0.5 * h1 * (1.0 + lax.erf(h1 * (2.0 ** -0.5)))
        y = jnp.dot(h1.astype(mm_dtype), w2_ref[d],
                    preferred_element_type=jnp.float32) + bb2_ref[d]
        x = x + y

    # TODO(synk): at larger L/C, relayout the store to a lane-dense (rows,128) slab.
    o_ref[...] = x.astype(o_ref.dtype)


def _imgs_per_grid_step(batch):
    """How many images to fold into one grid step.
    Single-TC chips (v5e/v6e): fold the whole batch into rows (grid=(1,)).
    Multi-TC chips (v7x, megacore v3/v4/v5p): one image per core on a parallel grid."""
    try:
        kind = jax.devices()[0].device_kind.lower()
    except Exception:
        kind = ""
    single_tc = any(t in kind for t in
                    ("v5e", "v5 lite", "v5lite", "v6e", "v6 lite", "v6lite"))
    n_tc = 1 if single_tc else 2
    if n_tc <= 1 or batch % n_tc != 0:
        return batch
    return batch // n_tc


def swin_layer_pallas(x, packed, *, depth, heads, L, C, imgs_per_step=None):
    B = x.shape[0]
    if imgs_per_step is None:
        imgs_per_step = _imgs_per_grid_step(B)
    assert B % imgs_per_step == 0
    G = B // imgs_per_step
    M = imgs_per_step * L
    hidden = packed["w1"].shape[-1]
    wcols = packed["wbig"].shape[-1]
    xg = x.reshape(G, M, C)
    kernel = functools.partial(swin_layer_kernel, depth=depth, heads=heads,
                               C=C, L=L, n_img=imgs_per_step)
    const3 = lambda g: (0, 0, 0)
    out = pl.pallas_call(
        kernel,
        out_shape=jax.ShapeDtypeStruct((G, M, C), jnp.float32),
        grid=(G,),
        in_specs=[
            pl.BlockSpec((None, M, C), lambda g: (g, 0, 0)),        # activations (imgs folded in rows)
            pl.BlockSpec((depth, C, wcols), const3),                # fused [vp|q|k] weights (bf16)
            pl.BlockSpec((depth, 1, wcols), const3),                # fused biases (f32)
            pl.BlockSpec((depth, heads * L, L), const3),            # head-stacked bias + shift mask
            pl.BlockSpec((heads, 1, C), const3),                    # per-head lane masks
            pl.BlockSpec((depth, 1, C), const3),                    # norm1 gamma
            pl.BlockSpec((depth, 1, C), const3),                    # norm1 beta
            pl.BlockSpec((depth, 1, C), const3),                    # proj bias
            pl.BlockSpec((depth, 1, C), const3),                    # norm2 gamma
            pl.BlockSpec((depth, 1, C), const3),                    # norm2 beta
            pl.BlockSpec((depth, C, hidden), const3),               # fc1 weight (bf16)
            pl.BlockSpec((depth, 1, hidden), const3),               # fc1 bias
            pl.BlockSpec((depth, hidden, C), const3),               # fc2 weight (bf16)
            pl.BlockSpec((depth, 1, C), const3),                    # fc2 bias
        ],
        out_specs=pl.BlockSpec((None, M, C), lambda g: (g, 0, 0)),
        compiler_params=pltpu.CompilerParams(dimension_semantics=("parallel",)),
    )(xg, packed["wbig"], packed["bbig"], packed["biasmask"], packed["headmask"],
      packed["g1"], packed["bt1"], packed["bproj"], packed["g2"], packed["bt2"],
      packed["w1"], packed["bb1"], packed["w2"], packed["bb2"])
    return out.reshape(B, L, C)


# ------------------------- one-time parameter packing (weight folding) -------------------------
def pack_layer_params(params_list, H, W, ws, heads, mm_dtype=jnp.bfloat16):
    C = params_list[0]["wqkv"].shape[0]
    hd = C // heads
    scale = float(hd) ** -0.5
    L = H * W
    wbig, bbig, bm, w1s, w2s = [], [], [], [], []
    keep = ("g1", "bt1", "bproj", "g2", "bt2", "bb1", "bb2")
    stacked = {k: [] for k in keep}
    for i, p in enumerate(params_list):
        shift = 0 if i % 2 == 0 else ws // 2
        wq = p["wqkv"][:, :C] * scale              # fold 1/sqrt(hd) into q weights/bias
        bq = p["bqkv"][:, :C] * scale
        wk = p["wqkv"][:, C:2 * C]
        bk = p["bqkv"][:, C:2 * C]
        wv = p["wqkv"][:, 2 * C:]
        bv = p["bqkv"][:, 2 * C:]
        # fold Wproj into the value path, per head: v_h @ Wproj_h == x @ (Wv_h @ Wproj_h) + bv_h @ Wproj_h
        wvp = [wv[:, h * hd:(h + 1) * hd] @ p["wproj"][h * hd:(h + 1) * hd, :] for h in range(heads)]
        bvp = [bv[:, h * hd:(h + 1) * hd] @ p["wproj"][h * hd:(h + 1) * hd, :] for h in range(heads)]
        # lane order: [vp_0 .. vp_{H-1} | q*scale | k]  -> 128-lane-aligned vp slab
        wbig.append(jnp.concatenate(wvp + [wq, wk], axis=1))             # (C, heads*C + 2C)
        bbig.append(jnp.concatenate(bvp + [bq, bk], axis=1))             # (1, heads*C + 2C)
        fb = full_bias_mask(p["rel_bias"], p["attn_mask"], H, W, ws, shift)  # (heads, L, L)
        bm.append(fb.reshape(heads * L, L))                              # row-stacked (matches scores)
        for k_ in keep:
            stacked[k_].append(p[k_])
        w1s.append(p["w1"])
        w2s.append(p["w2"])
    packed = {k: jnp.stack(v) for k, v in stacked.items()}
    packed["wbig"] = jnp.stack(wbig).astype(mm_dtype)
    packed["bbig"] = jnp.stack(bbig)                                     # f32: added post-accumulate
    packed["biasmask"] = jnp.stack(bm)
    packed["w1"] = jnp.stack(w1s).astype(mm_dtype)
    packed["w2"] = jnp.stack(w2s).astype(mm_dtype)
    lane = jnp.arange(C)[None, :]
    packed["headmask"] = jnp.stack(
        [(lane // hd == h).astype(jnp.float32) for h in range(heads)])   # (heads, 1, C)
    return packed


def basic_layer_forward(x, params_list, H, W, ws, heads):
    packed = pack_layer_params(params_list, H, W, ws, heads)
    C = x.shape[-1]
    return swin_layer_pallas(x, packed, depth=len(params_list), heads=heads, L=H * W, C=C)


# ------------------------------ pure-JAX reference (checking) ---------------------------------
def ref_block(x, p, H, W, ws, shift, heads):
    B, L, C = x.shape
    N, hd = ws * ws, C // heads
    scale = float(hd) ** -0.5
    shortcut = x
    xn = _layernorm(x, p["g1"].reshape(-1), p["bt1"].reshape(-1))
    xg = xn.reshape(B, H, W, C)
    if shift > 0:
        xg = jnp.roll(xg, (-shift, -shift), axis=(1, 2))
    xw = window_partition(xg, ws).reshape(-1, N, C)
    qkv = xw @ p["wqkv"] + p["bqkv"].reshape(-1)
    qkv = qkv.reshape(-1, N, 3, heads, hd).transpose(2, 0, 3, 1, 4)
    q, k, v = qkv[0], qkv[1], qkv[2]
    att = (q * scale) @ k.transpose(0, 1, 3, 2) + p["rel_bias"][None]
    nW = p["attn_mask"].shape[0]
    att = (att.reshape(-1, nW, heads, N, N) + p["attn_mask"][None, :, None]
           ).reshape(-1, heads, N, N)
    att = jax.nn.softmax(att, axis=-1)
    out = (att @ v).transpose(0, 2, 1, 3).reshape(-1, N, C)
    out = out @ p["wproj"] + p["bproj"].reshape(-1)
    xg = window_reverse(out.reshape(-1, ws, ws, C), ws, H, W)
    if shift > 0:
        xg = jnp.roll(xg, (shift, shift), axis=(1, 2))
    x = shortcut + xg.reshape(B, L, C)
    xn2 = _layernorm(x, p["g2"].reshape(-1), p["bt2"].reshape(-1))
    h = jax.nn.gelu(xn2 @ p["w1"] + p["bb1"].reshape(-1), approximate=False)
    return x + (h @ p["w2"] + p["bb2"].reshape(-1))


def basic_layer_ref(x, params_list, H, W, ws, heads):
    for i, p in enumerate(params_list):
        shift = 0 if i % 2 == 0 else ws // 2
        x = ref_block(x, p, H, W, ws, shift, heads)
    return x


# ---------------------------------------- param init ------------------------------------------
def init_block_params(key, C, heads, ws, mlp_ratio, H, W, shift):
    hidden = int(C * mlp_ratio)
    ks = jax.random.split(key, 10)
    n = lambda k, s: (0.02 * jax.random.normal(k, s, jnp.float32))
    p = dict(
        g1=1.0 + 0.1 * jax.random.normal(ks[0], (1, C), jnp.float32),
        bt1=n(ks[1], (1, C)),
        wqkv=n(ks[2], (C, 3 * C)),
        bqkv=n(ks[3], (1, 3 * C)),
        wproj=n(ks[4], (C, C)),
        bproj=n(ks[5], (1, C)),
        g2=1.0 + 0.1 * jax.random.normal(ks[6], (1, C), jnp.float32),
        bt2=n(ks[7], (1, C)),
        w1=n(ks[8], (C, hidden)),
        bb1=jnp.zeros((1, hidden), jnp.float32),
        w2=n(ks[9], (hidden, C)),
        bb2=jnp.zeros((1, C), jnp.float32),
    )
    table = 0.02 * jax.random.normal(jax.random.fold_in(key, 123),
                                     ((2 * ws - 1) ** 2, heads), jnp.float32)
    p["rel_bias"] = relative_position_bias(table, ws, heads)     # (heads, N, N)
    p["attn_mask"] = make_attn_mask(H, W, ws, shift)             # (nW, N, N)
    return p


# -------------------------------------------- main ---------------------------------------------
if __name__ == "__main__":
    # BasicLayer(dim=32, input_resolution=(8,8), depth=2, heads=4,
    #            window_size=4, mlp_ratio=2.0, drop=0.0, drop_path=0, downsample=None)
    B, H, W = 2, 8, 8
    C, heads, ws, depth = 32, 4, 4, 2
    mlp_ratio = 2.0

    key = jax.random.PRNGKey(0)
    kx, kp = jax.random.split(key)
    x = jax.random.normal(kx, (B, H * W, C), jnp.float32)        # (B, L, C) tokens

    params = []
    for i, bk in enumerate(jax.random.split(kp, depth)):
        shift = 0 if i % 2 == 0 else ws // 2
        params.append(init_block_params(bk, C, heads, ws, mlp_ratio, H, W, shift))

    out = basic_layer_forward(x, params, H, W, ws, heads)
    out = jax.block_until_ready(out)

    ref = basic_layer_ref(x, params, H, W, ws, heads)
    assert out.shape == (B, H * W, C)
    # 3e-3 tolerance: bf16 weight matmuls (f32 accumulate) + approx reciprocal + weight folding.
    assert jnp.allclose(out, ref, atol=3e-3, rtol=3e-3), float(jnp.max(jnp.abs(out - ref)))
    print("KERNEL_OK")
</pallas_src>

<mosaic_0001>
module attributes {stable_mosaic.version = 11 : i64} {
  func.func @swin_layer_kernel(%arg0: i32, %arg1: memref<1x64x32xf32, #tpu.memory_space<vmem>>, %arg2: memref<2x32x192xbf16, #tpu.memory_space<vmem>>, %arg3: memref<2x1x192xf32, #tpu.memory_space<vmem>>, %arg4: memref<2x256x64xf32, #tpu.memory_space<vmem>>, %arg5: memref<4x1x32xf32, #tpu.memory_space<vmem>>, %arg6: memref<2x1x32xf32, #tpu.memory_space<vmem>>, %arg7: memref<2x1x32xf32, #tpu.memory_space<vmem>>, %arg8: memref<2x1x32xf32, #tpu.memory_space<vmem>>, %arg9: memref<2x1x32xf32, #tpu.memory_space<vmem>>, %arg10: memref<2x1x32xf32, #tpu.memory_space<vmem>>, %arg11: memref<2x32x64xbf16, #tpu.memory_space<vmem>>, %arg12: memref<2x1x64xf32, #tpu.memory_space<vmem>>, %arg13: memref<2x64x32xbf16, #tpu.memory_space<vmem>>, %arg14: memref<2x1x32xf32, #tpu.memory_space<vmem>>, %arg15: memref<1x64x32xf32, #tpu.memory_space<vmem>>) attributes {dimension_semantics = [#tpu.dimension_semantics<parallel>], iteration_bounds = array<i64: 2>, scalar_prefetch = 0 : i64, scratch_operands = 0 : i64, tpu.core_type = #tpu.core_type<tc>, window_params = [{transform_indices = @transform_0, window_bounds = array<i64: 1, 64, 32>}, {pipeline_mode = #tpu.pipeline_mode<synchronous>, transform_indices = @transform_1, window_bounds = array<i64: 2, 32, 192>}, {pipeline_mode = #tpu.pipeline_mode<synchronous>, transform_indices = @transform_2, window_bounds = array<i64: 2, 1, 192>}, {pipeline_mode = #tpu.pipeline_mode<synchronous>, transform_indices = @transform_3, window_bounds = array<i64: 2, 256, 64>}, {pipeline_mode = #tpu.pipeline_mode<synchronous>, transform_indices = @transform_4, window_bounds = array<i64: 4, 1, 32>}, {pipeline_mode = #tpu.pipeline_mode<synchronous>, transform_indices = @transform_5, window_bounds = array<i64: 2, 1, 32>}, {pipeline_mode = #tpu.pipeline_mode<synchronous>, transform_indices = @transform_6, window_bounds = array<i64: 2, 1, 32>}, {pipeline_mode = #tpu.pipeline_mode<synchronous>, transform_indices = @transform_7, window_bounds = array<i64: 2, 1, 32>}, {pipeline_mode = #tpu.pipeline_mode<synchronous>, transform_indices = @transform_8, window_bounds = array<i64: 2, 1, 32>}, {pipeline_mode = #tpu.pipeline_mode<synchronous>, transform_indices = @transform_9, window_bounds = array<i64: 2, 1, 32>}, {pipeline_mode = #tpu.pipeline_mode<synchronous>, transform_indices = @transform_10, window_bounds = array<i64: 2, 32, 64>}, {pipeline_mode = #tpu.pipeline_mode<synchronous>, transform_indices = @transform_11, window_bounds = array<i64: 2, 1, 64>}, {pipeline_mode = #tpu.pipeline_mode<synchronous>, transform_indices = @transform_12, window_bounds = array<i64: 2, 64, 32>}, {pipeline_mode = #tpu.pipeline_mode<synchronous>, transform_indices = @transform_13, window_bounds = array<i64: 2, 1, 32>}, {transform_indices = @transform_14, window_bounds = array<i64: 1, 64, 32>}]} {
    %c0 = arith.constant 0 : index
    %c0_0 = arith.constant 0 : index
    %c0_1 = arith.constant 0 : index
    %0 = vector.load %arg1[%c0, %c0_0, %c0_1] : memref<1x64x32xf32, #tpu.memory_space<vmem>>, vector<1x64x32xf32>
    %1 = vector.shape_cast %0 : vector<1x64x32xf32> to vector<64x32xf32>
    %c0_2 = arith.constant 0 : index
    %c0_3 = arith.constant 0 : index
    %c0_4 = arith.constant 0 : index
    %2 = vector.load %arg5[%c0_2, %c0_3, %c0_4] : memref<4x1x32xf32, #tpu.memory_space<vmem>>, vector<1x1x32xf32>
    %3 = vector.shape_cast %2 : vector<1x1x32xf32> to vector<1x32xf32>
    %c1 = arith.constant 1 : index
    %c0_5 = arith.constant 0 : index
    %c0_6 = arith.constant 0 : index
    %4 = vector.load %arg5[%c1, %c0_5, %c0_6] : memref<4x1x32xf32, #tpu.memory_space<vmem>>, vector<1x1x32xf32>
    %5 = vector.shape_cast %4 : vector<1x1x32xf32> to vector<1x32xf32>
    %c2 = arith.constant 2 : index
    %c0_7 = arith.constant 0 : index
    %c0_8 = arith.constant 0 : index
    %6 = vector.load %arg5[%c2, %c0_7, %c0_8] : memref<4x1x32xf32, #tpu.memory_space<vmem>>, vector<1x1x32xf32>
    %7 = vector.shape_cast %6 : vector<1x1x32xf32> to vector<1x32xf32>
    %c3 = arith.constant 3 : index
    %c0_9 = arith.constant 0 : index
    %c0_10 = arith.constant 0 : index
    %8 = vector.load %arg5[%c3, %c0_9, %c0_10] : memref<4x1x32xf32, #tpu.memory_space<vmem>>, vector<1x1x32xf32>
    %9 = vector.shape_cast %8 : vector<1x1x32xf32> to vector<1x32xf32>
    %c0_11 = arith.constant 0 : index
    %c0_12 = arith.constant 0 : index
    %c0_13 = arith.constant 0 : index
    %10 = vector.load %arg6[%c0_11, %c0_12, %c0_13] : memref<2x1x32xf32, #tpu.memory_space<vmem>>, vector<1x1x32xf32>
    %11 = vector.shape_cast %10 : vector<1x1x32xf32> to vector<1x32xf32>
    %c0_14 = arith.constant 0 : index
    %c0_15 = arith.constant 0 : index
    %c0_16 = arith.constant 0 : index
    %12 = vector.load %arg7[%c0_14, %c0_15, %c0_16] : memref<2x1x32xf32, #tpu.memory_space<vmem>>, vector<1x1x32xf32>
    %13 = vector.shape_cast %12 : vector<1x1x32xf32> to vector<1x32xf32>
    %cst = arith.constant dense<0.000000e+00> : vector<64xf32>
    %14 = vector.multi_reduction <add>, %1, %cst [1] : vector<64x32xf32> to vector<64xf32>
    %15 = vector.shape_cast %14 : vector<64xf32> to vector<64x1xf32>
    %cst_17 = arith.constant 3.200000e+01 : f32
    %16 = vector.broadcast %cst_17 : f32 to vector<64x1xf32>
    %17 = arith.divf %15, %16 : vector<64x1xf32>
    %18 = vector.broadcast %17 : vector<64x1xf32> to vector<64x32xf32>
    %19 = arith.subf %1, %18 : vector<64x32xf32>
    %20 = arith.mulf %19, %19 : vector<64x32xf32>
    %cst_18 = arith.constant dense<0.000000e+00> : vector<64xf32>
    %21 = vector.multi_reduction <add>, %20, %cst_18 [1] : vector<64x32xf32> to vector<64xf32>
    %22 = vector.shape_cast %21 : vector<64xf32> to vector<64x1xf32>
    %cst_19 = arith.constant 3.200000e+01 : f32
    %23 = vector.broadcast %cst_19 : f32 to vector<64x1xf32>
    %24 = arith.divf %22, %23 : vector<64x1xf32>
    %25 = vector.broadcast %17 : vector<64x1xf32> to vector<64x32xf32>
    %26 = arith.subf %1, %25 : vector<64x32xf32>
    %cst_20 = arith.constant 9.99999974E-6 : f32
    %27 = vector.broadcast %cst_20 : f32 to vector<64x1xf32>
    %28 = arith.addf %24, %27 : vector<64x1xf32>
    %29 = math.rsqrt %28 : vector<64x1xf32>
    %30 = vector.broadcast %29 : vector<64x1xf32> to vector<64x32xf32>
    %31 = arith.mulf %26, %30 : vector<64x32xf32>
    %32 = vector.broadcast %11 : vector<1x32xf32> to vector<64x32xf32>
    %33 = arith.mulf %31, %32 : vector<64x32xf32>
    %34 = vector.broadcast %13 : vector<1x32xf32> to vector<64x32xf32>
    %35 = arith.addf %33, %34 : vector<64x32xf32>
    %36 = arith.truncf %35 : vector<64x32xf32> to vector<64x32xbf16>
    %c0_21 = arith.constant 0 : index
    %c0_22 = arith.constant 0 : index
    %c0_23 = arith.constant 0 : index
    %37 = vector.load %arg2[%c0_21, %c0_22, %c0_23] : memref<2x32x192xbf16, #tpu.memory_space<vmem>>, vector<1x32x192xbf16>
    %38 = vector.shape_cast %37 : vector<1x32x192xbf16> to vector<32x192xbf16>
    %cst_24 = arith.constant dense<0.000000e+00> : vector<64x192xf32>
    %39 = tpu.matmul %36, %38, %cst_24 {dimension_numbers = #tpu.dot_dimension_numbers<[1], [0], [0], [1], [0, 0, 1, 1], [], []>} : vector<64x32xbf16>, vector<32x192xbf16>, vector<64x192xf32> -> vector<64x192xf32>
    %c0_25 = arith.constant 0 : index
    %c0_26 = arith.constant 0 : index
    %c0_27 = arith.constant 0 : index
    %40 = vector.load %arg3[%c0_25, %c0_26, %c0_27] : memref<2x1x192xf32, #tpu.memory_space<vmem>>, vector<1x1x192xf32>
    %41 = vector.shape_cast %40 : vector<1x1x192xf32> to vector<1x192xf32>
    %42 = vector.broadcast %41 : vector<1x192xf32> to vector<64x192xf32>
    %43 = arith.addf %39, %42 : vector<64x192xf32>
    %44 = vector.extract_strided_slice %43 {offsets = [0, 0], sizes = [64, 128], strides = [1, 1]} : vector<64x192xf32> to vector<64x128xf32>
    %45 = vector.extract_strided_slice %43 {offsets = [0, 128], sizes = [64, 32], strides = [1, 1]} : vector<64x192xf32> to vector<64x32xf32>
    %46 = vector.extract_strided_slice %43 {offsets = [0, 160], sizes = [64, 32], strides = [1, 1]} : vector<64x192xf32> to vector<64x32xf32>
    %c0_28 = arith.constant 0 : index
    %c0_29 = arith.constant 0 : index
    %c0_30 = arith.constant 0 : index
    %47 = vector.load %arg4[%c0_28, %c0_29, %c0_30] : memref<2x256x64xf32, #tpu.memory_space<vmem>>, vector<1x256x64xf32>
    %48 = vector.shape_cast %47 : vector<1x256x64xf32> to vector<256x64xf32>
    %49 = vector.broadcast %3 : vector<1x32xf32> to vector<64x32xf32>
    %50 = arith.mulf %45, %49 : vector<64x32xf32>
    %51 = vector.broadcast %5 : vector<1x32xf32> to vector<64x32xf32>
    %52 = arith.mulf %45, %51 : vector<64x32xf32>
    %53 = vector.broadcast %7 : vector<1x32xf32> to vector<64x32xf32>
    %54 = arith.mulf %45, %53 : vector<64x32xf32>
    %55 = vector.broadcast %9 : vector<1x32xf32> to vector<64x32xf32>
    %56 = arith.mulf %45, %55 : vector<64x32xf32>
    %57 = tpu.concatenate %50, %52, %54, %56 in 0 : vector<64x32xf32>, vector<64x32xf32>, vector<64x32xf32>, vector<64x32xf32> -> vector<256x32xf32>
    %cst_31 = arith.constant dense<0.000000e+00> : vector<256x64xf32>
    %58 = tpu.matmul %57, %46, %cst_31 {dimension_numbers = #tpu.dot_dimension_numbers<[1], [1], [0], [0], [0, 0, 1, 0], [], []>} : vector<256x32xf32>, vector<64x32xf32>, vector<256x64xf32> -> vector<256x64xf32>
    %59 = arith.addf %58, %48 : vector<256x64xf32>
    %cst_32 = arith.constant dense<0xFF800000> : vector<256xf32>
    %60 = vector.multi_reduction <maximumf>, %59, %cst_32 [1] : vector<256x64xf32> to vector<256xf32>
    %61 = vector.shape_cast %60 : vector<256xf32> to vector<256x1xf32>
    %62 = vector.broadcast %61 : vector<256x1xf32> to vector<256x64xf32>
    %63 = arith.subf %59, %62 : vector<256x64xf32>
    %64 = math.exp %63 : vector<256x64xf32>
    %cst_33 = arith.constant dense<0.000000e+00> : vector<256xf32>
    %65 = vector.multi_reduction <add>, %64, %cst_33 [1] : vector<256x64xf32> to vector<256xf32>
    %66 = vector.shape_cast %65 : vector<256xf32> to vector<256x1xf32>
    %67 = tpu.reciprocal %66 {approx = true} : vector<256x1xf32> -> vector<256x1xf32>
    %68 = vector.broadcast %67 : vector<256x1xf32> to vector<256x64xf32>
    %69 = arith.mulf %64, %68 : vector<256x64xf32>
    %70 = vector.extract_strided_slice %69 {offsets = [0, 0], sizes = [64, 64], strides = [1, 1]} : vector<256x64xf32> to vector<64x64xf32>
    %71 = vector.extract_strided_slice %44 {offsets = [0, 0], sizes = [64, 32], strides = [1, 1]} : vector<64x128xf32> to vector<64x32xf32>
    %cst_34 = arith.constant dense<0.000000e+00> : vector<64x32xf32>
    %72 = tpu.matmul %70, %71, %cst_34 {dimension_numbers = #tpu.dot_dimension_numbers<[1], [0], [0], [1], [0, 0, 1, 1], [], []>} : vector<64x64xf32>, vector<64x32xf32>, vector<64x32xf32> -> vector<64x32xf32>
    %73 = vector.extract_strided_slice %69 {offsets = [64, 0], sizes = [64, 64], strides = [1, 1]} : vector<256x64xf32> to vector<64x64xf32>
    %74 = vector.extract_strided_slice %44 {offsets = [0, 32], sizes = [64, 32], strides = [1, 1]} : vector<64x128xf32> to vector<64x32xf32>
    %cst_35 = arith.constant dense<0.000000e+00> : vector<64x32xf32>
    %75 = tpu.matmul %73, %74, %cst_35 {dimension_numbers = #tpu.dot_dimension_numbers<[1], [0], [0], [1], [0, 0, 1, 1], [], []>} : vector<64x64xf32>, vector<64x32xf32>, vector<64x32xf32> -> vector<64x32xf32>
    %76 = arith.addf %72, %75 : vector<64x32xf32>
    %77 = vector.extract_strided_slice %69 {offsets = [128, 0], sizes = [64, 64], strides = [1, 1]} : vector<256x64xf32> to vector<64x64xf32>
    %78 = vector.extract_strided_slice %44 {offsets = [0, 64], sizes = [64, 32], strides = [1, 1]} : vector<64x128xf32> to vector<64x32xf32>
    %cst_36 = arith.constant dense<0.000000e+00> : vector<64x32xf32>
    %79 = tpu.matmul %77, %78, %cst_36 {dimension_numbers = #tpu.dot_dimension_numbers<[1], [0], [0], [1], [0, 0, 1, 1], [], []>} : vector<64x64xf32>, vector<64x32xf32>, vector<64x32xf32> -> vector<64x32xf32>
    %80 = arith.addf %76, %79 : vector<64x32xf32>
    %81 = vector.extract_strided_slice %69 {offsets = [192, 0], sizes = [64, 64], strides = [1, 1]} : vector<256x64xf32> to vector<64x64xf32>
    %82 = vector.extract_strided_slice %44 {offsets = [0, 96], sizes = [64, 32], strides = [1, 1]} : vector<64x128xf32> to vector<64x32xf32>
    %cst_37 = arith.constant dense<0.000000e+00> : vector<64x32xf32>
    %83 = tpu.matmul %81, %82, %cst_37 {dimension_numbers = #tpu.dot_dimension_numbers<[1], [0], [0], [1], [0, 0, 1, 1], [], []>} : vector<64x64xf32>, vector<64x32xf32>, vector<64x32xf32> -> vector<64x32xf32>
    %84 = arith.addf %80, %83 : vector<64x32xf32>
    %85 = arith.addf %1, %84 : vector<64x32xf32>
    %c0_38 = arith.constant 0 : index
    %c0_39 = arith.constant 0 : index
    %c0_40 = arith.constant 0 : index
    %86 = vector.load %arg8[%c0_38, %c0_39, %c0_40] : memref<2x1x32xf32, #tpu.memory_space<vmem>>, vector<1x1x32xf32>
    %87 = vector.shape_cast %86 : vector<1x1x32xf32> to vector<1x32xf32>
    %88 = vector.broadcast %87 : vector<1x32xf32> to vector<64x32xf32>
    %89 = arith.addf %85, %88 : vector<64x32xf32>
    %c0_41 = arith.constant 0 : index
    %c0_42 = arith.constant 0 : index
    %c0_43 = arith.constant 0 : index
    %90 = vector.load %arg9[%c0_41, %c0_42, %c0_43] : memref<2x1x32xf32, #tpu.memory_space<vmem>>, vector<1x1x32xf32>
    %91 = vector.shape_cast %90 : vector<1x1x32xf32> to vector<1x32xf32>
    %c0_44 = arith.constant 0 : index
    %c0_45 = arith.constant 0 : index
    %c0_46 = arith.constant 0 : index
    %92 = vector.load %arg10[%c0_44, %c0_45, %c0_46] : memref<2x1x32xf32, #tpu.memory_space<vmem>>, vector<1x1x32xf32>
    %93 = vector.shape_cast %92 : vector<1x1x32xf32> to vector<1x32xf32>
    %cst_47 = arith.constant dense<0.000000e+00> : vector<64xf32>
    %94 = vector.multi_reduction <add>, %89, %cst_47 [1] : vector<64x32xf32> to vector<64xf32>
    %95 = vector.shape_cast %94 : vector<64xf32> to vector<64x1xf32>
    %cst_48 = arith.constant 3.200000e+01 : f32
    %96 = vector.broadcast %cst_48 : f32 to vector<64x1xf32>
    %97 = arith.divf %95, %96 : vector<64x1xf32>
    %98 = vector.broadcast %97 : vector<64x1xf32> to vector<64x32xf32>
    %99 = arith.subf %89, %98 : vector<64x32xf32>
    %100 = arith.mulf %99, %99 : vector<64x32xf32>
    %cst_49 = arith.constant dense<0.000000e+00> : vector<64xf32>
    %101 = vector.multi_reduction <add>, %100, %cst_49 [1] : vector<64x32xf32> to vector<64xf32>
    %102 = vector.shape_cast %101 : vector<64xf32> to vector<64x1xf32>
    %cst_50 = arith.constant 3.200000e+01 : f32
    %103 = vector.broadcast %cst_50 : f32 to vector<64x1xf32>
    %104 = arith.divf %102, %103 : vector<64x1xf32>
    %105 = vector.broadcast %97 : vector<64x1xf32> to vector<64x32xf32>
    %106 = arith.subf %89, %105 : vector<64x32xf32>
    %cst_51 = arith.constant 9.99999974E-6 : f32
    %107 = vector.broadcast %cst_51 : f32 to vector<64x1xf32>
    %108 = arith.addf %104, %107 : vector<64x1xf32>
    %109 = math.rsqrt %108 : vector<64x1xf32>
    %110 = vector.broadcast %109 : vector<64x1xf32> to vector<64x32xf32>
    %111 = arith.mulf %106, %110 : vector<64x32xf32>
    %112 = vector.broadcast %91 : vector<1x32xf32> to vector<64x32xf32>
    %113 = arith.mulf %111, %112 : vector<64x32xf32>
    %114 = vector.broadcast %93 : vector<1x32xf32> to vector<64x32xf32>
    %115 = arith.addf %113, %114 : vector<64x32xf32>
    %116 = arith.truncf %115 : vector<64x32xf32> to vector<64x32xbf16>
    %c0_52 = arith.constant 0 : index
    %c0_53 = arith.constant 0 : index
    %c0_54 = arith.constant 0 : index
    %117 = vector.load %arg11[%c0_52, %c0_53, %c0_54] : memref<2x32x64xbf16, #tpu.memory_space<vmem>>, vector<1x32x64xbf16>
    %118 = vector.shape_cast %117 : vector<1x32x64xbf16> to vector<32x64xbf16>
    %cst_55 = arith.constant dense<0.000000e+00> : vector<64x64xf32>
    %119 = tpu.matmul %116, %118, %cst_55 {dimension_numbers = #tpu.dot_dimension_numbers<[1], [0], [0], [1], [0, 0, 1, 1], [], []>} : vector<64x32xbf16>, vector<32x64xbf16>, vector<64x64xf32> -> vector<64x64xf32>
    %c0_56 = arith.constant 0 : index
    %c0_57 = arith.constant 0 : index
    %c0_58 = arith.constant 0 : index
    %120 = vector.load %arg12[%c0_56, %c0_57, %c0_58] : memref<2x1x64xf32, #tpu.memory_space<vmem>>, vector<1x1x64xf32>
    %121 = vector.shape_cast %120 : vector<1x1x64xf32> to vector<1x64xf32>
    %122 = vector.broadcast %121 : vector<1x64xf32> to vector<64x64xf32>
    %123 = arith.addf %119, %122 : vector<64x64xf32>
    %cst_59 = arith.constant 5.000000e-01 : f32
    %124 = vector.broadcast %cst_59 : f32 to vector<64x64xf32>
    %125 = arith.mulf %124, %123 : vector<64x64xf32>
    %cst_60 = arith.constant 0.707106769 : f32
    %126 = vector.broadcast %cst_60 : f32 to vector<64x64xf32>
    %127 = arith.mulf %123, %126 : vector<64x64xf32>
    %128 = math.erf %127 : vector<64x64xf32>
    %cst_61 = arith.constant 1.000000e+00 : f32
    %129 = vector.broadcast %cst_61 : f32 to vector<64x64xf32>
    %130 = arith.addf %129, %128 : vector<64x64xf32>
    %131 = arith.mulf %125, %130 : vector<64x64xf32>
    %132 = arith.truncf %131 : vector<64x64xf32> to vector<64x64xbf16>
    %c0_62 = arith.constant 0 : index
    %c0_63 = arith.constant 0 : index
    %c0_64 = arith.constant 0 : index
    %133 = vector.load %arg13[%c0_62, %c0_63, %c0_64] : memref<2x64x32xbf16, #tpu.memory_space<vmem>>, vector<1x64x32xbf16>
    %134 = vector.shape_cast %133 : vector<1x64x32xbf16> to vector<64x32xbf16>
    %cst_65 = arith.constant dense<0.000000e+00> : vector<64x32xf32>
    %135 = tpu.matmul %132, %134, %cst_65 {dimension_numbers = #tpu.dot_dimension_numbers<[1], [0], [0], [1], [0, 0, 1, 1], [], []>} : vector<64x64xbf16>, vector<64x32xbf16>, vector<64x32xf32> -> vector<64x32xf32>
    %c0_66 = arith.constant 0 : index
    %c0_67 = arith.constant 0 : index
    %c0_68 = arith.constant 0 : index
    %136 = vector.load %arg14[%c0_66, %c0_67, %c0_68] : memref<2x1x32xf32, #tpu.memory_space<vmem>>, vector<1x1x32xf32>
    %137 = vector.shape_cast %136 : vector<1x1x32xf32> to vector<1x32xf32>
    %138 = vector.broadcast %137 : vector<1x32xf32> to vector<64x32xf32>
    %139 = arith.addf %135, %138 : vector<64x32xf32>
    %140 = arith.addf %89, %139 : vector<64x32xf32>
    %c1_69 = arith.constant 1 : index
    %c0_70 = arith.constant 0 : index
    %c0_71 = arith.constant 0 : index
    %141 = vector.load %arg6[%c1_69, %c0_70, %c0_71] : memref<2x1x32xf32, #tpu.memory_space<vmem>>, vector<1x1x32xf32>
    %142 = vector.shape_cast %141 : vector<1x1x32xf32> to vector<1x32xf32>
    %c1_72 = arith.constant 1 : index
    %c0_73 = arith.constant 0 : index
    %c0_74 = arith.constant 0 : index
    %143 = vector.load %arg7[%c1_72, %c0_73, %c0_74] : memref<2x1x32xf32, #tpu.memory_space<vmem>>, vector<1x1x32xf32>
    %144 = vector.shape_cast %143 : vector<1x1x32xf32> to vector<1x32xf32>
    %cst_75 = arith.constant dense<0.000000e+00> : vector<64xf32>
    %145 = vector.multi_reduction <add>, %140, %cst_75 [1] : vector<64x32xf32> to vector<64xf32>
    %146 = vector.shape_cast %145 : vector<64xf32> to vector<64x1xf32>
    %cst_76 = arith.constant 3.200000e+01 : f32
    %147 = vector.broadcast %cst_76 : f32 to vector<64x1xf32>
    %148 = arith.divf %146, %147 : vector<64x1xf32>
    %149 = vector.broadcast %148 : vector<64x1xf32> to vector<64x32xf32>
    %150 = arith.subf %140, %149 : vector<64x32xf32>
    %151 = arith.mulf %150, %150 : vector<64x32xf32>
    %cst_77 = arith.constant dense<0.000000e+00> : vector<64xf32>
    %152 = vector.multi_reduction <add>, %151, %cst_77 [1] : vector<64x32xf32> to vector<64xf32>
    %153 = vector.shape_cast %152 : vector<64xf32> to vector<64x1xf32>
    %cst_78 = arith.constant 3.200000e+01 : f32
    %154 = vector.broadcast %cst_78 : f32 to vector<64x1xf32>
    %155 = arith.divf %153, %154 : vector<64x1xf32>
    %156 = vector.broadcast %148 : vector<64x1xf32> to vector<64x32xf32>
    %157 = arith.subf %140, %156 : vector<64x32xf32>
    %cst_79 = arith.constant 9.99999974E-6 : f32
    %158 = vector.broadcast %cst_79 : f32 to vector<64x1xf32>
    %159 = arith.addf %155, %158 : vector<64x1xf32>
    %160 = math.rsqrt %159 : vector<64x1xf32>
    %161 = vector.broadcast %160 : vector<64x1xf32> to vector<64x32xf32>
    %162 = arith.mulf %157, %161 : vector<64x32xf32>
    %163 = vector.broadcast %142 : vector<1x32xf32> to vector<64x32xf32>
    %164 = arith.mulf %162, %163 : vector<64x32xf32>
    %165 = vector.broadcast %144 : vector<1x32xf32> to vector<64x32xf32>
    %166 = arith.addf %164, %165 : vector<64x32xf32>
    %167 = arith.truncf %166 : vector<64x32xf32> to vector<64x32xbf16>
    %c1_80 = arith.constant 1 : index
    %c0_81 = arith.constant 0 : index
    %c0_82 = arith.constant 0 : index
    %168 = vector.load %arg2[%c1_80, %c0_81, %c0_82] : memref<2x32x192xbf16, #tpu.memory_space<vmem>>, vector<1x32x192xbf16>
    %169 = vector.shape_cast %168 : vector<1x32x192xbf16> to vector<32x192xbf16>
    %cst_83 = arith.constant dense<0.000000e+00> : vector<64x192xf32>
    %170 = tpu.matmul %167, %169, %cst_83 {dimension_numbers = #tpu.dot_dimension_numbers<[1], [0], [0], [1], [0, 0, 1, 1], [], []>} : vector<64x32xbf16>, vector<32x192xbf16>, vector<64x192xf32> -> vector<64x192xf32>
    %c1_84 = arith.constant 1 : index
    %c0_85 = arith.constant 0 : index
    %c0_86 = arith.constant 0 : index
    %171 = vector.load %arg3[%c1_84, %c0_85, %c0_86] : memref<2x1x192xf32, #tpu.memory_space<vmem>>, vector<1x1x192xf32>
    %172 = vector.shape_cast %171 : vector<1x1x192xf32> to vector<1x192xf32>
    %173 = vector.broadcast %172 : vector<1x192xf32> to vector<64x192xf32>
    %174 = arith.addf %170, %173 : vector<64x192xf32>
    %175 = vector.extract_strided_slice %174 {offsets = [0, 0], sizes = [64, 128], strides = [1, 1]} : vector<64x192xf32> to vector<64x128xf32>
    %176 = vector.extract_strided_slice %174 {offsets = [0, 128], sizes = [64, 32], strides = [1, 1]} : vector<64x192xf32> to vector<64x32xf32>
    %177 = vector.extract_strided_slice %174 {offsets = [0, 160], sizes = [64, 32], strides = [1, 1]} : vector<64x192xf32> to vector<64x32xf32>
    %c1_87 = arith.constant 1 : index
    %c0_88 = arith.constant 0 : index
    %c0_89 = arith.constant 0 : index
    %178 = vector.load %arg4[%c1_87, %c0_88, %c0_89] : memref<2x256x64xf32, #tpu.memory_space<vmem>>, vector<1x256x64xf32>
    %179 = vector.shape_cast %178 : vector<1x256x64xf32> to vector<256x64xf32>
    %180 = vector.broadcast %3 : vector<1x32xf32> to vector<64x32xf32>
    %181 = arith.mulf %176, %180 : vector<64x32xf32>
    %182 = vector.broadcast %5 : vector<1x32xf32> to vector<64x32xf32>
    %183 = arith.mulf %176, %182 : vector<64x32xf32>
    %184 = vector.broadcast %7 : vector<1x32xf32> to vector<64x32xf32>
    %185 = arith.mulf %176, %184 : vector<64x32xf32>
    %186 = vector.broadcast %9 : vector<1x32xf32> to vector<64x32xf32>
    %187 = arith.mulf %176, %186 : vector<64x32xf32>
    %188 = tpu.concatenate %181, %183, %185, %187 in 0 : vector<64x32xf32>, vector<64x32xf32>, vector<64x32xf32>, vector<64x32xf32> -> vector<256x32xf32>
    %cst_90 = arith.constant dense<0.000000e+00> : vector<256x64xf32>
    %189 = tpu.matmul %188, %177, %cst_90 {dimension_numbers = #tpu.dot_dimension_numbers<[1], [1], [0], [0], [0, 0, 1, 0], [], []>} : vector<256x32xf32>, vector<64x32xf32>, vector<256x64xf32> -> vector<256x64xf32>
    %190 = arith.addf %189, %179 : vector<256x64xf32>
    %cst_91 = arith.constant dense<0xFF800000> : vector<256xf32>
    %191 = vector.multi_reduction <maximumf>, %190, %cst_91 [1] : vector<256x64xf32> to vector<256xf32>
    %192 = vector.shape_cast %191 : vector<256xf32> to vector<256x1xf32>
    %193 = vector.broadcast %192 : vector<256x1xf32> to vector<256x64xf32>
    %194 = arith.subf %190, %193 : vector<256x64xf32>
    %195 = math.exp %194 : vector<256x64xf32>
    %cst_92 = arith.constant dense<0.000000e+00> : vector<256xf32>
    %196 = vector.multi_reduction <add>, %195, %cst_92 [1] : vector<256x64xf32> to vector<256xf32>
    %197 = vector.shape_cast %196 : vector<256xf32> to vector<256x1xf32>
    %198 = tpu.reciprocal %197 {approx = true} : vector<256x1xf32> -> vector<256x1xf32>
    %199 = vector.broadcast %198 : vector<256x1xf32> to vector<256x64xf32>
    %200 = arith.mulf %195, %199 : vector<256x64xf32>
    %201 = vector.extract_strided_slice %200 {offsets = [0, 0], sizes = [64, 64], strides = [1, 1]} : vector<256x64xf32> to vector<64x64xf32>
    %202 = vector.extract_strided_slice %175 {offsets = [0, 0], sizes = [64, 32], strides = [1, 1]} : vector<64x128xf32> to vector<64x32xf32>
    %cst_93 = arith.constant dense<0.000000e+00> : vector<64x32xf32>
    %203 = tpu.matmul %201, %202, %cst_93 {dimension_numbers = #tpu.dot_dimension_numbers<[1], [0], [0], [1], [0, 0, 1, 1], [], []>} : vector<64x64xf32>, vector<64x32xf32>, vector<64x32xf32> -> vector<64x32xf32>
    %204 = vector.extract_strided_slice %200 {offsets = [64, 0], sizes = [64, 64], strides = [1, 1]} : vector<256x64xf32> to vector<64x64xf32>
    %205 = vector.extract_strided_slice %175 {offsets = [0, 32], sizes = [64, 32], strides = [1, 1]} : vector<64x128xf32> to vector<64x32xf32>
    %cst_94 = arith.constant dense<0.000000e+00> : vector<64x32xf32>
    %206 = tpu.matmul %204, %205, %cst_94 {dimension_numbers = #tpu.dot_dimension_numbers<[1], [0], [0], [1], [0, 0, 1, 1], [], []>} : vector<64x64xf32>, vector<64x32xf32>, vector<64x32xf32> -> vector<64x32xf32>
    %207 = arith.addf %203, %206 : vector<64x32xf32>
    %208 = vector.extract_strided_slice %200 {offsets = [128, 0], sizes = [64, 64], strides = [1, 1]} : vector<256x64xf32> to vector<64x64xf32>
    %209 = vector.extract_strided_slice %175 {offsets = [0, 64], sizes = [64, 32], strides = [1, 1]} : vector<64x128xf32> to vector<64x32xf32>
    %cst_95 = arith.constant dense<0.000000e+00> : vector<64x32xf32>
    %210 = tpu.matmul %208, %209, %cst_95 {dimension_numbers = #tpu.dot_dimension_numbers<[1], [0], [0], [1], [0, 0, 1, 1], [], []>} : vector<64x64xf32>, vector<64x32xf32>, vector<64x32xf32> -> vector<64x32xf32>
    %211 = arith.addf %207, %210 : vector<64x32xf32>
    %212 = vector.extract_strided_slice %200 {offsets = [192, 0], sizes = [64, 64], strides = [1, 1]} : vector<256x64xf32> to vector<64x64xf32>
    %213 = vector.extract_strided_slice %175 {offsets = [0, 96], sizes = [64, 32], strides = [1, 1]} : vector<64x128xf32> to vector<64x32xf32>
    %cst_96 = arith.constant dense<0.000000e+00> : vector<64x32xf32>
    %214 = tpu.matmul %212, %213, %cst_96 {dimension_numbers = #tpu.dot_dimension_numbers<[1], [0], [0], [1], [0, 0, 1, 1], [], []>} : vector<64x64xf32>, vector<64x32xf32>, vector<64x32xf32> -> vector<64x32xf32>
    %215 = arith.addf %211, %214 : vector<64x32xf32>
    %216 = arith.addf %140, %215 : vector<64x32xf32>
    %c1_97 = arith.constant 1 : index
    %c0_98 = arith.constant 0 : index
    %c0_99 = arith.constant 0 : index
    %217 = vector.load %arg8[%c1_97, %c0_98, %c0_99] : memref<2x1x32xf32, #tpu.memory_space<vmem>>, vector<1x1x32xf32>
    %218 = vector.shape_cast %217 : vector<1x1x32xf32> to vector<1x32xf32>
    %219 = vector.broadcast %218 : vector<1x32xf32> to vector<64x32xf32>
    %220 = arith.addf %216, %219 : vector<64x32xf32>
    %c1_100 = arith.constant 1 : index
    %c0_101 = arith.constant 0 : index
    %c0_102 = arith.constant 0 : index
    %221 = vector.load %arg9[%c1_100, %c0_101, %c0_102] : memref<2x1x32xf32, #tpu.memory_space<vmem>>, vector<1x1x32xf32>
    %222 = vector.shape_cast %221 : vector<1x1x32xf32> to vector<1x32xf32>
    %c1_103 = arith.constant 1 : index
    %c0_104 = arith.constant 0 : index
    %c0_105 = arith.constant 0 : index
    %223 = vector.load %arg10[%c1_103, %c0_104, %c0_105] : memref<2x1x32xf32, #tpu.memory_space<vmem>>, vector<1x1x32xf32>
    %224 = vector.shape_cast %223 : vector<1x1x32xf32> to vector<1x32xf32>
    %cst_106 = arith.constant dense<0.000000e+00> : vector<64xf32>
    %225 = vector.multi_reduction <add>, %220, %cst_106 [1] : vector<64x32xf32> to vector<64xf32>
    %226 = vector.shape_cast %225 : vector<64xf32> to vector<64x1xf32>
    %cst_107 = arith.constant 3.200000e+01 : f32
    %227 = vector.broadcast %cst_107 : f32 to vector<64x1xf32>
    %228 = arith.divf %226, %227 : vector<64x1xf32>
    %229 = vector.broadcast %228 : vector<64x1xf32> to vector<64x32xf32>
    %230 = arith.subf %220, %229 : vector<64x32xf32>
    %231 = arith.mulf %230, %230 : vector<64x32xf32>
    %cst_108 = arith.constant dense<0.000000e+00> : vector<64xf32>
    %232 = vector.multi_reduction <add>, %231, %cst_108 [1] : vector<64x32xf32> to vector<64xf32>
    %233 = vector.shape_cast %232 : vector<64xf32> to vector<64x1xf32>
    %cst_109 = arith.constant 3.200000e+01 : f32
    %234 = vector.broadcast %cst_109 : f32 to vector<64x1xf32>
    %235 = arith.divf %233, %234 : vector<64x1xf32>
    %236 = vector.broadcast %228 : vector<64x1xf32> to vector<64x32xf32>
    %237 = arith.subf %220, %236 : vector<64x32xf32>
    %cst_110 = arith.constant 9.99999974E-6 : f32
    %238 = vector.broadcast %cst_110 : f32 to vector<64x1xf32>
    %239 = arith.addf %235, %238 : vector<64x1xf32>
    %240 = math.rsqrt %239 : vector<64x1xf32>
    %241 = vector.broadcast %240 : vector<64x1xf32> to vector<64x32xf32>
    %242 = arith.mulf %237, %241 : vector<64x32xf32>
    %243 = vector.broadcast %222 : vector<1x32xf32> to vector<64x32xf32>
    %244 = arith.mulf %242, %243 : vector<64x32xf32>
    %245 = vector.broadcast %224 : vector<1x32xf32> to vector<64x32xf32>
    %246 = arith.addf %244, %245 : vector<64x32xf32>
    %247 = arith.truncf %246 : vector<64x32xf32> to vector<64x32xbf16>
    %c1_111 = arith.constant 1 : index
    %c0_112 = arith.constant 0 : index
    %c0_113 = arith.constant 0 : index
    %248 = vector.load %arg11[%c1_111, %c0_112, %c0_113] : memref<2x32x64xbf16, #tpu.memory_space<vmem>>, vector<1x32x64xbf16>
    %249 = vector.shape_cast %248 : vector<1x32x64xbf16> to vector<32x64xbf16>
    %cst_114 = arith.constant dense<0.000000e+00> : vector<64x64xf32>
    %250 = tpu.matmul %247, %249, %cst_114 {dimension_numbers = #tpu.dot_dimension_numbers<[1], [0], [0], [1], [0, 0, 1, 1], [], []>} : vector<64x32xbf16>, vector<32x64xbf16>, vector<64x64xf32> -> vector<64x64xf32>
    %c1_115 = arith.constant 1 : index
    %c0_116 = arith.constant 0 : index
    %c0_117 = arith.constant 0 : index
    %251 = vector.load %arg12[%c1_115, %c0_116, %c0_117] : memref<2x1x64xf32, #tpu.memory_space<vmem>>, vector<1x1x64xf32>
    %252 = vector.shape_cast %251 : vector<1x1x64xf32> to vector<1x64xf32>
    %253 = vector.broadcast %252 : vector<1x64xf32> to vector<64x64xf32>
    %254 = arith.addf %250, %253 : vector<64x64xf32>
    %cst_118 = arith.constant 5.000000e-01 : f32
    %255 = vector.broadcast %cst_118 : f32 to vector<64x64xf32>
    %256 = arith.mulf %255, %254 : vector<64x64xf32>
    %cst_119 = arith.constant 0.707106769 : f32
    %257 = vector.broadcast %cst_119 : f32 to vector<64x64xf32>
    %258 = arith.mulf %254, %257 : vector<64x64xf32>
    %259 = math.erf %258 : vector<64x64xf32>
    %cst_120 = arith.constant 1.000000e+00 : f32
    %260 = vector.broadcast %cst_120 : f32 to vector<64x64xf32>
    %261 = arith.addf %260, %259 : vector<64x64xf32>
    %262 = arith.mulf %256, %261 : vector<64x64xf32>
    %263 = arith.truncf %262 : vector<64x64xf32> to vector<64x64xbf16>
    %c1_121 = arith.constant 1 : index
    %c0_122 = arith.constant 0 : index
    %c0_123 = arith.constant 0 : index
    %264 = vector.load %arg13[%c1_121, %c0_122, %c0_123] : memref<2x64x32xbf16, #tpu.memory_space<vmem>>, vector<1x64x32xbf16>
    %265 = vector.shape_cast %264 : vector<1x64x32xbf16> to vector<64x32xbf16>
    %cst_124 = arith.constant dense<0.000000e+00> : vector<64x32xf32>
    %266 = tpu.matmul %263, %265, %cst_124 {dimension_numbers = #tpu.dot_dimension_numbers<[1], [0], [0], [1], [0, 0, 1, 1], [], []>} : vector<64x64xbf16>, vector<64x32xbf16>, vector<64x32xf32> -> vector<64x32xf32>
    %c1_125 = arith.constant 1 : index
    %c0_126 = arith.constant 0 : index
    %c0_127 = arith.constant 0 : index
    %267 = vector.load %arg14[%c1_125, %c0_126, %c0_127] : memref<2x1x32xf32, #tpu.memory_space<vmem>>, vector<1x1x32xf32>
    %268 = vector.shape_cast %267 : vector<1x1x32xf32> to vector<1x32xf32>
    %269 = vector.broadcast %268 : vector<1x32xf32> to vector<64x32xf32>
    %270 = arith.addf %266, %269 : vector<64x32xf32>
    %271 = arith.addf %220, %270 : vector<64x32xf32>
    %c0_128 = arith.constant 0 : index
    %c0_129 = arith.constant 0 : index
    %c0_130 = arith.constant 0 : index
    %272 = vector.load %arg15[%c0_128, %c0_129, %c0_130] : memref<1x64x32xf32, #tpu.memory_space<vmem>>, vector<1x64x32xf32>
    %273 = vector.shape_cast %272 : vector<1x64x32xf32> to vector<64x32xf32>
    %274 = vector.shape_cast %271 : vector<64x32xf32> to vector<1x64x32xf32>
    tpu.vector_store %arg15[%c0_128, %c0_129, %c0_130], %274 {strides = array<i32>} : memref<1x64x32xf32, #tpu.memory_space<vmem>>, vector<1x64x32xf32>,
    return
  }
  func.func @transform_0(%arg0: i32) -> (i32, i32, i32) {
    %c0_i32 = arith.constant 0 : i32
    %c0_i32_0 = arith.constant 0 : i32
    %c0_i32_1 = arith.constant 0 : i32
    return %arg0, %c0_i32, %c0_i32_0 : i32, i32, i32
  }
  func.func @transform_1(%arg0: i32) -> (i32, i32, i32) {
    %c0_i32 = arith.constant 0 : i32
    %c0_i32_0 = arith.constant 0 : i32
    %c0_i32_1 = arith.constant 0 : i32
    %c0_i32_2 = arith.constant 0 : i32
    return %c0_i32, %c0_i32_0, %c0_i32_1 : i32, i32, i32
  }
  func.func @transform_2(%arg0: i32) -> (i32, i32, i32) {
    %c0_i32 = arith.constant 0 : i32
    %c0_i32_0 = arith.constant 0 : i32
    %c0_i32_1 = arith.constant 0 : i32
    %c0_i32_2 = arith.constant 0 : i32
    return %c0_i32, %c0_i32_0, %c0_i32_1 : i32, i32, i32
  }
  func.func @transform_3(%arg0: i32) -> (i32, i32, i32) {
    %c0_i32 = arith.constant 0 : i32
    %c0_i32_0 = arith.constant 0 : i32
    %c0_i32_1 = arith.constant 0 : i32
    %c0_i32_2 = arith.constant 0 : i32
    return %c0_i32, %c0_i32_0, %c0_i32_1 : i32, i32, i32
  }
  func.func @transform_4(%arg0: i32) -> (i32, i32, i32) {
    %c0_i32 = arith.constant 0 : i32
    %c0_i32_0 = arith.constant 0 : i32
    %c0_i32_1 = arith.constant 0 : i32
    %c0_i32_2 = arith.constant 0 : i32
    return %c0_i32, %c0_i32_0, %c0_i32_1 : i32, i32, i32
  }
  func.func @transform_5(%arg0: i32) -> (i32, i32, i32) {
    %c0_i32 = arith.constant 0 : i32
    %c0_i32_0 = arith.constant 0 : i32
    %c0_i32_1 = arith.constant 0 : i32
    %c0_i32_2 = arith.constant 0 : i32
    return %c0_i32, %c0_i32_0, %c0_i32_1 : i32, i32, i32
  }
  func.func @transform_6(%arg0: i32) -> (i32, i32, i32) {
    %c0_i32 = arith.constant 0 : i32
    %c0_i32_0 = arith.constant 0 : i32
    %c0_i32_1 = arith.constant 0 : i32
    %c0_i32_2 = arith.constant 0 : i32
    return %c0_i32, %c0_i32_0, %c0_i32_1 : i32, i32, i32
  }
  func.func @transform_7(%arg0: i32) -> (i32, i32, i32) {
    %c0_i32 = arith.constant 0 : i32
    %c0_i32_0 = arith.constant 0 : i32
    %c0_i32_1 = arith.constant 0 : i32
    %c0_i32_2 = arith.constant 0 : i32
    return %c0_i32, %c0_i32_0, %c0_i32_1 : i32, i32, i32
  }
  func.func @transform_8(%arg0: i32) -> (i32, i32, i32) {
    %c0_i32 = arith.constant 0 : i32
    %c0_i32_0 = arith.constant 0 : i32
    %c0_i32_1 = arith.constant 0 : i32
    %c0_i32_2 = arith.constant 0 : i32
    return %c0_i32, %c0_i32_0, %c0_i32_1 : i32, i32, i32
  }
  func.func @transform_9(%arg0: i32) -> (i32, i32, i32) {
    %c0_i32 = arith.constant 0 : i32
    %c0_i32_0 = arith.constant 0 : i32
    %c0_i32_1 = arith.constant 0 : i32
    %c0_i32_2 = arith.constant 0 : i32
    return %c0_i32, %c0_i32_0, %c0_i32_1 : i32, i32, i32
  }
  func.func @transform_10(%arg0: i32) -> (i32, i32, i32) {
    %c0_i32 = arith.constant 0 : i32
    %c0_i32_0 = arith.constant 0 : i32
    %c0_i32_1 = arith.constant 0 : i32
    %c0_i32_2 = arith.constant 0 : i32
    return %c0_i32, %c0_i32_0, %c0_i32_1 : i32, i32, i32
  }
  func.func @transform_11(%arg0: i32) -> (i32, i32, i32) {
    %c0_i32 = arith.constant 0 : i32
    %c0_i32_0 = arith.constant 0 : i32
    %c0_i32_1 = arith.constant 0 : i32
    %c0_i32_2 = arith.constant 0 : i32
    return %c0_i32, %c0_i32_0, %c0_i32_1 : i32, i32, i32
  }
  func.func @transform_12(%arg0: i32) -> (i32, i32, i32) {
    %c0_i32 = arith.constant 0 : i32
    %c0_i32_0 = arith.constant 0 : i32
    %c0_i32_1 = arith.constant 0 : i32
    %c0_i32_2 = arith.constant 0 : i32
    return %c0_i32, %c0_i32_0, %c0_i32_1 : i32, i32, i32
  }
  func.func @transform_13(%arg0: i32) -> (i32, i32, i32) {
    %c0_i32 = arith.constant 0 : i32
    %c0_i32_0 = arith.constant 0 : i32
    %c0_i32_1 = arith.constant 0 : i32
    %c0_i32_2 = arith.constant 0 : i32
    return %c0_i32, %c0_i32_0, %c0_i32_1 : i32, i32, i32
  }
  func.func @transform_14(%arg0: i32) -> (i32, i32, i32) {
    %c0_i32 = arith.constant 0 : i32
    %c0_i32_0 = arith.constant 0 : i32
    %c0_i32_1 = arith.constant 0 : i32
    return %arg0, %c0_i32, %c0_i32_0 : i32, i32, i32
  }
}

</mosaic_0001>

<bundles_post_ra>
// kernel: tpu_custom_call.1
= control target key start
LH: loop header
LB: loop body
LE: loop exit
PB: predicated region body
PF: predicated region fallthrough
CT: control target
= control target key end

     0   :  { %s6533_s29 = smov 0   ;;  %s8444_s0 = inlined_call_operand.vmem [shape: f32[2,64,32], index: 0, kind: input, shape index: {}]   ;;  %s8445_s1 = inlined_call_operand.vmem [shape: bf16[2,32,192], index: 1, kind: input, shape index: {}]   ;;  %s8446_s2 = inlined_call_operand.vmem [shape: f32[2,1,192], index: 2, kind: input, shape index: {}]   ;;  %s8447_s3 = inlined_call_operand.vmem [shape: f32[2,256,64], index: 3, kind: input, shape index: {}]   ;;  %s8448_s4 = inlined_call_operand.vmem [shape: f32[4,1,32], index: 4, kind: input, shape index: {}]   ;;  %s8449_s5 = inlined_call_operand.vmem [shape: f32[2,1,32], index: 5, kind: input, shape index: {}]   ;;  %s8450_s6 = inlined_call_operand.vmem [shape: f32[2,1,32], index: 6, kind: input, shape index: {}]   ;;  %s8451_s7 = inlined_call_operand.vmem [shape: f32[2,1,32], index: 7, kind: input, shape index: {}]   ;;  %s8452_s8 = inlined_call_operand.vmem [shape: f32[2,1,32], index: 8, kind: input, shape index: {}]   ;;  %s8453_s9 = inlined_call_operand.vmem [shape: f32[2,1,32], index: 9, kind: input, shape index: {}]   ;;  %s8454_s10 = inlined_call_operand.vmem [shape: bf16[2,32,64], index: 10, kind: input, shape index: {}]   ;;  %s8455_s11 = inlined_call_operand.vmem [shape: f32[2,1,64], index: 11, kind: input, shape index: {}]   ;;  %s8456_s12 = inlined_call_operand.vmem [shape: bf16[2,64,32], index: 12, kind: input, shape index: {}]   ;;  %s8457_s13 = inlined_call_operand.vmem [shape: f32[2,1,32], index: 13, kind: input, shape index: {}]   ;;  %s8458_s14 = inlined_call_operand.vmem [shape: f32[2,64,32], index: 14, kind: output, shape index: {}]  }
   0x1 LB: > { %s4740_s30 = sadd.s32 4294967295, %s6452_s29   ;;  %p4744_p0 = scmp.ge.s32.totalorder %s6452_s29, 1  ;;  %s6452_s29 = sphi %s6533_s29, %s24_s29  }
   0x2   : > { %p412_p1 = scmp.lt.s32.totalorder %s6452_s29, 3 }
   0x4   : > { %p413_p2 = pnand %p4744_p0, %p412_p1 }
   0x6   : > { %416 = sbr.rel (%p413_p2) target bundleno = 4727 (0x1277), region = 76 }
   0xd   : > { %p458_p3 = scmp.lt.s32.totalorder %s4740_s30, 1  ;;  %vm486_vm0 = vcmask 261120   ;;  %v6058_v56 = vld [vmem:[%s8445_s1 + $0x4] ss:$8 sps:$4 sm:$0xff]   ;;  %v6060_v57 = vld [vmem:[%s8445_s1] ss:$8 sps:$4 sm:$0xff]  }
   0xe   : > { %672 = vmatprep.subr.bf16.mxu0 %v6058_v56  ;;  %v6061_v58 = vld [vmem:[%s8445_s1 + $0x14] ss:$8 sps:$4 sm:$0xff]   ;;  %v6063_v59 = vld [vmem:[%s8445_s1 + $0x10] ss:$8 sps:$4 sm:$0xff]   ;;  %v6454_v60 = vmov 0   ;;  %s6455_s23 = smov 96   ;;  %vm6720_vm1 = vmpackc.low %vm486_vm0, %vm486_vm0 }
   0xf   : > { %s8478_s30 = smov (!%p458_p3, %s4740_s30), 1  ;;  %673 = vmatpush1.bf16.msra.mxu0 %v6060_v57  ;;  %704 = vmatprep.mubr.bf16.mxu0 %v6454_v60  ;;  %s6456_s24 = smov 64   ;;  %vm1194_vm2 = vcmask 523264  }
  0x10   : > { %s5016_s15 = sshll.u32 %s8478_s30, 6  ;;  %674 = vmatprep.subr.bf16.mxu0 %v6061_v58  ;;  %s6457_s19 = smov 32  }
  0x11   : > { %s6549_s18 = scalar_lea.vmem %s8444_s0, %s5016_s15  ;;  %s467_s25 = scalar_lea.vmem %s8458_s14, %s5016_s15 }
  0x12   : > { %v469_v0 = vld [vmem:[%s6549_s18] sm:$0xff]  ;;  %v471_v1 = vld [vmem:[%s6549_s18 + $0x10] sm:$0xff]  ;;  %v470_v2 = vld [vmem:[%s6549_s18 + $0x8] sm:$0xff] }
  0x13   : > { %v487_v3 = vsel %vm486_vm0, %v469_v0, 0.0  ;;  %v493_v4 = vsel %vm486_vm0, %v471_v1, 0.0  ;;  %v472_v5 = vld [vmem:[%s6549_s18 + $0x18] sm:$0xff]  ;;  %v473_v6 = vld [vmem:[%s6549_s18 + $0x20] sm:$0xff]  ;;  %v490_v7 = vsel %vm486_vm0, %v470_v2, 0.0  ;;  %v474_v9 = vld [vmem:[%s6549_s18 + $0x28] sm:$0xff]  ;;  %675 = vmatpush1.bf16.msra.mxu0 %v6063_v59 }
  0x14   : > { %488 = vadd.xlane.f32.xlu0 %v487_v3  ;;  %494 = vadd.xlane.f32.xlu1 %v493_v4  ;;  %v496_v8 = vsel %vm486_vm0, %v472_v5, 0.0  ;;  %v499_v10 = vsel %vm486_vm0, %v473_v6, 0.0  ;;  %v502_v11 = vsel %vm486_vm0, %v474_v9, 0.0  ;;  %v475_v12 = vld [vmem:[%s6549_s18 + $0x30] sm:$0xff]  ;;  %v476_v13 = vld [vmem:[%s6549_s18 + $0x38] sm:$0xff] }
  0x15   : > { %v505_v14 = vsel %vm486_vm0, %v475_v12, 0.0  ;;  %v508_v15 = vsel %vm486_vm0, %v476_v13, 0.0 }
  0x18   : > { %491 = vadd.xlane.f32.xlu0 %v490_v7  ;;  %497 = vadd.xlane.f32.xlu1 %v496_v8 }
  0x1c   : > { %500 = vadd.xlane.f32.xlu0 %v499_v10  ;;  %503 = vadd.xlane.f32.xlu1 %v502_v11 }
  0x20   : > { %506 = vadd.xlane.f32.xlu0 %v505_v14  ;;  %509 = vadd.xlane.f32.xlu1 %v508_v15 }
  0xa1   : > { %v489_v16 = vpop.xlane.xlu0 %488  ;;  %v495_v17 = vpop.xlane.xlu1 %494 }
  0xa2   : > { %v512_v18 = vmul.f32 0.03125, %v489_v16  ;;  %v514_v19 = vmul.f32 0.03125, %v495_v17 }
  0xa4   : > { %v6567_v20 = vsub.f32 %v469_v0, %v512_v18  ;;  %v6569_v21 = vsub.f32 %v471_v1, %v514_v19 }
  0xa5   : > { %v492_v22 = vpop.xlane.xlu0 %491  ;;  %v498_v23 = vpop.xlane.xlu1 %497 }
  0xa6   : > { %v513_v24 = vmul.f32 0.03125, %v492_v22  ;;  %v515_v25 = vmul.f32 0.03125, %v498_v23  ;;  %v528_v26 = vmul.f32 %v6567_v20, %v6567_v20  ;;  %v530_v27 = vmul.f32 %v6569_v21, %v6569_v21  ;;  %v4752_v22 = vld [vmem:[%s8449_s5] ss:$0 sm:$0xff] }
  0xa8   : > { %v6575_v28 = vsub.f32 %v470_v2, %v513_v24  ;;  %v6577_v29 = vsub.f32 %v472_v5, %v515_v25  ;;  %v536_v30 = vsel %vm486_vm0, %v528_v26, 0.0  ;;  %v542_v33 = vsel %vm486_vm0, %v530_v27, 0.0 }
  0xa9   : > { %537 = vadd.xlane.f32.xlu0 %v536_v30  ;;  %v501_v31 = vpop.xlane.xlu0 %500  ;;  %v504_v32 = vpop.xlane.xlu1 %503 }
  0xaa   : > { %v516_v34 = vmul.f32 0.03125, %v501_v31  ;;  %v517_v35 = vmul.f32 0.03125, %v504_v32  ;;  %v529_v36 = vmul.f32 %v6575_v28, %v6575_v28  ;;  %v531_v37 = vmul.f32 %v6577_v29, %v6577_v29  ;;  %v4753_v31 = vld [vmem:[%s8450_s6] ss:$0 sm:$0xff] }
  0xac   : > { %v6585_v38 = vsub.f32 %v473_v6, %v516_v34  ;;  %v6587_v39 = vsub.f32 %v474_v9, %v517_v35  ;;  %v539_v40 = vsel %vm486_vm0, %v529_v36, 0.0  ;;  %v545_v43 = vsel %vm486_vm0, %v531_v37, 0.0 }
  0xad   : > { %543 = vadd.xlane.f32.xlu0 %v542_v33  ;;  %540 = vadd.xlane.f32.xlu1 %v539_v40  ;;  %v507_v41 = vpop.xlane.xlu0 %506  ;;  %v510_v42 = vpop.xlane.xlu1 %509 }
  0xae   : > { %v518_v44 = vmul.f32 0.03125, %v507_v41  ;;  %v519_v45 = vmul.f32 0.03125, %v510_v42  ;;  %v532_v46 = vmul.f32 %v6585_v38, %v6585_v38  ;;  %v533_v47 = vmul.f32 %v6587_v39, %v6587_v39 }
  0xb0   : > { %v6595_v48 = vsub.f32 %v475_v12, %v518_v44  ;;  %v6597_v49 = vsub.f32 %v476_v13, %v519_v45  ;;  %v548_v50 = vsel %vm486_vm0, %v532_v46, 0.0  ;;  %v551_v51 = vsel %vm486_vm0, %v533_v47, 0.0 }
  0xb1   : > { %546 = vadd.xlane.f32.xlu1 %v545_v43  ;;  %549 = vadd.xlane.f32.xlu0 %v548_v50 }
  0xb2   : > { %v534_v52 = vmul.f32 %v6595_v48, %v6595_v48  ;;  %v535_v53 = vmul.f32 %v6597_v49, %v6597_v49 }
  0xb4   : > { %v554_v54 = vsel %vm486_vm0, %v534_v52, 0.0  ;;  %v557_v55 = vsel %vm486_vm0, %v535_v53, 0.0 }
  0xb5   : > { %552 = vadd.xlane.f32.xlu1 %v551_v51  ;;  %555 = vadd.xlane.f32.xlu0 %v554_v54 }
  0xb9   : > { %558 = vadd.xlane.f32.xlu1 %v557_v55 }
 0x136   : > { %v538_v61 = vpop.xlane.xlu0 %537 }
 0x137   : > { %v560_v62 = vmul.f32 0.03125, %v538_v61 }
 0x139   : > { %v568_v63 = vadd.f32 1e-05, %v560_v62  ;;  %v630_v62 = vlaneseq }
 0x13a   : > { %v541_v0 = vpop.xlane.xlu1 %540  ;;  %v544_v1 = vpop.xlane.xlu0 %543 }
 0x13b   : > { %6082 = vrsqrt.f32 %v568_v63  ;;  %v561_v2 = vmul.f32 0.03125, %v541_v0  ;;  %v562_v3 = vmul.f32 0.03125, %v544_v1  ;;  %v6641_v63 = vshrl.u32 %v630_v62, 7 }
 0x13d   : > { %v569_v4 = vadd.f32 1e-05, %v561_v2  ;;  %v570_v5 = vadd.f32 1e-05, %v562_v3  ;;  %v8459_v0 = vsub.s32 0, %v6641_v63 }
 0x13e   : > { %v547_v6 = vpop.xlane.xlu1 %546  ;;  %v550_v7 = vpop.xlane.xlu0 %549 }
 0x13f   : > { %6084 = vrsqrt.f32 %v569_v4  ;;  %v563_v8 = vmul.f32 0.03125, %v547_v6  ;;  %v564_v10 = vmul.f32 0.03125, %v550_v7 }
 0x140   : > { %6086 = vrsqrt.f32 %v570_v5  ;;  %v6655_v5 = vld [vmem:[%s8448_s4] ss:$0 sm:$0xff] }
 0x141   : > { %v571_v9 = vadd.f32 1e-05, %v563_v8  ;;  %v572_v14 = vadd.f32 1e-05, %v564_v10 }
 0x142   : > { %v553_v11 = vpop.xlane.xlu1 %552  ;;  %v556_v16 = vpop.xlane.xlu0 %555 }
 0x143   : > { %6088 = vrsqrt.f32 %v571_v9  ;;  %v565_v12 = vmul.f32 0.03125, %v553_v11  ;;  %v566_v24 = vmul.f32 0.03125, %v556_v16 }
 0x145   : > { %v6083_v13 = vpop.eup %6082  ;;  %v573_v15 = vadd.f32 1e-05, %v565_v12  ;;  %v574_v33 = vadd.f32 1e-05, %v566_v24 }
 0x146   : > { %v559_v17 = vpop.xlane.xlu1 %558  ;;  %v584_v18 = vmul.f32 %v6083_v13, %v6567_v20 }
 0x147   : > { %6090 = vrsqrt.f32 %v573_v15  ;;  %v567_v19 = vmul.f32 0.03125, %v559_v17 }
 0x148   : > { %6092 = vrsqrt.f32 %v572_v14  ;;  %v598_v26 = vmul.f32 %v4752_v22, %v584_v18 }
 0x149   : > { %v6085_v23 = vpop.eup %6084  ;;  %v575_v30 = vadd.f32 1e-05, %v567_v19 }
 0x14a   : > { %v585_v25 = vmul.f32 %v6085_v23, %v6575_v28  ;;  %v6087_v27 = vpop.eup %6086  ;;  %v612_v34 = vadd.f32 %v4753_v31, %v598_v26 }
 0x14b   : > { %v586_v36 = vmul.f32 %v6087_v27, %v6569_v21  ;;  %6094 = vrsqrt.f32 %v575_v30 }
 0x14c   : > { %v599_v32 = vmul.f32 %v4752_v22, %v585_v25  ;;  %6096 = vrsqrt.f32 %v574_v33 }
 0x14d   : > { %v6089_v20 = vpop.eup %6088  ;;  %v600_v42 = vmul.f32 %v4752_v22, %v586_v36 }
 0x14e   : > { %v613_v35 = vadd.f32 %v4753_v31, %v599_v32  ;;  %v587_v37 = vmul.f32 %v6089_v20, %v6577_v29 }
 0x14f   : > { %v614_v46 = vadd.f32 %v4753_v31, %v600_v42 }
 0x150   : > { %v620_v40 = vpack.c.bf16 %v613_v35, %v612_v34  ;;  %v601_v41 = vmul.f32 %v4752_v22, %v587_v37 }
 0x151   : > { %v6091_v28 = vpop.eup %6090 }
 0x152   : > { %4758 = vmatmul.mubr.msk.bf16.vlgmr.msra.gmra.mrb[0].mxu0 %vm486_vm0, %v620_v40  ;;  %v6093_v43 = vpop.eup %6092  ;;  %v615_v44 = vadd.f32 %v4753_v31, %v601_v41  ;;  %v589_v45 = vmul.f32 %v6091_v28, %v6587_v39 }
 0x153   : > { %714 = vmatprep.mubr.bf16.mxu0 %v6454_v60  ;;  %v588_v47 = vmul.f32 %v6093_v43, %v6585_v38 }
 0x154   : > { %v621_v21 = vpack.c.bf16 %v615_v44, %v614_v46  ;;  %v603_v50 = vmul.f32 %v4752_v22, %v589_v45 }
 0x155   : > { %v6095_v29 = vpop.eup %6094  ;;  %v602_v51 = vmul.f32 %v4752_v22, %v588_v47 }
 0x156   : > { %v6097_v52 = vpop.eup %6096  ;;  %v617_v53 = vadd.f32 %v4753_v31, %v603_v50  ;;  %v591_v54 = vmul.f32 %v6095_v29, %v6597_v49  ;;  %v8460_v49 = vsub.s32 1, %v6641_v63 }
 0x157   : > { %v616_v55 = vadd.f32 %v4753_v31, %v602_v51  ;;  %v590_v56 = vmul.f32 %v6097_v52, %v6595_v48  ;;  %v628_v48 = vld [vmem:[%s8446_s2] sm:$0x3] }
 0x158   : > { %v605_v39 = vmul.f32 %v4752_v22, %v591_v54  ;;  %v637_v1 = vrot.slane %v628_v48, %v8460_v49  ;;  %v633_v2 = vrot.slane %v628_v48, %v8459_v0 }
 0x159   : > { %v622_v57 = vpack.c.bf16 %v617_v53, %v616_v55  ;;  %v604_v38 = vmul.f32 %v4752_v22, %v590_v56 }
 0x15a   : > { %4759 = vmatmul.mubr.msk.bf16.gmra.mrb[4].mxu0 %vm486_vm0, %v621_v21  ;;  %v619_v58 = vadd.f32 %v4753_v31, %v605_v39 }
 0x15b   : > { %724 = vmatprep.mubr.bf16.mxu0 %v6454_v60  ;;  %v618_v59 = vadd.f32 %v4753_v31, %v604_v38 }
 0x15d   : > { %v623_v61 = vpack.c.bf16 %v619_v58, %v618_v59 }
 0x162   : > { %4760 = vmatmul.mubr.msk.bf16.gmra.mrb[8].mxu0 %vm486_vm0, %v622_v57 }
 0x163   : > { %734 = vmatprep.mubr.bf16.mxu0 %v6454_v60 }
 0x16a   : > { %4761 = vmatmul.mubr.msk.bf16.gmra.mrb[12].mxu0 %vm486_vm0, %v623_v61 }
 0x225   : > { %v706_v3 = vpop.f32.mrb[0].mxu0 }
 0x226   : > { %v708_v4 = vpop.f32.mrb[1].mxu0  ;;  %v707_v8 = vadd.f32 %v706_v3, %v633_v2 }
 0x227   : > { %v6657_v6 = vadd.f32 %v708_v4, %v637_v1  ;;  %v710_v7 = vpop.f32.mrb[2].mxu0 }
 0x228   : > { %v711_v9 = vadd.f32 %v710_v7, %v633_v2  ;;  %v712_v10 = vpop.f32.mrb[3].mxu0 }
 0x229   : > { %v6659_v11 = vadd.f32 %v712_v10, %v637_v1  ;;  %v783_v12 = vmul.f32 %v6655_v5, %v6657_v6 }
 0x22a   : > { %v6663_v13 = vpack.i.bf16 %v711_v9, %v707_v8  ;;  %v6665_v14 = vpack.c.bf16 %v711_v9, %v707_v8 }
 0x22b   : > { %5270 = vmatprep.mubr.msk.f32.mxu1 %vm486_vm0, %v783_v12  ;;  %v5898_v15 = vpack.i.bf16 %v6659_v11, %v6657_v6 }
 0x22d   : > { %5899 = vrot.lane.b32.xlu0 %v5898_v15, %s6455_s23  ;;  %v716_v16 = vpop.f32.mrb[4].mxu0 }
 0x22e   : > { %v718_v17 = vpop.f32.mrb[5].mxu0  ;;  %v717_v19 = vadd.f32 %v716_v16, %v633_v2 }
 0x22f   : > { %v720_v18 = vpop.f32.mrb[6].mxu0  ;;  %v6671_v24 = vadd.f32 %v718_v17, %v637_v1 }
 0x230   : > { %v721_v22 = vadd.f32 %v720_v18, %v633_v2  ;;  %v722_v23 = vpop.f32.mrb[7].mxu0 }
 0x231   : > { %v6673_v25 = vadd.f32 %v722_v23, %v637_v1  ;;  %5919 = vrot.lane.b32.xlu0 %v6663_v13, %s6455_s23 }
 0x232   : > { %v6677_v26 = vpack.i.bf16 %v721_v22, %v717_v19  ;;  %v6681_v30 = vpack.c.bf16 %v721_v22, %v717_v19 }
 0x233   : > { %v5903_v27 = vpack.i.bf16 %v6673_v25, %v6671_v24 }
 0x235   : > { %5904 = vrot.lane.b32.xlu1 %v5903_v27, %s6455_s23  ;;  %v726_v31 = vpop.f32.mrb[8].mxu0 }
 0x236   : > { %v728_v32 = vpop.f32.mrb[9].mxu0  ;;  %v727_v33 = vadd.f32 %v726_v31, %v633_v2 }
 0x237   : > { %v730_v20 = vpop.f32.mrb[10].mxu0  ;;  %v6684_v36 = vadd.f32 %v728_v32, %v637_v1 }
 0x238   : > { %v731_v34 = vadd.f32 %v730_v20, %v633_v2  ;;  %v732_v35 = vpop.f32.mrb[11].mxu0 }
 0x239   : > { %v6686_v37 = vadd.f32 %v732_v35, %v637_v1 }
 0x23a   : > { %v6688_v40 = vpack.i.bf16 %v731_v34, %v727_v33  ;;  %v6694_v28 = vpack.c.bf16 %v731_v34, %v727_v33  ;;  %v784_v33 = vmul.f32 %v6655_v5, %v6659_v11  ;;  %v785_v34 = vmul.f32 %v6655_v5, %v6671_v24 }
 0x23b   : > { %v5908_v41 = vpack.i.bf16 %v6686_v37, %v6684_v36 }
 0x23c   : > { %5929 = vrot.lane.b32.xlu0 %v6688_v40, %s6455_s23 }
 0x23d   : > { %5909 = vrot.lane.b32.xlu1 %v5908_v41, %s6455_s23  ;;  %v736_v42 = vpop.f32.mrb[12].mxu0  ;;  %v786_v41 = vmul.f32 %v6655_v5, %v6673_v25 }
 0x23e   : > { %v738_v43 = vpop.f32.mrb[13].mxu0  ;;  %v737_v45 = vadd.f32 %v736_v42, %v633_v2  ;;  %v787_v42 = vmul.f32 %v6655_v5, %v6684_v36 }
 0x23f   : > { %v740_v44 = vpop.f32.mrb[14].mxu0  ;;  %v6699_v21 = vadd.f32 %v738_v43, %v637_v1  ;;  %v788_v43 = vmul.f32 %v6655_v5, %v6686_v37 }
 0x240   : > { %v741_v46 = vadd.f32 %v740_v44, %v633_v2  ;;  %5939 = vrot.lane.b32.xlu0 %v6663_v13, %s6456_s24  ;;  %v742_v47 = vpop.f32.mrb[15].mxu0 }
 0x241   : > { %v6701_v50 = vadd.f32 %v742_v47, %v637_v1  ;;  %v789_v44 = vmul.f32 %v6655_v5, %v6699_v21 }
 0x242   : > { %v6703_v29 = vpack.i.bf16 %v741_v46, %v737_v45  ;;  %v6709_v52 = vpack.c.bf16 %v741_v46, %v737_v45  ;;  %v4763_v45 = vld [vmem:[%s8448_s4 + $0x1] ss:$0 sm:$0xff] }
 0x243   : > { %v5913_v51 = vpack.i.bf16 %v6701_v50, %v6699_v21  ;;  %v790_v46 = vmul.f32 %v6655_v5, %v6701_v50  ;;  %v797_v47 = vmul.f32 %v4763_v45, %v6657_v6  ;;  %v802_v5 = vmul.f32 %v4763_v45, %v6686_v37 }
 0x244   : > { %5949 = vrot.lane.b32.xlu0 %v6688_v40, %s6456_s24 }
 0x245   : > { %5914 = vrot.lane.b32.xlu1 %v5913_v51, %s6455_s23  ;;  %v798_v51 = vmul.f32 %v4763_v45, %v6659_v11 }
 0x249   : > { %5924 = vrot.lane.b32.xlu1 %v6677_v26, %s6455_s23 }
 0x24d   : > { %5934 = vrot.lane.b32.xlu1 %v6703_v29, %s6455_s23 }
 0x251   : > { %5944 = vrot.lane.b32.xlu1 %v6677_v26, %s6456_s24 }
 0x29f   : > { %v5900_v53 = vpop.permute.xlu0 %5899 }
 0x2a0   : > { %v5902_v54 = vunpack.i.h.bf16 %v5900_v53  ;;  %v5901_v55 = vunpack.i.l.bf16 %v5900_v53  ;;  %v799_v53 = vmul.f32 %v4763_v45, %v6671_v24 }
 0x2a2   : > { %v5662_v57 = vpack.c.bf16 %v5902_v54, %v5901_v55  ;;  %v800_v54 = vmul.f32 %v4763_v45, %v6673_v25  ;;  %v801_v55 = vmul.f32 %v4763_v45, %v6684_v36 }
 0x2a3   : > { %v5920_v39 = vpop.permute.xlu0 %5919 }
 0x2a4   : > { %v5922_v38 = vunpack.i.h.bf16 %v5920_v39  ;;  %v5921_v58 = vunpack.i.l.bf16 %v5920_v39  ;;  %5664 = vmatprep.subr.msk.bf16.mxu1 %vm6720_vm1, %v5662_v57  ;;  %v4764_v39 = vld [vmem:[%s8448_s4 + $0x2] ss:$0 sm:$0xff] }
 0x2a5   : > { %5667 = vmatpush3.bf16.xpose.msk.msra.mxu1 %vm6720_vm1, %v5662_v57  ;;  %v803_v57 = vmul.f32 %v4763_v45, %v6699_v21 }
 0x2a6   : > { %v5686_v59 = vpack.c.bf16 %v5922_v38, %v5921_v58  ;;  %v804_v38 = vmul.f32 %v4763_v45, %v6701_v50  ;;  %v811_v58 = vmul.f32 %v4764_v39, %v6657_v6 }
 0x2a7   : > { %v5905_v61 = vpop.permute.xlu1 %5904 }
 0x2a8   : > { %v5907_v62 = vunpack.i.h.bf16 %v5905_v61  ;;  %v5906_v48 = vunpack.i.l.bf16 %v5905_v61  ;;  %5687 = vmatprep.subr.bf16.mxu0 %v5686_v59  ;;  %v813_v61 = vmul.f32 %v4764_v39, %v6671_v24 }
 0x2a9   : > { %5689 = vmatpush3.bf16.msra.mxu0 %v5686_v59  ;;  %v812_v59 = vmul.f32 %v4764_v39, %v6659_v11 }
 0x2aa   : > { %v5668_v1 = vpack.c.bf16 %v5907_v62, %v5906_v48  ;;  %v814_v62 = vmul.f32 %v4764_v39, %v6673_v25  ;;  %v815_v48 = vmul.f32 %v4764_v39, %v6684_v36 }
 0x2ac   : > { %5670 = vmatprep.subr.msk.bf16.mxu1 %vm6720_vm1, %v5668_v1 }
 0x2ad   : > { %5673 = vmatpush3.bf16.xpose.msk.msra.mxu1 %vm6720_vm1, %v5668_v1  ;;  %v816_v1 = vmul.f32 %v4764_v39, %v6686_v37 }
 0x2ae   : > { %v5930_v12 = vpop.permute.xlu0 %5929 }
 0x2af   : > { %v5910_v2 = vpop.permute.xlu1 %5909  ;;  %v5932_v17 = vunpack.i.h.bf16 %v5930_v12  ;;  %v5931_v18 = vunpack.i.l.bf16 %v5930_v12 }
 0x2b0   : > { %v5912_v3 = vunpack.i.h.bf16 %v5910_v2  ;;  %v5911_v4 = vunpack.i.l.bf16 %v5910_v2  ;;  %v817_v2 = vmul.f32 %v4764_v39, %v6699_v21 }
 0x2b1   : > { %v5694_v20 = vpack.c.bf16 %v5932_v17, %v5931_v18  ;;  %v747_v18 = vld [vmem:[%s8447_s3 + $0x10] sm:$0xff] }
 0x2b2   : > { %v5674_v7 = vpack.c.bf16 %v5912_v3, %v5911_v4  ;;  %v4765_v3 = vld [vmem:[%s8448_s4 + $0x3] ss:$0 sm:$0xff]  ;;  %v818_v4 = vmul.f32 %v4764_v39, %v6701_v50 }
 0x2b3   : > { %v829_v12 = vmul.f32 %v4765_v3, %v6684_v36  ;;  %v753_v39 = vld [vmem:[%s8447_s3 + $0x40] sm:$0xff] }
 0x2b4   : > { %5676 = vmatprep.subr.msk.bf16.mxu1 %vm6720_vm1, %v5674_v7 }
 0x2b5   : > { %5679 = vmatpush3.bf16.xpose.msk.msra.mxu1 %vm6720_vm1, %v5674_v7  ;;  %v825_v7 = vmul.f32 %v4765_v3, %v6657_v6  ;;  %v830_v6 = vmul.f32 %v4765_v3, %v6686_v37 }
 0x2b7   : > { %v5915_v8 = vpop.permute.xlu1 %5914 }
 0x2b8   : > { %v5917_v9 = vunpack.i.h.bf16 %v5915_v8  ;;  %v5916_v10 = vunpack.i.l.bf16 %v5915_v8  ;;  %v826_v8 = vmul.f32 %v4765_v3, %v6659_v11  ;;  %v832_v11 = vmul.f32 %v4765_v3, %v6701_v50  ;;  %v748_v50 = vld [vmem:[%s8447_s3 + $0x18] sm:$0xff] }
 0x2ba   : > { %v5680_v15 = vpack.c.bf16 %v5917_v9, %v5916_v10  ;;  %v827_v9 = vmul.f32 %v4765_v3, %v6671_v24  ;;  %v828_v10 = vmul.f32 %v4765_v3, %v6673_v25  ;;  %v746_v24 = vld [vmem:[%s8447_s3 + $0x8] sm:$0xff]  ;;  %v745_v25 = vld [vmem:[%s8447_s3] sm:$0xff] }
 0x2bb   : > { %v5925_v16 = vpop.permute.xlu1 %5924 }
 0x2bc   : > { %v5927_v19 = vunpack.i.h.bf16 %v5925_v16  ;;  %v5926_v22 = vunpack.i.l.bf16 %v5925_v16  ;;  %5682 = vmatprep.subr.msk.bf16.mxu1 %vm6720_vm1, %v5680_v15 }
 0x2bd   : > { %5685 = vmatpush3.bf16.xpose.msk.msra.mxu1 %vm6720_vm1, %v5680_v15  ;;  %v831_v15 = vmul.f32 %v4765_v3, %v6699_v21 }
 0x2be   : > { %v5690_v23 = vpack.c.bf16 %v5927_v19, %v5926_v22 }
 0x2bf   : > { %v5935_v27 = vpop.permute.xlu1 %5934 }
 0x2c0   : > { %v5937_v31 = vunpack.i.h.bf16 %v5935_v27  ;;  %v5936_v32 = vunpack.i.l.bf16 %v5935_v27  ;;  %5691 = vmatprep.subr.bf16.mxu0 %v5690_v23 }
 0x2c1   : > { %5693 = vmatpush3.bf16.msra.mxu0 %v5690_v23 }
 0x2c2   : > { %5695 = vmatprep.subr.bf16.mxu0 %v5694_v20  ;;  %v5698_v35 = vpack.c.bf16 %v5937_v31, %v5936_v32  ;;  %v750_v32 = vld [vmem:[%s8447_s3 + $0x28] sm:$0xff] }
 0x2c4   : > { %5271 = vmatmul.mubr.msk.f32.vlgmr.msra.gmra.mrb[0].mxu1 %vm486_vm0, %v784_v33  ;;  %v749_v33 = vld [vmem:[%s8447_s3 + $0x20] sm:$0xff] }
 0x2c5   : > { %5273 = vmatprep.mubr.msk.f32.mxu1 %vm486_vm0, %v785_v34  ;;  %5697 = vmatpush3.bf16.msra.mxu0 %v5694_v20 }
 0x2c6   : > { %5699 = vmatprep.subr.bf16.mxu0 %v5698_v35 }
 0x2c8   : > { %5274 = vmatmul.mubr.msk.f32.gmra.mrb[2].mxu1 %vm486_vm0, %v786_v41 }
 0x2c9   : > { %5276 = vmatprep.mubr.msk.f32.mxu1 %vm486_vm0, %v787_v42  ;;  %5701 = vmatpush3.bf16.msra.mxu0 %v5698_v35 }
 0x2ca   : > { %5703 = vmatprep.subr.bf16.mxu0 %v6665_v14 }
 0x2cc   : > { %5277 = vmatmul.mubr.msk.f32.gmra.mrb[4].mxu1 %vm486_vm0, %v788_v43 }
 0x2cd   : > { %5279 = vmatprep.mubr.msk.f32.mxu1 %vm486_vm0, %v789_v44  ;;  %v752_v44 = vld [vmem:[%s8447_s3 + $0x38] sm:$0xff] }
 0x2d0   : > { %5280 = vmatmul.mubr.msk.f32.gmra.mrb[6].mxu1 %vm486_vm0, %v790_v46  ;;  %v751_v46 = vld [vmem:[%s8447_s3 + $0x30] sm:$0xff] }
 0x2d1   : > { %5282 = vmatprep.mubr.msk.f32.mxu1 %vm486_vm0, %v797_v47 }
 0x2d4   : > { %5283 = vmatmul.mubr.msk.f32.gmra.mrb[8].mxu1 %vm486_vm0, %v798_v51 }
 0x2d5   : > { %5285 = vmatprep.mubr.msk.f32.mxu1 %vm486_vm0, %v799_v53 }
 0x2d8   : > { %5286 = vmatmul.mubr.msk.f32.gmra.mrb[10].mxu1 %vm486_vm0, %v800_v54 }
 0x2d9   : > { %5288 = vmatprep.mubr.msk.f32.mxu1 %vm486_vm0, %v801_v55 }
 0x2dc   : > { %5289 = vmatmul.mubr.msk.f32.gmra.mrb[12].mxu1 %vm486_vm0, %v802_v5  ;;  %v754_v5 = vld [vmem:[%s8447_s3 + $0x48] sm:$0xff] }
 0x2dd   : > { %5291 = vmatprep.mubr.msk.f32.mxu1 %vm486_vm0, %v803_v57 }
 0x2e0   : > { %5292 = vmatmul.mubr.msk.f32.gmra.mrb[14].mxu1 %vm486_vm0, %v804_v38 }
 0x2e1   : > { %5294 = vmatprep.mubr.msk.f32.mxu1 %vm486_vm0, %v811_v58 }
 0x2e4   : > { %5295 = vmatmul.mubr.msk.f32.gmra.mrb[16].mxu1 %vm486_vm0, %v812_v59 }
 0x2e5   : > { %5297 = vmatprep.mubr.msk.f32.mxu1 %vm486_vm0, %v813_v61 }
 0x2e8   : > { %5298 = vmatmul.mubr.msk.f32.gmra.mrb[18].mxu1 %vm486_vm0, %v814_v62 }
 0x2e9   : > { %5300 = vmatprep.mubr.msk.f32.mxu1 %vm486_vm0, %v815_v48  ;;  %v756_v48 = vld [vmem:[%s8447_s3 + $0x58] sm:$0xff] }
 0x2ec   : > { %5301 = vmatmul.mubr.msk.f32.gmra.mrb[20].mxu1 %vm486_vm0, %v816_v1 }
 0x2ed   : > { %5303 = vmatprep.mubr.msk.f32.mxu1 %vm486_vm0, %v817_v2 }
 0x2f0   : > { %5304 = vmatmul.mubr.msk.f32.gmra.mrb[22].mxu1 %vm486_vm0, %v818_v4 }
 0x2f1   : > { %5306 = vmatprep.mubr.msk.f32.mxu1 %vm486_vm0, %v825_v7 }
 0x2f4   : > { %5307 = vmatmul.mubr.msk.f32.gmra.mrb[24].mxu1 %vm486_vm0, %v826_v8  ;;  %v755_v8 = vld [vmem:[%s8447_s3 + $0x50] sm:$0xff] }
 0x2f5   : > { %5309 = vmatprep.mubr.msk.f32.mxu1 %vm486_vm0, %v827_v9  ;;  %v758_v9 = vld [vmem:[%s8447_s3 + $0x68] sm:$0xff] }
 0x2f8   : > { %5310 = vmatmul.mubr.msk.f32.gmra.mrb[26].mxu1 %vm486_vm0, %v828_v10 }
 0x2f9   : > { %5312 = vmatprep.mubr.msk.f32.mxu1 %vm486_vm0, %v829_v12 }
 0x2fc   : > { %5313 = vmatmul.mubr.msk.f32.gmra.mrb[28].mxu1 %vm486_vm0, %v830_v6 }
 0x2fd   : > { %5315 = vmatprep.mubr.msk.f32.mxu1 %vm486_vm0, %v831_v15 }
 0x300   : > { %5316 = vmatmul.mubr.msk.f32.gmra.mrb[30].mxu1 %vm486_vm0, %v832_v11 }
 0x397   : > { %v5272_v36 = vpop.f32.mrb[0].mxu1 }
 0x398   : > { %v6825_v37 = vadd.f32 %v5272_v36, %v746_v24  ;;  %v1035_v21 = vpop.f32.mrb[1].mxu1  ;;  %v757_v24 = vld [vmem:[%s8447_s3 + $0x60] sm:$0xff] }
 0x399   : > { %v6827_v16 = vadd.f32 %v1035_v21, %v745_v25  ;;  %v760_v25 = vld [vmem:[%s8447_s3 + $0x78] sm:$0xff] }
 0x39a   : > { %v1198_v17 = vsel %vm1194_vm2, %v6825_v37, -inf }
 0x39b   : > { %1199 = vmax.xlane.f32.xlu1 %v1198_v17  ;;  %v5275_v19 = vpop.f32.mrb[2].mxu1  ;;  %v1195_v22 = vsel %vm1194_vm2, %v6827_v16, -inf }
 0x39c   : > { %v6839_v23 = vadd.f32 %v5275_v19, %v748_v50  ;;  %v1045_v27 = vpop.f32.mrb[3].mxu1  ;;  %1196 = vmax.xlane.f32.xlu0 %v1195_v22 }
 0x39d   : > { %v6841_v31 = vadd.f32 %v1045_v27, %v747_v18 }
 0x39e   : > { %v1204_v20 = vsel %vm1194_vm2, %v6839_v23, -inf }
 0x39f   : > { %1205 = vmax.xlane.f32.xlu1 %v1204_v20  ;;  %v5278_v34 = vpop.f32.mrb[4].mxu1  ;;  %v1201_v35 = vsel %vm1194_vm2, %v6841_v31, -inf }
 0x3a0   : > { %v6853_v41 = vadd.f32 %v5278_v34, %v750_v32  ;;  %v1055_v42 = vpop.f32.mrb[5].mxu1  ;;  %1202 = vmax.xlane.f32.xlu0 %v1201_v35 }
 0x3a1   : > { %v6855_v43 = vadd.f32 %v1055_v42, %v749_v33 }
 0x3a2   : > { %v1210_v45 = vsel %vm1194_vm2, %v6853_v41, -inf }
 0x3a3   : > { %1211 = vmax.xlane.f32.xlu1 %v1210_v45  ;;  %v5281_v47 = vpop.f32.mrb[6].mxu1  ;;  %v1207_v51 = vsel %vm1194_vm2, %v6855_v43, -inf }
 0x3a4   : > { %v6867_v53 = vadd.f32 %v5281_v47, %v752_v44  ;;  %v1065_v54 = vpop.f32.mrb[7].mxu1  ;;  %1208 = vmax.xlane.f32.xlu0 %v1207_v51 }
 0x3a5   : > { %v6869_v55 = vadd.f32 %v1065_v54, %v751_v46 }
 0x3a6   : > { %v1216_v57 = vsel %vm1194_vm2, %v6867_v53, -inf }
 0x3a7   : > { %1217 = vmax.xlane.f32.xlu1 %v1216_v57  ;;  %v5284_v38 = vpop.f32.mrb[8].mxu1  ;;  %v1213_v58 = vsel %vm1194_vm2, %v6869_v55, -inf }
 0x3a8   : > { %v6881_v59 = vadd.f32 %v5284_v38, %v754_v5  ;;  %v1075_v61 = vpop.f32.mrb[9].mxu1  ;;  %1214 = vmax.xlane.f32.xlu0 %v1213_v58  ;;  %v762_v58 = vld [vmem:[%s8447_s3 + $0x88] sm:$0xff] }
 0x3a9   : > { %v6883_v62 = vadd.f32 %v1075_v61, %v753_v39  ;;  %v759_v61 = vld [vmem:[%s8447_s3 + $0x70] sm:$0xff] }
 0x3aa   : > { %v1222_v1 = vsel %vm1194_vm2, %v6881_v59, -inf }
 0x3ab   : > { %1223 = vmax.xlane.f32.xlu1 %v1222_v1  ;;  %v5287_v2 = vpop.f32.mrb[10].mxu1  ;;  %v1219_v3 = vsel %vm1194_vm2, %v6883_v62, -inf }
 0x3ac   : > { %v6892_v4 = vadd.f32 %v5287_v2, %v756_v48  ;;  %v1085_v7 = vpop.f32.mrb[11].mxu1  ;;  %1220 = vmax.xlane.f32.xlu0 %v1219_v3  ;;  %v761_v2 = vld [vmem:[%s8447_s3 + $0x80] sm:$0xff] }
 0x3ad   : > { %v6902_v12 = vadd.f32 %v1085_v7, %v755_v8 }
 0x3ae   : > { %v1228_v10 = vsel %vm1194_vm2, %v6892_v4, -inf }
 0x3af   : > { %v5290_v6 = vpop.f32.mrb[12].mxu1  ;;  %v1225_v17 = vsel %vm1194_vm2, %v6902_v12, -inf }
 0x3b0   : > { %v6904_v15 = vadd.f32 %v5290_v6, %v758_v9  ;;  %v1095_v11 = vpop.f32.mrb[13].mxu1  ;;  %1229 = vmax.xlane.f32.xlu0 %v1228_v10  ;;  %v766_v9 = vld [vmem:[%s8447_s3 + $0xa8] sm:$0xff]  ;;  %v763_v6 = vld [vmem:[%s8447_s3 + $0x90] sm:$0xff] }
 0x3b1   : > { %v6914_v21 = vadd.f32 %v1095_v11, %v757_v24 }
 0x3b2   : > { %v1234_v36 = vsel %vm1194_vm2, %v6904_v15, -inf }
 0x3b3   : > { %1235 = vmax.xlane.f32.xlu1 %v1234_v36  ;;  %v5293_v50 = vpop.f32.mrb[14].mxu1  ;;  %v1231_v32 = vsel %vm1194_vm2, %v6914_v21, -inf  ;;  %v768_v36 = vld [vmem:[%s8447_s3 + $0xb8] sm:$0xff] }
 0x3b4   : > { %v6918_v18 = vadd.f32 %v5293_v50, %v760_v25  ;;  %v1105_v19 = vpop.f32.mrb[15].mxu1  ;;  %1226 = vmax.xlane.f32.xlu0 %v1225_v17  ;;  %v765_v17 = vld [vmem:[%s8447_s3 + $0xa0] sm:$0xff] }
 0x3b5   : > { %v6938_v1 = vadd.f32 %v1105_v19, %v759_v61  ;;  %v769_v61 = vld [vmem:[%s8447_s3 + $0xc0] sm:$0xff] }
 0x3b6   : > { %v1240_v22 = vsel %vm1194_vm2, %v6918_v18, -inf }
 0x3b7   : > { %1241 = vmax.xlane.f32.xlu1 %v1240_v22  ;;  %v5296_v27 = vpop.f32.mrb[16].mxu1  ;;  %v1237_v10 = vsel %vm1194_vm2, %v6938_v1, -inf }
 0x3b8   : > { %v1115_v20 = vpop.f32.mrb[17].mxu1  ;;  %1232 = vmax.xlane.f32.xlu0 %v1231_v32  ;;  %v6936_v48 = vadd.f32 %v5296_v27, %v762_v58  ;;  %v770_v32 = vld [vmem:[%s8447_s3 + $0xc8] sm:$0xff] }
 0x3b9   : > { %v6950_v8 = vadd.f32 %v1115_v20, %v761_v2  ;;  %v774_v2 = vld [vmem:[%s8447_s3 + $0xe8] sm:$0xff] }
 0x3ba   : > { %v1246_v7 = vsel %vm1194_vm2, %v6936_v48, -inf }
 0x3bb   : > { %v5299_v33 = vpop.f32.mrb[18].mxu1  ;;  %v1243_v50 = vsel %vm1194_vm2, %v6950_v8, -inf }
 0x3bc   : > { %v1125_v34 = vpop.f32.mrb[19].mxu1 }
 0x3bd   : > { %v6964_v25 = vadd.f32 %v1125_v34, %v763_v6  ;;  %v776_v6 = vld [vmem:[%s8447_s3 + $0xf8] sm:$0xff] }
 0x3bf   : > { %v5302_v35 = vpop.f32.mrb[20].mxu1  ;;  %v1249_v20 = vsel %vm1194_vm2, %v6964_v25, -inf }
 0x3c0   : > { %v1135_v42 = vpop.f32.mrb[21].mxu1  ;;  %v6960_v11 = vadd.f32 %v5302_v35, %v766_v9  ;;  %v771_v9 = vld [vmem:[%s8447_s3 + $0xd0] sm:$0xff] }
 0x3c1   : > { %v6978_v27 = vadd.f32 %v1135_v42, %v765_v17 }
 0x3c2   : > { %v1258_v22 = vsel %vm1194_vm2, %v6960_v11, -inf }
 0x3c3   : > { %v5305_v44 = vpop.f32.mrb[22].mxu1  ;;  %v1255_v58 = vsel %vm1194_vm2, %v6978_v27, -inf }
 0x3c4   : > { %v1145_v45 = vpop.f32.mrb[23].mxu1  ;;  %v6974_v19 = vadd.f32 %v5305_v44, %v768_v36  ;;  %v772_v44 = vld [vmem:[%s8447_s3 + $0xd8] sm:$0xff]  ;;  %v773_v36 = vld [vmem:[%s8447_s3 + $0xe0] sm:$0xff] }
 0x3c6   : > { %v1264_v35 = vsel %vm1194_vm2, %v6974_v19, -inf }
 0x3c7   : > { %v5308_v46 = vpop.f32.mrb[24].mxu1 }
 0x3c8   : > { %5954 = vrot.lane.b32.xlu1 %v6703_v29, %s6456_s24  ;;  %v1155_v47 = vpop.f32.mrb[25].mxu1  ;;  %v6988_v34 = vadd.f32 %v5308_v46, %v770_v32 }
 0x3cb   : > { %v5311_v51 = vpop.f32.mrb[26].mxu1 }
 0x3cc   : > { %v1165_v54 = vpop.f32.mrb[27].mxu1  ;;  %v7002_v46 = vadd.f32 %v5311_v51, %v772_v44 }
 0x3ce   : > { %5959 = vrot.lane.b32.xlu0 %v6663_v13, %s6457_s19  ;;  %v764_v13 = vld [vmem:[%s8447_s3 + $0x98] sm:$0xff] }
 0x3cf   : > { %v5314_v5 = vpop.f32.mrb[28].mxu1  ;;  %v6946_v3 = vadd.f32 %v5299_v33, %v764_v13  ;;  %v767_v33 = vld [vmem:[%s8447_s3 + $0xb0] sm:$0xff]  ;;  %v1270_v13 = vsel %vm1194_vm2, %v6988_v34, -inf }
 0x3d0   : > { %v1175_v57 = vpop.f32.mrb[29].mxu1  ;;  %v6992_v42 = vadd.f32 %v1145_v45, %v767_v33  ;;  %v7006_v45 = vadd.f32 %v1155_v47, %v769_v61  ;;  %v7016_v51 = vadd.f32 %v5314_v5, %v774_v2  ;;  %v7020_v47 = vadd.f32 %v1165_v54, %v771_v9  ;;  %v7050_v33 = vpop.permute.xlu0 %5939 }
 0x3d1   : > { %v1252_v24 = vsel %vm1194_vm2, %v6946_v3, -inf  ;;  %v7034_v54 = vadd.f32 %v1175_v57, %v773_v36 }
 0x3d2   : > { %v1273_v17 = vsel %vm1194_vm2, %v7020_v47, -inf }
 0x3d3   : > { %v5317_v39 = vpop.f32.mrb[30].mxu1  ;;  %v1279_v57 = vsel %vm1194_vm2, %v7034_v54, -inf }
 0x3d4   : > { %v6928_v38 = vpop.f32.mrb[31].mxu1  ;;  %v7030_v5 = vadd.f32 %v5317_v39, %v776_v6  ;;  %v7054_v44 = vpop.permute.xlu0 %5949 }
 0x3d6   : > { %v1288_v32 = vsel %vm1194_vm2, %v7030_v5, -inf }
 0x3ec   : > { %1247 = vmax.xlane.f32.xlu1 %v1246_v7  ;;  %v1261_v7 = vsel %vm1194_vm2, %v6992_v42, -inf }
 0x3ed   : > { %1238 = vmax.xlane.f32.xlu0 %v1237_v10  ;;  %v1276_v10 = vsel %vm1194_vm2, %v7002_v46, -inf }
 0x3f0   : > { %1253 = vmax.xlane.f32.xlu1 %v1252_v24  ;;  %v1267_v24 = vsel %vm1194_vm2, %v7006_v45, -inf }
 0x3f1   : > { %1244 = vmax.xlane.f32.xlu0 %v1243_v50  ;;  %v1282_v50 = vsel %vm1194_vm2, %v7016_v51, -inf }
 0x3f4   : > { %1259 = vmax.xlane.f32.xlu1 %v1258_v22  ;;  %v775_v22 = vld [vmem:[%s8447_s3 + $0xf0] sm:$0xff] }
 0x3f5   : > { %1250 = vmax.xlane.f32.xlu0 %v1249_v20  ;;  %v7044_v39 = vadd.f32 %v6928_v38, %v775_v22 }
 0x3f7   : > { %v1285_v20 = vsel %vm1194_vm2, %v7044_v39, -inf }
 0x3f8   : > { %1265 = vmax.xlane.f32.xlu1 %v1264_v35  ;;  %v7052_v35 = vpop.permute.xlu1 %5944 }
 0x3f9   : > { %1256 = vmax.xlane.f32.xlu0 %v1255_v58 }
 0x3fc   : > { %1271 = vmax.xlane.f32.xlu1 %v1270_v13 }
 0x3fd   : > { %1262 = vmax.xlane.f32.xlu0 %v1261_v7 }
 0x400   : > { %1277 = vmax.xlane.f32.xlu1 %v1276_v10 }
 0x401   : > { %1268 = vmax.xlane.f32.xlu0 %v1267_v24 }
 0x404   : > { %1283 = vmax.xlane.f32.xlu1 %v1282_v50 }
 0x405   : > { %1274 = vmax.xlane.f32.xlu0 %v1273_v17 }
 0x408   : > { %1289 = vmax.xlane.f32.xlu1 %v1288_v32 }
 0x409   : > { %1280 = vmax.xlane.f32.xlu0 %v1279_v57 }
 0x40d   : > { %1286 = vmax.xlane.f32.xlu0 %v1285_v20 }
 0x428   : > { %v1200_v58 = vpop.xlane.xlu1 %1199 }
 0x429   : > { %v1292_v61 = vsub.f32 %v6825_v37, %v1200_v58  ;;  %v1197_v38 = vpop.xlane.xlu0 %1196 }
 0x42a   : > { %v1291_v13 = vsub.f32 %v6827_v16, %v1197_v38 }
 0x42b   : > { %v1325_v2 = vmul.f32 1.442695, %v1292_v61 }
 0x42c   : > { %v1323_v7 = vmul.f32 1.442695, %v1291_v13  ;;  %v1206_v9 = vpop.xlane.xlu1 %1205 }
 0x42d   : > { %6098 = vpow2.f32 %v1325_v2  ;;  %v1294_v10 = vsub.f32 %v6839_v23, %v1206_v9  ;;  %v1203_v6 = vpop.xlane.xlu0 %1202 }
 0x42e   : > { %6100 = vpow2.f32 %v1323_v7  ;;  %v1293_v24 = vsub.f32 %v6841_v31, %v1203_v6 }
 0x42f   : > { %v1329_v36 = vmul.f32 1.442695, %v1294_v10 }
 0x430   : > { %v1327_v50 = vmul.f32 1.442695, %v1293_v24  ;;  %v1212_v17 = vpop.xlane.xlu1 %1211 }
 0x431   : > { %6102 = vpow2.f32 %v1329_v36  ;;  %v1296_v22 = vsub.f32 %v6853_v41, %v1212_v17  ;;  %v1209_v37 = vpop.xlane.xlu0 %1208 }
 0x432   : > { %v1295_v32 = vsub.f32 %v6855_v43, %v1209_v37  ;;  %6104 = vpow2.f32 %v1327_v50 }
 0x433   : > { %v1333_v16 = vmul.f32 1.442695, %v1296_v22 }
 0x434   : > { %v1331_v57 = vmul.f32 1.442695, %v1295_v32  ;;  %v1218_v20 = vpop.xlane.xlu1 %1217 }
 0x435   : > { %v1298_v58 = vsub.f32 %v6867_v53, %v1218_v20  ;;  %v1215_v23 = vpop.xlane.xlu0 %1214 }
 0x436   : > { %6106 = vpow2.f32 %v1331_v57  ;;  %v1297_v61 = vsub.f32 %v6869_v55, %v1215_v23 }
 0x437   : > { %v7064_v31 = vpop.eup %6098  ;;  %6108 = vpow2.f32 %v1333_v16  ;;  %v1337_v38 = vmul.f32 1.442695, %v1298_v58 }
 0x438   : > { %v7066_v13 = vpop.eup %6100  ;;  %v1335_v41 = vmul.f32 1.442695, %v1297_v61  ;;  %v1224_v2 = vpop.xlane.xlu1 %1223  ;;  %v1390_v43 = vsel %vm1194_vm2, %v7064_v31, 0.0 }
 0x439   : > { %6110 = vpow2.f32 %v1337_v38  ;;  %v1300_v7 = vsub.f32 %v6881_v59, %v1224_v2  ;;  %1391 = vadd.xlane.f32.xlu1 %v1390_v43  ;;  %v1221_v53 = vpop.xlane.xlu0 %1220  ;;  %v1387_v9 = vsel %vm1194_vm2, %v7066_v13, 0.0 }
 0x43a   : > { %v1299_v55 = vsub.f32 %v6883_v62, %v1221_v53  ;;  %1388 = vadd.xlane.f32.xlu0 %v1387_v9  ;;  %6112 = vpow2.f32 %v1335_v41 }
 0x43b   : > { %v7074_v10 = vpop.eup %6102  ;;  %v1341_v6 = vmul.f32 1.442695, %v1300_v7 }
 0x43c   : > { %v1339_v24 = vmul.f32 1.442695, %v1299_v55  ;;  %v1396_v36 = vsel %vm1194_vm2, %v7074_v10, 0.0  ;;  %v7078_v50 = vpop.eup %6104 }
 0x43d   : > { %6114 = vpow2.f32 %v1341_v6  ;;  %1397 = vadd.xlane.f32.xlu1 %v1396_v36  ;;  %v1230_v59 = vpop.xlane.xlu0 %1229  ;;  %v1393_v32 = vsel %vm1194_vm2, %v7078_v50, 0.0 }
 0x43e   : > { %v1302_v17 = vsub.f32 %v6892_v4, %v1230_v59  ;;  %6116 = vpow2.f32 %v1339_v24 }
 0x440   : > { %v7081_v22 = vpop.eup %6106  ;;  %v1345_v62 = vmul.f32 1.442695, %v1302_v17  ;;  %v1236_v37 = vpop.xlane.xlu1 %1235 }
 0x441   : > { %v7085_v16 = vpop.eup %6108  ;;  %v1304_v57 = vsub.f32 %v6904_v15, %v1236_v37  ;;  %1394 = vadd.xlane.f32.xlu1 %v1393_v32  ;;  %v1227_v20 = vpop.xlane.xlu0 %1226  ;;  %v1399_v58 = vsel %vm1194_vm2, %v7081_v22, 0.0 }
 0x442   : > { %6118 = vpow2.f32 %v1345_v62  ;;  %v1301_v4 = vsub.f32 %v6902_v12, %v1227_v20  ;;  %1400 = vadd.xlane.f32.xlu0 %v1399_v58  ;;  %v1402_v2 = vsel %vm1194_vm2, %v7085_v16, 0.0 }
 0x443   : > { %v7091_v23 = vpop.eup %6110  ;;  %v1349_v61 = vmul.f32 1.442695, %v1304_v57 }
 0x444   : > { %v1343_v38 = vmul.f32 1.442695, %v1301_v4  ;;  %v1242_v41 = vpop.xlane.xlu1 %1241  ;;  %v1408_v15 = vsel %vm1194_vm2, %v7091_v23, 0.0  ;;  %v7098_v53 = vpop.eup %6112 }
 0x445   : > { %6120 = vpow2.f32 %v1349_v61  ;;  %v1306_v43 = vsub.f32 %v6918_v18, %v1242_v41  ;;  %1403 = vadd.xlane.f32.xlu1 %v1402_v2  ;;  %v1233_v7 = vpop.xlane.xlu0 %1232  ;;  %v1405_v18 = vsel %vm1194_vm2, %v7098_v53, 0.0 }
 0x446   : > { %6122 = vpow2.f32 %v1343_v38  ;;  %v1303_v12 = vsub.f32 %v6914_v21, %v1233_v7  ;;  %1409 = vadd.xlane.f32.xlu0 %v1408_v15 }
 0x447   : > { %v7101_v9 = vpop.eup %6114  ;;  %v1353_v55 = vmul.f32 1.442695, %v1306_v43 }
 0x448   : > { %v1347_v6 = vmul.f32 1.442695, %v1303_v12  ;;  %v1414_v24 = vsel %vm1194_vm2, %v7101_v9, 0.0  ;;  %v7107_v36 = vpop.eup %6116  ;;  %v7133_v38 = vpop.permute.xlu1 %5954 }
 0x449   : > { %6124 = vpow2.f32 %v1353_v55  ;;  %1415 = vadd.xlane.f32.xlu1 %v1414_v24  ;;  %v1411_v21 = vsel %vm1194_vm2, %v7107_v36, 0.0  ;;  %v7135_v41 = vpop.permute.xlu0 %5959 }
 0x44a   : > { %6126 = vpow2.f32 %v1347_v6  ;;  %1406 = vadd.xlane.f32.xlu0 %v1405_v18 }
 0x44c   : > { %v7109_v59 = vpop.eup %6118 }
 0x44d   : > { %v1420_v17 = vsel %vm1194_vm2, %v7109_v59, 0.0 }
 0x44e   : > { %1412 = vadd.xlane.f32.xlu0 %v1411_v21  ;;  %1421 = vadd.xlane.f32.xlu1 %v1420_v17 }
 0x44f   : > { %v7115_v62 = vpop.eup %6120 }
 0x450   : > { %v7117_v37 = vpop.eup %6122  ;;  %v1426_v32 = vsel %vm1194_vm2, %v7115_v62, 0.0 }
 0x451   : > { %v1417_v57 = vsel %vm1194_vm2, %v7117_v37, 0.0 }
 0x452   : > { %1427 = vadd.xlane.f32.xlu1 %v1426_v32  ;;  %1418 = vadd.xlane.f32.xlu0 %v1417_v57 }
 0x453   : > { %v7123_v20 = vpop.eup %6124 }
 0x454   : > { %v7125_v58 = vpop.eup %6126  ;;  %v1432_v4 = vsel %vm1194_vm2, %v7123_v20, 0.0 }
 0x455   : > { %v1423_v61 = vsel %vm1194_vm2, %v7125_v58, 0.0 }
 0x456   : > { %1433 = vadd.xlane.f32.xlu1 %v1432_v4  ;;  %1424 = vadd.xlane.f32.xlu0 %v1423_v61 }
 0x46c   : > { %5964 = vrot.lane.b32.xlu0 %v6677_v26, %s6457_s19 }
 0x479   : > { %v1248_v2 = vpop.xlane.xlu1 %1247 }
 0x47a   : > { %v1308_v15 = vsub.f32 %v6936_v48, %v1248_v2  ;;  %v1239_v43 = vpop.xlane.xlu0 %1238 }
 0x47b   : > { %v1305_v7 = vsub.f32 %v6938_v1, %v1239_v43 }
 0x47c   : > { %v1357_v12 = vmul.f32 1.442695, %v1308_v15 }
 0x47d   : > { %v1351_v55 = vmul.f32 1.442695, %v1305_v7  ;;  %v1254_v6 = vpop.xlane.xlu1 %1253 }
 0x47e   : > { %6128 = vpow2.f32 %v1357_v12  ;;  %v1310_v24 = vsub.f32 %v6946_v3, %v1254_v6  ;;  %v1245_v18 = vpop.xlane.xlu0 %1244 }
 0x47f   : > { %6130 = vpow2.f32 %v1351_v55  ;;  %v1307_v26 = vsub.f32 %v6950_v8, %v1245_v18 }
 0x480   : > { %v1361_v21 = vmul.f32 1.442695, %v1310_v24 }
 0x481   : > { %v1355_v17 = vmul.f32 1.442695, %v1307_v26  ;;  %v1260_v32 = vpop.xlane.xlu1 %1259 }
 0x482   : > { %6132 = vpow2.f32 %v1361_v21  ;;  %v1312_v57 = vsub.f32 %v6960_v11, %v1260_v32  ;;  %v1251_v48 = vpop.xlane.xlu0 %1250 }
 0x483   : > { %6134 = vpow2.f32 %v1355_v17  ;;  %v1309_v1 = vsub.f32 %v6964_v25, %v1251_v48 }
 0x484   : > { %v1365_v4 = vmul.f32 1.442695, %v1312_v57 }
 0x485   : > { %v1359_v61 = vmul.f32 1.442695, %v1309_v1  ;;  %v1266_v2 = vpop.xlane.xlu1 %1265 }
 0x486   : > { %6136 = vpow2.f32 %v1365_v4  ;;  %v1314_v3 = vsub.f32 %v6974_v19, %v1266_v2  ;;  %v1257_v15 = vpop.xlane.xlu0 %1256 }
 0x487   : > { %6138 = vpow2.f32 %v1359_v61  ;;  %v1311_v8 = vsub.f32 %v6978_v27, %v1257_v15 }
 0x488   : > { %v7145_v43 = vpop.eup %6128  ;;  %v1369_v7 = vmul.f32 1.442695, %v1314_v3 }
 0x489   : > { %v7147_v12 = vpop.eup %6130  ;;  %v1363_v11 = vmul.f32 1.442695, %v1311_v8  ;;  %v1272_v55 = vpop.xlane.xlu1 %1271  ;;  %v1438_v25 = vsel %vm1194_vm2, %v7145_v43, 0.0 }
 0x48a   : > { %6140 = vpow2.f32 %v1369_v7  ;;  %v1316_v6 = vsub.f32 %v6988_v34, %v1272_v55  ;;  %v1263_v24 = vpop.xlane.xlu0 %1262  ;;  %v1429_v19 = vsel %vm1194_vm2, %v7147_v12, 0.0 }
 0x48b   : > { %6142 = vpow2.f32 %v1363_v11  ;;  %v1313_v27 = vsub.f32 %v6992_v42, %v1263_v24  ;;  %1439 = vadd.xlane.f32.xlu0 %v1438_v25  ;;  %1430 = vadd.xlane.f32.xlu1 %v1429_v19 }
 0x48c   : > { %v7155_v18 = vpop.eup %6132  ;;  %v1373_v21 = vmul.f32 1.442695, %v1316_v6 }
 0x48d   : > { %v7157_v26 = vpop.eup %6134  ;;  %v1367_v17 = vmul.f32 1.442695, %v1313_v27  ;;  %v1278_v32 = vpop.xlane.xlu1 %1277  ;;  %v1444_v57 = vsel %vm1194_vm2, %v7155_v18, 0.0 }
 0x48e   : > { %v1318_v34 = vsub.f32 %v7002_v46, %v1278_v32  ;;  %v1269_v48 = vpop.xlane.xlu0 %1268  ;;  %v1435_v1 = vsel %vm1194_vm2, %v7157_v26, 0.0 }
 0x48f   : > { %6144 = vpow2.f32 %v1367_v17  ;;  %v1315_v42 = vsub.f32 %v7006_v45, %v1269_v48  ;;  %1445 = vadd.xlane.f32.xlu1 %v1444_v57  ;;  %1436 = vadd.xlane.f32.xlu0 %v1435_v1 }
 0x490   : > { %v7165_v4 = vpop.eup %6136  ;;  %6146 = vpow2.f32 %v1373_v21  ;;  %v1377_v2 = vmul.f32 1.442695, %v1318_v34 }
 0x491   : > { %v7167_v61 = vpop.eup %6138  ;;  %v1371_v3 = vmul.f32 1.442695, %v1315_v42  ;;  %v1284_v15 = vpop.xlane.xlu1 %1283  ;;  %v1450_v46 = vsel %vm1194_vm2, %v7165_v4, 0.0 }
 0x492   : > { %v1275_v8 = vpop.xlane.xlu0 %1274  ;;  %v1441_v7 = vsel %vm1194_vm2, %v7167_v61, 0.0  ;;  %v1320_v25 = vsub.f32 %v7016_v51, %v1284_v15 }
 0x493   : > { %6148 = vpow2.f32 %v1371_v3  ;;  %v1317_v45 = vsub.f32 %v7020_v47, %v1275_v8  ;;  %1451 = vadd.xlane.f32.xlu1 %v1450_v46  ;;  %1442 = vadd.xlane.f32.xlu0 %v1441_v7 }
 0x494   : > { %v7174_v11 = vpop.eup %6140  ;;  %6150 = vpow2.f32 %v1377_v2  ;;  %v1381_v32 = vmul.f32 1.442695, %v1320_v25 }
 0x495   : > { %v7176_v55 = vpop.eup %6142  ;;  %v1375_v6 = vmul.f32 1.442695, %v1317_v45  ;;  %v1456_v24 = vsel %vm1194_vm2, %v7174_v11, 0.0  ;;  %v1290_v19 = vpop.xlane.xlu1 %1289 }
 0x496   : > { %v1281_v27 = vpop.xlane.xlu0 %1280  ;;  %v1447_v21 = vsel %vm1194_vm2, %v7176_v55, 0.0  ;;  %v1322_v57 = vsub.f32 %v7030_v5, %v1290_v19 }
 0x497   : > { %v1319_v47 = vsub.f32 %v7034_v54, %v1281_v27  ;;  %1457 = vadd.xlane.f32.xlu1 %v1456_v24  ;;  %1448 = vadd.xlane.f32.xlu0 %v1447_v21  ;;  %6152 = vpow2.f32 %v1375_v6 }
 0x498   : > { %v1385_v54 = vmul.f32 1.442695, %v1322_v57 }
 0x499   : > { %v7184_v17 = vpop.eup %6144  ;;  %v1379_v51 = vmul.f32 1.442695, %v1319_v47 }
 0x49a   : > { %v1287_v34 = vpop.xlane.xlu0 %1286  ;;  %v1453_v48 = vsel %vm1194_vm2, %v7184_v17, 0.0  ;;  %v7189_v1 = vpop.eup %6146 }
 0x49b   : > { %6154 = vpow2.f32 %v1379_v51  ;;  %1454 = vadd.xlane.f32.xlu1 %v1453_v48  ;;  %v1321_v2 = vsub.f32 %v7044_v39, %v1287_v34  ;;  %v1462_v3 = vsel %vm1194_vm2, %v7189_v1, 0.0 }
 0x49c   : > { %6156 = vpow2.f32 %v1381_v32 }
 0x49d   : > { %v7191_v42 = vpop.eup %6148  ;;  %6158 = vpow2.f32 %v1385_v54  ;;  %v1383_v46 = vmul.f32 1.442695, %v1321_v2 }
 0x49e   : > { %v1459_v5 = vsel %vm1194_vm2, %v7191_v42, 0.0  ;;  %v7198_v15 = vpop.eup %6150 }
 0x49f   : > { %1463 = vadd.xlane.f32.xlu1 %v1462_v3  ;;  %1460 = vadd.xlane.f32.xlu0 %v1459_v5  ;;  %v1468_v8 = vsel %vm1194_vm2, %v7198_v15, 0.0  ;;  %6160 = vpow2.f32 %v1383_v46 }
 0x4a1   : > { %v7202_v7 = vpop.eup %6152 }
 0x4a2   : > { %v1465_v39 = vsel %vm1194_vm2, %v7202_v7, 0.0 }
 0x4a3   : > { %1469 = vadd.xlane.f32.xlu1 %v1468_v8 }
 0x4a5   : > { %v7204_v45 = vpop.eup %6154 }
 0x4a6   : > { %v1471_v25 = vsel %vm1194_vm2, %v7204_v45, 0.0  ;;  %v7210_v6 = vpop.eup %6156 }
 0x4a7   : > { %1466 = vadd.xlane.f32.xlu1 %v1465_v39  ;;  %1472 = vadd.xlane.f32.xlu0 %v1471_v25  ;;  %v1474_v24 = vsel %vm1194_vm2, %v7210_v6, 0.0  ;;  %v7214_v19 = vpop.eup %6158 }
 0x4a8   : > { %v1480_v27 = vsel %vm1194_vm2, %v7214_v19, 0.0 }
 0x4a9   : > { %v7218_v21 = vpop.eup %6160 }
 0x4aa   : > { %v1477_v47 = vsel %vm1194_vm2, %v7218_v21, 0.0 }
 0x4ab   : > { %1475 = vadd.xlane.f32.xlu1 %v1474_v24 }
 0x4af   : > { %1481 = vadd.xlane.f32.xlu1 %v1480_v27 }
 0x4b3   : > { %1478 = vadd.xlane.f32.xlu1 %v1477_v47 }
 0x4bd   : > { %5969 = vrot.lane.b32.xlu0 %v6688_v40, %s6457_s19 }
 0x4c4   : > { %5974 = vrot.lane.b32.xlu1 %v6703_v29, %s6457_s19 }
 0x4c6   : > { %v1392_v32 = vpop.xlane.xlu1 %1391 }
 0x4c7   : > { %v1389_v51 = vpop.xlane.xlu0 %1388 }
 0x4ca   : > { %v1398_v57 = vpop.xlane.xlu1 %1397 }
 0x4ce   : > { %v1395_v34 = vpop.xlane.xlu1 %1394 }
 0x4cf   : > { %v1401_v48 = vpop.xlane.xlu0 %1400 }
 0x4d2   : > { %v1404_v54 = vpop.xlane.xlu1 %1403 }
 0x4d3   : > { %v7226_v2 = vpop.xlane.xlu0 %1409 }
 0x4d6   : > { %v1416_v3 = vpop.xlane.xlu1 %1415 }
 0x4d7   : > { %v1407_v5 = vpop.xlane.xlu0 %1406  ;;  %6162 = vrcp.f32 %v1416_v3 }
 0x4db   : > { %v1422_v46 = vpop.xlane.xlu1 %1421  ;;  %v1413_v8 = vpop.xlane.xlu0 %1412 }
 0x4dc   : > { %6164 = vrcp.f32 %v1413_v8 }
 0x4dd   : > { %6166 = vrcp.f32 %v1422_v46 }
 0x4df   : > { %v1419_v39 = vpop.xlane.xlu0 %1418  ;;  %v1428_v40 = vpop.xlane.xlu1 %1427 }
 0x4e0   : > { %6168 = vrcp.f32 %v1419_v39 }
 0x4e1   : > { %6170 = vrcp.f32 %v1428_v40  ;;  %v6163_v29 = vpop.eup %6162 }
 0x4e2   : > { %v1524_v47 = vmul.f32 %v6163_v29, %v7101_v9 }
 0x4e3   : > { %v1425_v25 = vpop.xlane.xlu0 %1424 }
 0x4e4   : > { %6172 = vrcp.f32 %v1425_v25 }
 0x4e5   : > { %6174 = vrcp.f32 %v1389_v51 }
 0x4e6   : > { %v6165_v24 = vpop.eup %6164 }
 0x4e7   : > { %v1523_v27 = vmul.f32 %v6165_v24, %v7107_v36  ;;  %v6167_v0 = vpop.eup %6166 }
 0x4e8   : > { %v1526_v46 = vmul.f32 %v6167_v0, %v7109_v59  ;;  %v5941_v0 = vunpack.i.l.bf16 %v7050_v33 }
 0x4e9   : > { %5334 = vmatprep.mubr.msk.f32.mxu0 %vm1194_vm2, %v1523_v27 }
 0x4ea   : > { %v6169_v49 = vpop.eup %6168  ;;  %5335 = vmatmul.mubr.msk.f32.vlgmr.msra.gmra.mrb[16].mxu0 %vm1194_vm2, %v1524_v47 }
 0x4eb   : > { %5705 = vmatpush3.bf16.msra.mxu0 %v6665_v14  ;;  %v1525_v3 = vmul.f32 %v6169_v49, %v7117_v37  ;;  %v6171_v8 = vpop.eup %6170  ;;  %v5942_v49 = vunpack.i.h.bf16 %v7050_v33  ;;  %v7249_v37 = vpop.permute.xlu0 %5964 }
 0x4ec   : > { %5707 = vmatprep.subr.bf16.mxu0 %v6681_v30  ;;  %v1528_v14 = vmul.f32 %v6171_v8, %v7115_v62 }
 0x4ed   : > { %5337 = vmatprep.mubr.msk.f32.mxu0 %vm1194_vm2, %v1525_v3  ;;  %v5718_v59 = vpack.c.bf16 %v5942_v49, %v5941_v0 }
 0x4ee   : > { %v6173_v36 = vpop.eup %6172  ;;  %5338 = vmatmul.mubr.msk.f32.gmra.mrb[18].mxu0 %vm1194_vm2, %v1526_v46  ;;  %v5951_v46 = vunpack.i.l.bf16 %v7054_v44 }
 0x4ef   : > { %5709 = vmatpush3.bf16.msra.mxu0 %v6681_v30  ;;  %v1527_v9 = vmul.f32 %v6173_v36, %v7125_v58  ;;  %v1434_v30 = vpop.xlane.xlu1 %1433  ;;  %v6175_v40 = vpop.eup %6174 }
 0x4f0   : > { %5711 = vmatprep.subr.bf16.mxu0 %v6694_v28  ;;  %6176 = vrcp.f32 %v1434_v30 }
 0x4f1   : > { %5340 = vmatprep.mubr.msk.f32.mxu0 %vm1194_vm2, %v1527_v9 }
 0x4f2   : > { %5341 = vmatmul.mubr.msk.f32.gmra.mrb[20].mxu0 %vm1194_vm2, %v1528_v14  ;;  %v5957_v14 = vunpack.i.h.bf16 %v7133_v38 }
 0x4f3   : > { %5713 = vmatpush3.bf16.msra.mxu0 %v6694_v28 }
 0x4f4   : > { %5715 = vmatprep.subr.bf16.mxu0 %v6709_v52 }
 0x4f7   : > { %5717 = vmatpush3.bf16.msra.mxu0 %v6709_v52 }
 0x4f8   : > { %5719 = vmatprep.subr.bf16.mxu0 %v5718_v59 }
 0x4fa   : > { %v6177_v25 = vpop.eup %6176 }
 0x4fb   : > { %v1530_v51 = vmul.f32 %v6177_v25, %v7123_v20 }
 0x518   : > { %v1431_v62 = vpop.xlane.xlu1 %1430  ;;  %v1440_v58 = vpop.xlane.xlu0 %1439 }
 0x519   : > { %6178 = vrcp.f32 %v1431_v62 }
 0x51a   : > { %6180 = vrcp.f32 %v1392_v32  ;;  %v1515_v32 = vmul.f32 %v6175_v40, %v7066_v13  ;;  %v5952_v13 = vunpack.i.h.bf16 %v7054_v44  ;;  %v5956_v44 = vunpack.i.l.bf16 %v7133_v38 }
 0x51b   : > { %6182 = vrcp.f32 %v1395_v34  ;;  %v5947_v34 = vunpack.i.h.bf16 %v7052_v35  ;;  %v5961_v38 = vunpack.i.l.bf16 %v7135_v41 }
 0x51c   : > { %v1446_v33 = vpop.xlane.xlu1 %1445  ;;  %6184 = vrcp.f32 %v1398_v57  ;;  %v1437_v39 = vpop.xlane.xlu0 %1436  ;;  %v5726_v49 = vpack.c.bf16 %v5952_v13, %v5951_v46 }
 0x51d   : > { %6186 = vrcp.f32 %v1401_v48  ;;  %v5946_v48 = vunpack.i.l.bf16 %v7052_v35 }
 0x51e   : > { %6188 = vrcp.f32 %v1404_v54 }
 0x51f   : > { %6190 = vrcp.f32 %v1407_v5  ;;  %v5722_v35 = vpack.c.bf16 %v5947_v34, %v5946_v48 }
 0x520   : > { %v1452_v28 = vpop.xlane.xlu1 %1451  ;;  %v1443_v47 = vpop.xlane.xlu0 %1442  ;;  %6192 = vrcp.f32 %v7226_v2 }
 0x521   : > { %6194 = vrcp.f32 %v1437_v39 }
 0x522   : > { %6196 = vrcp.f32 %v1440_v58  ;;  %v5962_v58 = vunpack.i.h.bf16 %v7135_v41  ;;  %v5966_v41 = vunpack.i.l.bf16 %v7249_v37 }
 0x523   : > { %v6179_v29 = vpop.eup %6178  ;;  %6198 = vrcp.f32 %v1443_v47 }
 0x524   : > { %v7251_v52 = vpop.xlane.xlu1 %1457  ;;  %v1529_v24 = vmul.f32 %v6179_v29, %v7147_v12  ;;  %v6181_v27 = vpop.eup %6180  ;;  %6200 = vrcp.f32 %v1446_v33  ;;  %v5730_v33 = vpack.c.bf16 %v5957_v14, %v5956_v44 }
 0x525   : > { %v6183_v57 = vpop.eup %6182  ;;  %v1516_v20 = vmul.f32 %v6181_v27, %v7064_v31  ;;  %v1449_v8 = vpop.xlane.xlu0 %1448 }
 0x526   : > { %5343 = vmatprep.mubr.msk.f32.mxu0 %vm1194_vm2, %v1529_v24  ;;  %v6185_v12 = vpop.eup %6184  ;;  %v1517_v5 = vmul.f32 %v6183_v57, %v7078_v50  ;;  %6202 = vrcp.f32 %v1449_v8  ;;  %v5967_v24 = vunpack.i.h.bf16 %v7249_v37 }
 0x527   : > { %5344 = vmatmul.mubr.msk.f32.gmra.mrb[22].mxu0 %vm1194_vm2, %v1530_v51  ;;  %v6187_v3 = vpop.eup %6186  ;;  %v1518_v31 = vmul.f32 %v6185_v12, %v7074_v10  ;;  %6204 = vrcp.f32 %v1452_v28  ;;  %v5734_v28 = vpack.c.bf16 %v5962_v58, %v5961_v38 }
 0x528   : > { %v1455_v54 = vpop.xlane.xlu1 %1454  ;;  %5362 = vmatprep.mubr.msk.f32.mxu0 %vm1194_vm2, %v1515_v32  ;;  %v6189_v36 = vpop.eup %6188  ;;  %v1519_v50 = vmul.f32 %v6187_v3, %v7081_v22  ;;  %v5738_v34 = vpack.c.bf16 %v5967_v24, %v5966_v41 }
 0x529   : > { %v6191_v9 = vpop.eup %6190  ;;  %v1520_v10 = vmul.f32 %v6189_v36, %v7085_v16  ;;  %6206 = vrcp.f32 %v1455_v54 }
 0x52a   : > { %v6193_v30 = vpop.eup %6192  ;;  %v1521_v22 = vmul.f32 %v6191_v9, %v7098_v53  ;;  %6208 = vrcp.f32 %v7251_v52 }
 0x52b   : > { %5363 = vmatmul.mubr.msk.f32.vlgmr.msra.gmra.mrb[16].mxu0 %vm1194_vm2, %v1516_v20  ;;  %v6195_v62 = vpop.eup %6194  ;;  %v1522_v16 = vmul.f32 %v6193_v30, %v7091_v23 }
 0x52c   : > { %5721 = vmatpush3.bf16.msra.mxu0 %v5718_v59  ;;  %v1464_v2 = vpop.xlane.xlu1 %1463  ;;  %5365 = vmatprep.mubr.msk.f32.mxu0 %vm1194_vm2, %v1517_v5  ;;  %v1461_v0 = vpop.xlane.xlu0 %1460  ;;  %v1531_v53 = vmul.f32 %v6195_v62, %v7157_v26 }
 0x52d   : > { %5723 = vmatprep.subr.bf16.mxu0 %v5722_v35  ;;  %v6197_v25 = vpop.eup %6196  ;;  %6210 = vrcp.f32 %v1461_v0 }
 0x52e   : > { %v6199_v29 = vpop.eup %6198  ;;  %v1532_v23 = vmul.f32 %v6197_v25, %v7145_v43  ;;  %6212 = vrcp.f32 %v1464_v2 }
 0x52f   : > { %5366 = vmatmul.mubr.msk.f32.gmra.mrb[18].mxu0 %vm1194_vm2, %v1518_v31  ;;  %v6201_v26 = vpop.eup %6200  ;;  %v1533_v47 = vmul.f32 %v6199_v29, %v7167_v61 }
 0x530   : > { %5725 = vmatpush3.bf16.msra.mxu0 %v5722_v35  ;;  %v1470_v59 = vpop.xlane.xlu1 %1469  ;;  %5368 = vmatprep.mubr.msk.f32.mxu0 %vm1194_vm2, %v1519_v50  ;;  %v6203_v32 = vpop.eup %6202  ;;  %v1534_v48 = vmul.f32 %v6201_v26, %v7155_v18 }
 0x531   : > { %5727 = vmatprep.subr.bf16.mxu0 %v5726_v49  ;;  %v6205_v54 = vpop.eup %6204  ;;  %v1535_v43 = vmul.f32 %v6203_v32, %v7176_v55 }
 0x532   : > { %v1536_v5 = vmul.f32 %v6205_v54, %v7165_v4 }
 0x533   : > { %5369 = vmatmul.mubr.msk.f32.gmra.mrb[20].mxu0 %vm1194_vm2, %v1520_v10  ;;  %v6207_v20 = vpop.eup %6206  ;;  %v6434_v10 = vld [vmem:[%s6549_s18 + $0x8] sm:$0xff] }
 0x534   : > { %5729 = vmatpush3.bf16.msra.mxu0 %v5726_v49  ;;  %v1467_v39 = vpop.xlane.xlu1 %1466  ;;  %5371 = vmatprep.mubr.msk.f32.mxu0 %vm1194_vm2, %v1521_v22  ;;  %v1473_v40 = vpop.xlane.xlu0 %1472  ;;  %v1537_v18 = vmul.f32 %v6207_v20, %v7184_v17  ;;  %v6435_v22 = vld [vmem:[%s6549_s18] sm:$0xff] }
 0x535   : > { %5731 = vmatprep.subr.bf16.mxu0 %v5730_v33  ;;  %6214 = vrcp.f32 %v1467_v39  ;;  %v6209_v3 = vpop.eup %6208  ;;  %v6436_v39 = vld [vmem:[%s6549_s18 + $0x18] sm:$0xff] }
 0x536   : > { %6216 = vrcp.f32 %v1470_v59  ;;  %v1538_v8 = vmul.f32 %v6209_v3, %v7174_v11  ;;  %v4838_v59 = vld [vmem:[%s8451_s7] ss:$0 sm:$0xff] }
 0x537   : > { %5372 = vmatmul.mubr.msk.f32.gmra.mrb[22].mxu0 %vm1194_vm2, %v1522_v16  ;;  %v6211_v13 = vpop.eup %6210  ;;  %6218 = vrcp.f32 %v1473_v40  ;;  %v6437_v16 = vld [vmem:[%s6549_s18 + $0x10] sm:$0xff] }
 0x538   : > { %5733 = vmatpush3.bf16.msra.mxu0 %v5730_v33  ;;  %v1476_v51 = vpop.xlane.xlu1 %1475  ;;  %5390 = vmatprep.mubr.msk.f32.mxu0 %vm1194_vm2, %v1531_v53  ;;  %v5970_v27 = vpop.permute.xlu0 %5969  ;;  %v1539_v2 = vmul.f32 %v6211_v13, %v7191_v42 }
 0x539   : > { %5735 = vmatprep.subr.bf16.mxu0 %v5734_v28  ;;  %v5972_v57 = vunpack.i.h.bf16 %v5970_v27  ;;  %v5971_v37 = vunpack.i.l.bf16 %v5970_v27  ;;  %6220 = vrcp.f32 %v1476_v51  ;;  %v6213_v17 = vpop.eup %6212  ;;  %v6438_v51 = vld [vmem:[%s6549_s18 + $0x28] sm:$0xff] }
 0x53a   : > { %v1540_v36 = vmul.f32 %v6213_v17, %v7189_v1 }
 0x53b   : > { %5391 = vmatmul.mubr.msk.f32.vlgmr.msra.gmra.mrb[16].mxu0 %vm1194_vm2, %v1532_v23  ;;  %v5742_v61 = vpack.c.bf16 %v5972_v57, %v5971_v37 }
 0x53c   : > { %5737 = vmatpush3.bf16.msra.mxu0 %v5734_v28  ;;  %v1482_v52 = vpop.xlane.xlu1 %1481  ;;  %5393 = vmatprep.mubr.msk.f32.mxu0 %vm1194_vm2, %v1533_v47  ;;  %v6439_v47 = vld [vmem:[%s6549_s18 + $0x38] sm:$0xff] }
 0x53d   : > { %5739 = vmatprep.subr.bf16.mxu0 %v5738_v34 }
 0x53f   : > { %5394 = vmatmul.mubr.msk.f32.gmra.mrb[18].mxu0 %vm1194_vm2, %v1534_v48  ;;  %v6215_v31 = vpop.eup %6214 }
 0x540   : > { %5741 = vmatpush3.bf16.msra.mxu0 %v5738_v34  ;;  %v1479_v12 = vpop.xlane.xlu1 %1478  ;;  %5396 = vmatprep.mubr.msk.f32.mxu0 %vm1194_vm2, %v1535_v43  ;;  %v6217_v50 = vpop.eup %6216  ;;  %v1541_v9 = vmul.f32 %v6215_v31, %v7202_v7  ;;  %v6440_v34 = vld [vmem:[%s6549_s18 + $0x20] sm:$0xff] }
 0x541   : > { %5743 = vmatprep.subr.bf16.mxu0 %v5742_v61  ;;  %6222 = vrcp.f32 %v1479_v12  ;;  %v6219_v11 = vpop.eup %6218  ;;  %v1542_v42 = vmul.f32 %v6217_v50, %v7198_v15 }
 0x542   : > { %6224 = vrcp.f32 %v1482_v52  ;;  %v1543_v44 = vmul.f32 %v6219_v11, %v7204_v45 }
 0x543   : > { %5397 = vmatmul.mubr.msk.f32.gmra.mrb[20].mxu0 %vm1194_vm2, %v1536_v5  ;;  %v6221_v14 = vpop.eup %6220 }
 0x544   : > { %5745 = vmatpush3.bf16.msra.mxu0 %v5742_v61  ;;  %v5975_v55 = vpop.permute.xlu1 %5974  ;;  %5399 = vmatprep.mubr.msk.f32.mxu0 %vm1194_vm2, %v1537_v18  ;;  %v1544_v1 = vmul.f32 %v6221_v14, %v7210_v6  ;;  %v6441_v61 = vld [vmem:[%s6549_s18 + $0x30] sm:$0xff] }
 0x545   : > { %v5977_v46 = vunpack.i.h.bf16 %v5975_v55  ;;  %v5976_v35 = vunpack.i.l.bf16 %v5975_v55  ;;  %v6064_v55 = vld [vmem:[%s8454_s10] sm:$0xff]  }
 0x546   : > { %5430 = vmatprep.subr.bf16.mxu1 %v6064_v55 }
 0x547   : > { %5400 = vmatmul.mubr.msk.f32.gmra.mrb[22].mxu0 %vm1194_vm2, %v1538_v8  ;;  %v5746_v4 = vpack.c.bf16 %v5977_v46, %v5976_v35  ;;  %5431 = vmatpush3.bf16.msra.mxu1 %v6064_v55 }
 0x548   : > { %5418 = vmatprep.mubr.msk.f32.mxu0 %vm1194_vm2, %v1539_v2 }
 0x549   : > { %5747 = vmatprep.subr.bf16.mxu0 %v5746_v4 }
 0x54a   : > { %5749 = vmatpush3.bf16.msra.mxu0 %v5746_v4 }
 0x54b   : > { %v6223_v49 = vpop.eup %6222 }
 0x54c   : > { %v6225_v7 = vpop.eup %6224  ;;  %v1545_v0 = vmul.f32 %v6223_v49, %v7218_v21 }
 0x54d   : > { %5419 = vmatmul.mubr.msk.f32.vlgmr.msra.gmra.mrb[16].mxu0 %vm1194_vm2, %v1540_v36  ;;  %v1546_v15 = vmul.f32 %v6225_v7, %v7214_v19 }
 0x54e   : > { %5421 = vmatprep.mubr.msk.f32.mxu0 %vm1194_vm2, %v1541_v9 }
 0x551   : > { %5422 = vmatmul.mubr.msk.f32.gmra.mrb[18].mxu0 %vm1194_vm2, %v1542_v42 }
 0x552   : > { %5424 = vmatprep.mubr.msk.f32.mxu0 %vm1194_vm2, %v1543_v44 }
 0x555   : > { %5425 = vmatmul.mubr.msk.f32.gmra.mrb[20].mxu0 %vm1194_vm2, %v1544_v1 }
 0x556   : > { %5427 = vmatprep.mubr.msk.f32.mxu0 %vm1194_vm2, %v1545_v0 }
 0x559   : > { %5428 = vmatmul.mubr.msk.f32.gmra.mrb[22].mxu0 %vm1194_vm2, %v1546_v15 }
 0x620   : > { %v5420_v45 = vpop.f32.mrb[16].mxu0 }
 0x621   : > { %v2160_v6 = vadd.f32 %v6434_v10, %v5420_v45  ;;  %v2112_v30 = vpop.f32.mrb[17].mxu0 }
 0x622   : > { %v2159_v21 = vadd.f32 %v6435_v22, %v2112_v30 }
 0x623   : > { %v7322_v62 = vadd.f32 %v4838_v59, %v2160_v6 }
 0x624   : > { %v7324_v58 = vadd.f32 %v4838_v59, %v2159_v21  ;;  %v5423_v38 = vpop.f32.mrb[18].mxu0 }
 0x625   : > { %v2122_v19 = vpop.f32.mrb[19].mxu0  ;;  %v2187_v33 = vsel %vm486_vm0, %v7322_v62, 0.0  ;;  %v2162_v40 = vadd.f32 %v6436_v39, %v5423_v38 }
 0x626   : > { %v2161_v25 = vadd.f32 %v6437_v16, %v2122_v19  ;;  %2188 = vadd.xlane.f32.xlu1 %v2187_v33  ;;  %v2184_v53 = vsel %vm486_vm0, %v7324_v58, 0.0 }
 0x627   : > { %2185 = vadd.xlane.f32.xlu0 %v2184_v53  ;;  %v7334_v28 = vadd.f32 %v4838_v59, %v2162_v40 }
 0x628   : > { %v7332_v29 = vadd.f32 %v4838_v59, %v2161_v25  ;;  %v5426_v24 = vpop.f32.mrb[20].mxu0 }
 0x629   : > { %v2132_v41 = vpop.f32.mrb[21].mxu0  ;;  %v2164_v27 = vadd.f32 %v6438_v51, %v5426_v24  ;;  %v2193_v48 = vsel %vm486_vm0, %v7334_v28, 0.0 }
 0x62a   : > { %v2190_v23 = vsel %vm486_vm0, %v7332_v29, 0.0  ;;  %v2163_v52 = vadd.f32 %v6440_v34, %v2132_v41 }
 0x62b   : > { %2191 = vadd.xlane.f32.xlu0 %v2190_v23  ;;  %v7340_v37 = vadd.f32 %v4838_v59, %v2164_v27 }
 0x62c   : > { %v5429_v26 = vpop.f32.mrb[22].mxu0  ;;  %v7349_v20 = vadd.f32 %v4838_v59, %v2163_v52 }
 0x62d   : > { %v2166_v32 = vadd.f32 %v6439_v47, %v5429_v26  ;;  %v2142_v57 = vpop.f32.mrb[23].mxu0  ;;  %v2199_v5 = vsel %vm486_vm0, %v7340_v37, 0.0  ;;  %v6065_v26 = vld [vmem:[%s8454_s10 + $0x8] sm:$0xff]  }
 0x62e   : > { %v2165_v12 = vadd.f32 %v6441_v61, %v2142_v57  ;;  %v2196_v18 = vsel %vm486_vm0, %v7349_v20, 0.0  ;;  %5432 = vmatprep.subr.bf16.mxu1 %v6065_v26 }
 0x62f   : > { %v7345_v54 = vadd.f32 %v4838_v59, %v2166_v32  ;;  %2194 = vadd.xlane.f32.xlu0 %v2193_v48  ;;  %5433 = vmatpush3.bf16.msra.mxu1 %v6065_v26 }
 0x630   : > { %v7354_v3 = vadd.f32 %v4838_v59, %v2165_v12 }
 0x631   : > { %v2205_v43 = vsel %vm486_vm0, %v7345_v54, 0.0 }
 0x632   : > { %2206 = vadd.xlane.f32.xlu1 %v2205_v43  ;;  %v2202_v13 = vsel %vm486_vm0, %v7354_v3, 0.0 }
 0x633   : > { %2200 = vadd.xlane.f32.xlu0 %v2199_v5 }
 0x637   : > { %2197 = vadd.xlane.f32.xlu0 %v2196_v18 }
 0x63b   : > { %2203 = vadd.xlane.f32.xlu0 %v2202_v13 }
 0x6b3   : > { %v2189_v46 = vpop.xlane.xlu1 %2188 }
 0x6b4   : > { %v2209_v35 = vmul.f32 0.03125, %v2189_v46  ;;  %v2186_v8 = vpop.xlane.xlu0 %2185 }
 0x6b5   : > { %v2208_v2 = vmul.f32 0.03125, %v2186_v8 }
 0x6b6   : > { %v7364_v4 = vsub.f32 %v7322_v62, %v2209_v35 }
 0x6b7   : > { %v7367_v17 = vsub.f32 %v7324_v58, %v2208_v2  ;;  %v4839_v2 = vld [vmem:[%s8452_s8] ss:$0 sm:$0xff] }
 0x6b8   : > { %v2192_v31 = vpop.xlane.xlu0 %2191  ;;  %v2225_v36 = vmul.f32 %v7364_v4, %v7364_v4 }
 0x6b9   : > { %v2210_v50 = vmul.f32 0.03125, %v2192_v31  ;;  %v2224_v9 = vmul.f32 %v7367_v17, %v7367_v17 }
 0x6ba   : > { %v2235_v11 = vsel %vm486_vm0, %v2225_v36, 0.0 }
 0x6bb   : > { %v7375_v42 = vsub.f32 %v7332_v29, %v2210_v50  ;;  %2236 = vadd.xlane.f32.xlu1 %v2235_v11  ;;  %v2232_v14 = vsel %vm486_vm0, %v2224_v9, 0.0  ;;  %v4840_v9 = vld [vmem:[%s8453_s9] ss:$0 sm:$0xff] }
 0x6bc   : > { %v2195_v44 = vpop.xlane.xlu0 %2194  ;;  %2233 = vadd.xlane.f32.xlu0 %v2232_v14 }
 0x6bd   : > { %v2211_v49 = vmul.f32 0.03125, %v2195_v44  ;;  %v2226_v1 = vmul.f32 %v7375_v42, %v7375_v42 }
 0x6bf   : > { %v7381_v7 = vsub.f32 %v7334_v28, %v2211_v49  ;;  %v2207_v0 = vpop.xlane.xlu1 %2206  ;;  %v2238_v15 = vsel %vm486_vm0, %v2226_v1, 0.0 }
 0x6c0   : > { %v2215_v45 = vmul.f32 0.03125, %v2207_v0  ;;  %v2201_v59 = vpop.xlane.xlu0 %2200  ;;  %2239 = vadd.xlane.f32.xlu0 %v2238_v15 }
 0x6c1   : > { %v2213_v10 = vmul.f32 0.03125, %v2201_v59  ;;  %v2227_v6 = vmul.f32 %v7381_v7, %v7381_v7 }
 0x6c2   : > { %v7387_v30 = vsub.f32 %v7345_v54, %v2215_v45 }
 0x6c3   : > { %v7390_v22 = vsub.f32 %v7340_v37, %v2213_v10  ;;  %v2241_v21 = vsel %vm486_vm0, %v2227_v6, 0.0 }
 0x6c4   : > { %v2198_v38 = vpop.xlane.xlu0 %2197  ;;  %2242 = vadd.xlane.f32.xlu1 %v2241_v21  ;;  %v2231_v16 = vmul.f32 %v7387_v30, %v7387_v30 }
 0x6c5   : > { %v2212_v19 = vmul.f32 0.03125, %v2198_v38  ;;  %v2229_v33 = vmul.f32 %v7390_v22, %v7390_v22 }
 0x6c6   : > { %v2253_v51 = vsel %vm486_vm0, %v2231_v16, 0.0 }
 0x6c7   : > { %v7396_v39 = vsub.f32 %v7349_v20, %v2212_v19  ;;  %v2247_v40 = vsel %vm486_vm0, %v2229_v33, 0.0 }
 0x6c8   : > { %2248 = vadd.xlane.f32.xlu1 %v2247_v40  ;;  %v2204_v25 = vpop.xlane.xlu0 %2203 }
 0x6c9   : > { %v2214_v53 = vmul.f32 0.03125, %v2204_v25  ;;  %v2228_v24 = vmul.f32 %v7396_v39, %v7396_v39 }
 0x6cb   : > { %v7404_v41 = vsub.f32 %v7354_v3, %v2214_v53  ;;  %v2244_v27 = vsel %vm486_vm0, %v2228_v24, 0.0 }
 0x6cc   : > { %2254 = vadd.xlane.f32.xlu1 %v2253_v51  ;;  %2245 = vadd.xlane.f32.xlu0 %v2244_v27 }
 0x6cd   : > { %v2230_v23 = vmul.f32 %v7404_v41, %v7404_v41 }
 0x6cf   : > { %v2250_v47 = vsel %vm486_vm0, %v2230_v23, 0.0 }
 0x6d0   : > { %2251 = vadd.xlane.f32.xlu0 %v2250_v47 }
 0x748   : > { %v2237_v32 = vpop.xlane.xlu1 %2236 }
 0x749   : > { %v2257_v57 = vmul.f32 0.03125, %v2237_v32  ;;  %v2234_v34 = vpop.xlane.xlu0 %2233 }
 0x74a   : > { %v2256_v52 = vmul.f32 0.03125, %v2234_v34 }
 0x74b   : > { %v2265_v48 = vadd.f32 1e-05, %v2257_v57 }
 0x74c   : > { %v2264_v43 = vadd.f32 1e-05, %v2256_v52 }
 0x74d   : > { %6226 = vrsqrt.f32 %v2265_v48  ;;  %v2240_v61 = vpop.xlane.xlu0 %2239 }
 0x74e   : > { %6228 = vrsqrt.f32 %v2264_v43  ;;  %v2258_v12 = vmul.f32 0.03125, %v2240_v61 }
 0x750   : > { %v2266_v5 = vadd.f32 1e-05, %v2258_v12 }
 0x751   : > { %v2243_v18 = vpop.xlane.xlu1 %2242 }
 0x752   : > { %6230 = vrsqrt.f32 %v2266_v5  ;;  %v2259_v13 = vmul.f32 0.03125, %v2243_v18 }
 0x754   : > { %v2267_v55 = vadd.f32 1e-05, %v2259_v13 }
 0x755   : > { %v2249_v46 = vpop.xlane.xlu1 %2248 }
 0x756   : > { %6232 = vrsqrt.f32 %v2267_v55  ;;  %v2261_v35 = vmul.f32 0.03125, %v2249_v46  ;;  %v6069_v46 = vld [vmem:[%s8456_s12 + $0x18] sm:$0xff]  }
 0x757   : > { %v6227_v8 = vpop.eup %6226 }
 0x758   : > { %v6229_v31 = vpop.eup %6228  ;;  %v2269_v36 = vadd.f32 1e-05, %v2261_v35  ;;  %v2281_v50 = vmul.f32 %v6227_v8, %v7364_v4  ;;  %v4841_v35 = vld [vmem:[%s8455_s11] ss:$0 sm:$0xff] }
 0x759   : > { %v2255_v11 = vpop.xlane.xlu1 %2254  ;;  %v2246_v14 = vpop.xlane.xlu0 %2245  ;;  %v2280_v44 = vmul.f32 %v6229_v31, %v7367_v17 }
 0x75a   : > { %6234 = vrsqrt.f32 %v2269_v36  ;;  %v2263_v49 = vmul.f32 0.03125, %v2255_v11  ;;  %v2260_v1 = vmul.f32 0.03125, %v2246_v14  ;;  %v2295_v0 = vmul.f32 %v4839_v2, %v2281_v50 }
 0x75b   : > { %v2294_v15 = vmul.f32 %v4839_v2, %v2280_v44 }
 0x75c   : > { %v6231_v45 = vpop.eup %6230  ;;  %v2271_v59 = vadd.f32 1e-05, %v2263_v49  ;;  %v2268_v10 = vadd.f32 1e-05, %v2260_v1  ;;  %v2309_v6 = vadd.f32 %v4840_v9, %v2295_v0 }
 0x75d   : > { %v2282_v21 = vmul.f32 %v6231_v45, %v7375_v42  ;;  %v2252_v4 = vpop.xlane.xlu0 %2251  ;;  %v2308_v38 = vadd.f32 %v4840_v9, %v2294_v15 }
 0x75e   : > { %6236 = vrsqrt.f32 %v2271_v59  ;;  %v2262_v19 = vmul.f32 0.03125, %v2252_v4 }
 0x75f   : > { %6238 = vrsqrt.f32 %v2268_v10  ;;  %v2316_v33 = vpack.c.bf16 %v2309_v6, %v2308_v38  ;;  %v2296_v17 = vmul.f32 %v4839_v2, %v2282_v21 }
 0x760   : > { %v6233_v40 = vpop.eup %6232  ;;  %v2270_v16 = vadd.f32 1e-05, %v2262_v19 }
 0x761   : > { %v2283_v25 = vmul.f32 %v6233_v40, %v7381_v7  ;;  %5434 = vmatprep.mubr.msk.bf16.mxu1 %vm486_vm0, %v2316_v33  ;;  %v2310_v51 = vadd.f32 %v4840_v9, %v2296_v17 }
 0x762   : > { %6240 = vrsqrt.f32 %v2270_v16 }
 0x763   : > { %v2297_v53 = vmul.f32 %v4839_v2, %v2283_v25 }
 0x764   : > { %v6235_v24 = vpop.eup %6234 }
 0x765   : > { %v2311_v27 = vadd.f32 %v4840_v9, %v2297_v53  ;;  %v2285_v42 = vmul.f32 %v6235_v24, %v7390_v22 }
 0x767   : > { %v2317_v23 = vpack.c.bf16 %v2311_v27, %v2310_v51  ;;  %v2299_v34 = vmul.f32 %v4839_v2, %v2285_v42 }
 0x768   : > { %v6237_v26 = vpop.eup %6236 }
 0x769   : > { %v6239_v47 = vpop.eup %6238  ;;  %5435 = vmatmul.mubr.msk.bf16.vlgmr.msra.gmra.mrb[32].mxu1 %vm486_vm0, %v2317_v23  ;;  %v2287_v32 = vmul.f32 %v6237_v26, %v7387_v30  ;;  %v2313_v12 = vadd.f32 %v4840_v9, %v2299_v34  ;;  %v6066_v30 = vld [vmem:[%s8456_s12] sm:$0xff]  }
 0x76a   : > { %v2284_v57 = vmul.f32 %v6239_v47, %v7396_v39  ;;  %5442 = vmatprep.subr.bf16.mxu0 %v6066_v30  ;;  %v6067_v39 = vld [vmem:[%s8456_s12 + $0x8] sm:$0xff]  }
 0x76b   : > { %v2301_v43 = vmul.f32 %v4839_v2, %v2287_v32  ;;  %5443 = vmatpush3.bf16.msra.mxu0 %v6066_v30 }
 0x76c   : > { %v6241_v7 = vpop.eup %6240  ;;  %v2298_v52 = vmul.f32 %v4839_v2, %v2284_v57  ;;  %5444 = vmatprep.subr.bf16.mxu0 %v6067_v39 }
 0x76d   : > { %v2286_v48 = vmul.f32 %v6241_v7, %v7404_v41  ;;  %v2315_v13 = vadd.f32 %v4840_v9, %v2301_v43  ;;  %v6068_v41 = vld [vmem:[%s8456_s12 + $0x10] sm:$0xff]  }
 0x76e   : > { %v2312_v61 = vadd.f32 %v4840_v9, %v2298_v52 }
 0x76f   : > { %v2300_v5 = vmul.f32 %v4839_v2, %v2286_v48  ;;  %5445 = vmatpush3.bf16.msra.mxu0 %v6067_v39 }
 0x770   : > { %v2318_v18 = vpack.c.bf16 %v2313_v12, %v2312_v61  ;;  %5446 = vmatprep.subr.bf16.mxu0 %v6068_v41 }
 0x771   : > { %v2314_v22 = vadd.f32 %v4840_v9, %v2300_v5 }
 0x772   : > { %5438 = vmatprep.mubr.msk.bf16.mxu1 %vm486_vm0, %v2318_v18 }
 0x773   : > { %v2319_v55 = vpack.c.bf16 %v2315_v13, %v2314_v22  ;;  %5447 = vmatpush3.bf16.msra.mxu0 %v6068_v41 }
 0x774   : > { %5448 = vmatprep.subr.bf16.mxu0 %v6069_v46 }
 0x775   : > { %5439 = vmatmul.mubr.msk.bf16.gmra.mrb[36].mxu1 %vm486_vm0, %v2319_v55 }
 0x776   : > { %2810 = vmatprep.mubr.bf16.mxu1 %v6454_v60 }
 0x777   : > { %5449 = vmatpush3.bf16.msra.mxu0 %v6069_v46 }
 0x83c   : > { %v5436_v8 = vpop.f32.mrb[32].mxu1 }
 0x83d   : > { %v2398_v2 = vadd.f32 %v5436_v8, %v4841_v35  ;;  %v2389_v31 = vpop.f32.mrb[33].mxu1 }
 0x83e   : > { %v2390_v36 = vadd.f32 %v4841_v35, %v2389_v31  ;;  %v5437_v50 = vpop.f32.mrb[34].mxu1 }
 0x83f   : > { %v2430_v9 = vmul.f32 0.70710677, %v2398_v2  ;;  %v2401_v11 = vadd.f32 %v5437_v50, %v4841_v35  ;;  %v2392_v14 = vpop.f32.mrb[35].mxu1  ;;  %v2422_v53 = vmul.f32 0.5, %v2398_v2 }
 0x840   : > { %v2428_v44 = vmul.f32 0.70710677, %v2390_v36  ;;  %v2393_v49 = vadd.f32 %v4841_v35, %v2392_v14  ;;  %v2420_v42 = vmul.f32 0.5, %v2390_v36  ;;  %v4848_v14 = vld [vmem:[%s8457_s13] ss:$0 sm:$0xff] }
 0x841   : > { %6242 = verf.f32 %v2430_v9  ;;  %v2431_v1 = vmul.f32 0.70710677, %v2401_v11  ;;  %v2423_v23 = vmul.f32 0.5, %v2401_v11 }
 0x842   : > { %6244 = verf.f32 %v2428_v44  ;;  %v2429_v0 = vmul.f32 0.70710677, %v2393_v49  ;;  %v2421_v47 = vmul.f32 0.5, %v2393_v49 }
 0x843   : > { %6246 = verf.f32 %v2431_v1 }
 0x844   : > { %6248 = verf.f32 %v2429_v0 }
 0x848   : > { %v5440_v15 = vpop.f32.mrb[36].mxu1 }
 0x849   : > { %v2414_v45 = vadd.f32 %v5440_v15, %v4841_v35  ;;  %v2405_v59 = vpop.f32.mrb[37].mxu1 }
 0x84a   : > { %v2406_v10 = vadd.f32 %v4841_v35, %v2405_v59  ;;  %v5441_v6 = vpop.f32.mrb[38].mxu1 }
 0x84b   : > { %v6243_v21 = vpop.eup %6242  ;;  %v2434_v4 = vmul.f32 0.70710677, %v2414_v45  ;;  %v2417_v38 = vadd.f32 %v5441_v6, %v4841_v35  ;;  %v2408_v19 = vpop.f32.mrb[39].mxu1  ;;  %v2426_v13 = vmul.f32 0.5, %v2414_v45 }
 0x84c   : > { %v6245_v33 = vpop.eup %6244  ;;  %v2446_v40 = vadd.f32 1.0, %v6243_v21  ;;  %v2432_v16 = vmul.f32 0.70710677, %v2406_v10  ;;  %v2409_v17 = vadd.f32 %v4841_v35, %v2408_v19  ;;  %v2424_v46 = vmul.f32 0.5, %v2406_v10 }
 0x84d   : > { %v6247_v25 = vpop.eup %6246  ;;  %v2444_v24 = vadd.f32 1.0, %v6245_v33  ;;  %6250 = verf.f32 %v2434_v4  ;;  %v2435_v51 = vmul.f32 0.70710677, %v2417_v38  ;;  %v2427_v30 = vmul.f32 0.5, %v2417_v38 }
 0x84e   : > { %v6249_v27 = vpop.eup %6248  ;;  %v2447_v26 = vadd.f32 1.0, %v6247_v25  ;;  %6252 = verf.f32 %v2432_v16  ;;  %v2433_v57 = vmul.f32 0.70710677, %v2409_v17  ;;  %v2454_v34 = vmul.f32 %v2446_v40, %v2422_v53 }
 0x84f   : > { %v2445_v32 = vadd.f32 1.0, %v6249_v27  ;;  %6254 = verf.f32 %v2435_v51  ;;  %v2452_v52 = vmul.f32 %v2444_v24, %v2420_v42  ;;  %v2425_v2 = vmul.f32 0.5, %v2409_v17 }
 0x850   : > { %v2455_v7 = vmul.f32 %v2447_v26, %v2423_v23  ;;  %6256 = verf.f32 %v2433_v57 }
 0x851   : > { %v2453_v48 = vmul.f32 %v2445_v32, %v2421_v47 }
 0x852   : > { %v2461_v43 = vpack.c.bf16 %v2455_v7, %v2454_v34 }
 0x853   : > { %v2460_v61 = vpack.c.bf16 %v2453_v48, %v2452_v52 }
 0x855   : > { %5450 = vmatprep.mubr.msk.bf16.mxu0 %vm1194_vm2, %v2460_v61 }
 0x856   : > { %5451 = vmatmul.mubr.msk.bf16.vlgmr.msra.gmra.mrb[24].mxu0 %vm1194_vm2, %v2461_v43 }
 0x857   : > { %v6251_v12 = vpop.eup %6250 }
 0x858   : > { %v6253_v5 = vpop.eup %6252  ;;  %v2450_v18 = vadd.f32 1.0, %v6251_v12 }
 0x859   : > { %v6255_v22 = vpop.eup %6254  ;;  %v2448_v55 = vadd.f32 1.0, %v6253_v5 }
 0x85a   : > { %v2451_v39 = vadd.f32 1.0, %v6255_v22  ;;  %v6257_v41 = vpop.eup %6256  ;;  %v2458_v35 = vmul.f32 %v2450_v18, %v2426_v13 }
 0x85b   : > { %v2449_v31 = vadd.f32 1.0, %v6257_v41  ;;  %v2456_v36 = vmul.f32 %v2448_v55, %v2424_v46 }
 0x85c   : > { %v2459_v8 = vmul.f32 %v2451_v39, %v2427_v30 }
 0x85d   : > { %v2457_v9 = vmul.f32 %v2449_v31, %v2425_v2 }
 0x85e   : > { %v2463_v50 = vpack.c.bf16 %v2459_v8, %v2458_v35 }
 0x85f   : > { %v2462_v11 = vpack.c.bf16 %v2457_v9, %v2456_v36 }
 0x861   : > { %5454 = vmatprep.mubr.msk.bf16.mxu0 %vm1194_vm2, %v2462_v11 }
 0x862   : > { %5455 = vmatmul.mubr.msk.bf16.gmra.mrb[28].mxu0 %vm1194_vm2, %v2463_v50 }
 0x929   : > { %v5452_v44 = vpop.f32.mrb[24].mxu0 }
 0x92a   : > { %v2549_v49 = vpop.f32.mrb[25].mxu0  ;;  %v2558_v1 = vadd.f32 %v5452_v44, %v4848_v14 }
 0x92b   : > { %v2550_v0 = vadd.f32 %v4848_v14, %v2549_v49  ;;  %v5453_v15 = vpop.f32.mrb[26].mxu0 }
 0x92c   : > { %v2552_v45 = vpop.f32.mrb[27].mxu0  ;;  %v2561_v10 = vadd.f32 %v5453_v15, %v4848_v14  ;;  %v7459_v21 = vadd.f32 %v2558_v1, %v7332_v29 }
 0x92d   : > { %v7456_v59 = vadd.f32 %v2550_v0, %v7324_v58  ;;  %v2553_v6 = vadd.f32 %v4848_v14, %v2552_v45 }
 0x92e   : > { %v7467_v19 = vadd.f32 %v2561_v10, %v7334_v28  ;;  %v2598_v58 = vsel %vm486_vm0, %v7459_v21, 0.0 }
 0x92f   : > { %v7462_v4 = vadd.f32 %v2553_v6, %v7322_v62  ;;  %v2592_v38 = vsel %vm486_vm0, %v7456_v59, 0.0 }
 0x930   : > { %2593 = vadd.xlane.f32.xlu0 %v2592_v38  ;;  %v2601_v29 = vsel %vm486_vm0, %v7467_v19, 0.0 }
 0x931   : > { %v2595_v33 = vsel %vm486_vm0, %v7462_v4, 0.0 }
 0x932   : > { %2596 = vadd.xlane.f32.xlu1 %v2595_v33 }
 0x934   : > { %2599 = vadd.xlane.f32.xlu0 %v2598_v58 }
 0x935   : > { %v5456_v62 = vpop.f32.mrb[28].mxu0 }
 0x936   : > { %2602 = vadd.xlane.f32.xlu1 %v2601_v29  ;;  %v2565_v40 = vpop.f32.mrb[29].mxu0  ;;  %v2574_v16 = vadd.f32 %v5456_v62, %v4848_v14  ;;  %v6072_v29 = vld [vmem:[%s8445_s1 + $0x24] ss:$8 sps:$4 sm:$0xff]   ;;  %v6070_v62 = vld [vmem:[%s8445_s1 + $0x20] ss:$8 sps:$4 sm:$0xff]  }
 0x937   : > { %v2566_v17 = vadd.f32 %v4848_v14, %v2565_v40  ;;  %v5457_v25 = vpop.f32.mrb[30].mxu0  ;;  %2778 = vmatprep.subr.bf16.mxu1 %v6072_v29  ;;  %v6075_v40 = vld [vmem:[%s8445_s1 + $0x34] ss:$8 sps:$4 sm:$0xff]  }
 0x938   : > { %v2568_v53 = vpop.f32.mrb[31].mxu0  ;;  %v2577_v24 = vadd.f32 %v5457_v25, %v4848_v14  ;;  %v7479_v27 = vadd.f32 %v2574_v16, %v7354_v3  ;;  %2779 = vmatpush1.bf16.msra.mxu1 %v6070_v62  ;;  %v6073_v16 = vld [vmem:[%s8445_s1 + $0x30] ss:$8 sps:$4 sm:$0xff]  }
 0x939   : > { %v7476_v28 = vadd.f32 %v2566_v17, %v7349_v20  ;;  %v2569_v51 = vadd.f32 %v4848_v14, %v2568_v53  ;;  %2780 = vmatprep.subr.bf16.mxu1 %v6075_v40 }
 0x93a   : > { %8468 = vst [vmem:[#allocation3_spill] sm:$0xff] %v7479_v27  ;;  %v7487_v26 = vadd.f32 %v2577_v24, %v7345_v54  ;;  %v2610_v20 = vsel %vm486_vm0, %v7479_v27, 0.0 }
 0x93b   : > { %8467 = vst [vmem:[#allocation2_spill] sm:$0xff] %v7476_v28  ;;  %v7482_v42 = vadd.f32 %v2569_v51, %v7340_v37  ;;  %v2604_v23 = vsel %vm486_vm0, %v7476_v28, 0.0 }
 0x93c   : > { %2605 = vadd.xlane.f32.xlu0 %v2604_v23  ;;  %8470 = vst [vmem:[#allocation5_spill] sm:$0xff] %v7487_v26  ;;  %v2613_v3 = vsel %vm486_vm0, %v7487_v26, 0.0  ;;  %2781 = vmatpush1.bf16.msra.mxu1 %v6073_v16 }
 0x93d   : > { %8469 = vst [vmem:[#allocation4_spill] sm:$0xff] %v7482_v42  ;;  %v2607_v47 = vsel %vm486_vm0, %v7482_v42, 0.0 }
 0x93e   : > { %2608 = vadd.xlane.f32.xlu1 %v2607_v47 }
 0x940   : > { %2611 = vadd.xlane.f32.xlu0 %v2610_v20 }
 0x942   : > { %2614 = vadd.xlane.f32.xlu1 %v2613_v3 }
 0x9bd   : > { %v2594_v37 = vpop.xlane.xlu0 %2593 }
 0x9be   : > { %v2616_v32 = vmul.f32 0.03125, %v2594_v37 }
 0x9bf   : > { %v2597_v57 = vpop.xlane.xlu1 %2596 }
 0x9c0   : > { %v7496_v34 = vsub.f32 %v7456_v59, %v2616_v32  ;;  %v2617_v54 = vmul.f32 0.03125, %v2597_v57 }
 0x9c1   : > { %v2600_v7 = vpop.xlane.xlu0 %2599 }
 0x9c2   : > { %v7499_v52 = vsub.f32 %v7462_v4, %v2617_v54  ;;  %v2618_v48 = vmul.f32 0.03125, %v2600_v7  ;;  %v2632_v43 = vmul.f32 %v7496_v34, %v7496_v34 }
 0x9c3   : > { %v2603_v61 = vpop.xlane.xlu1 %2602 }
 0x9c4   : > { %v7504_v12 = vsub.f32 %v7459_v21, %v2618_v48  ;;  %v2619_v5 = vmul.f32 0.03125, %v2603_v61  ;;  %v2640_v18 = vsel %vm486_vm0, %v2632_v43, 0.0  ;;  %v2633_v22 = vmul.f32 %v7499_v52, %v7499_v52  ;;  %v4859_v43 = vld [vmem:[%s8449_s5 + $0x1] ss:$0 sm:$0xff] }
 0x9c5   : > { %2641 = vadd.xlane.f32.xlu0 %v2640_v18 }
 0x9c6   : > { %v7510_v13 = vsub.f32 %v7467_v19, %v2619_v5  ;;  %v2643_v55 = vsel %vm486_vm0, %v2633_v22, 0.0  ;;  %v2634_v30 = vmul.f32 %v7504_v12, %v7504_v12 }
 0x9c7   : > { %2644 = vadd.xlane.f32.xlu1 %v2643_v55 }
 0x9c8   : > { %v2646_v39 = vsel %vm486_vm0, %v2634_v30, 0.0  ;;  %v2635_v41 = vmul.f32 %v7510_v13, %v7510_v13 }
 0x9c9   : > { %2647 = vadd.xlane.f32.xlu0 %v2646_v39  ;;  %v2606_v46 = vpop.xlane.xlu0 %2605  ;;  %v4860_v39 = vld [vmem:[%s8450_s6 + $0x1] ss:$0 sm:$0xff] }
 0x9ca   : > { %v2649_v35 = vsel %vm486_vm0, %v2635_v41, 0.0  ;;  %v2620_v8 = vmul.f32 0.03125, %v2606_v46 }
 0x9cb   : > { %2650 = vadd.xlane.f32.xlu1 %v2649_v35  ;;  %v2609_v2 = vpop.xlane.xlu1 %2608 }
 0x9cc   : > { %v7520_v31 = vsub.f32 %v7476_v28, %v2620_v8  ;;  %v2621_v36 = vmul.f32 0.03125, %v2609_v2 }
 0x9cd   : > { %v2612_v50 = vpop.xlane.xlu0 %2611 }
 0x9ce   : > { %v7523_v9 = vsub.f32 %v7482_v42, %v2621_v36  ;;  %v2622_v11 = vmul.f32 0.03125, %v2612_v50  ;;  %v2636_v14 = vmul.f32 %v7520_v31, %v7520_v31 }
 0x9cf   : > { %v2615_v44 = vpop.xlane.xlu1 %2614 }
 0x9d0   : > { %v7528_v49 = vsub.f32 %v7479_v27, %v2622_v11  ;;  %v2623_v1 = vmul.f32 0.03125, %v2615_v44  ;;  %v2652_v0 = vsel %vm486_vm0, %v2636_v14, 0.0  ;;  %v2637_v15 = vmul.f32 %v7523_v9, %v7523_v9 }
 0x9d1   : > { %2653 = vadd.xlane.f32.xlu0 %v2652_v0 }
 0x9d2   : > { %v7534_v45 = vsub.f32 %v7487_v26, %v2623_v1  ;;  %v2655_v10 = vsel %vm486_vm0, %v2637_v15, 0.0  ;;  %v2638_v6 = vmul.f32 %v7528_v49, %v7528_v49 }
 0x9d3   : > { %2656 = vadd.xlane.f32.xlu1 %v2655_v10 }
 0x9d4   : > { %v2658_v38 = vsel %vm486_vm0, %v2638_v6, 0.0  ;;  %v2639_v33 = vmul.f32 %v7534_v45, %v7534_v45 }
 0x9d5   : > { %2659 = vadd.xlane.f32.xlu0 %v2658_v38 }
 0x9d6   : > { %v2661_v58 = vsel %vm486_vm0, %v2639_v33, 0.0 }
 0x9d7   : > { %2662 = vadd.xlane.f32.xlu1 %v2661_v58 }
 0xa52   : > { %v2642_v17 = vpop.xlane.xlu0 %2641 }
 0xa53   : > { %v2664_v25 = vmul.f32 0.03125, %v2642_v17 }
 0xa54   : > { %v2645_v53 = vpop.xlane.xlu1 %2644 }
 0xa55   : > { %v2672_v24 = vadd.f32 1e-05, %v2664_v25  ;;  %v2665_v51 = vmul.f32 0.03125, %v2645_v53 }
 0xa56   : > { %v2648_v23 = vpop.xlane.xlu0 %2647 }
 0xa57   : > { %6258 = vrsqrt.f32 %v2672_v24  ;;  %v2673_v47 = vadd.f32 1e-05, %v2665_v51  ;;  %v2666_v20 = vmul.f32 0.03125, %v2648_v23 }
 0xa58   : > { %v2651_v3 = vpop.xlane.xlu1 %2650 }
 0xa59   : > { %6260 = vrsqrt.f32 %v2673_v47  ;;  %v2674_v37 = vadd.f32 1e-05, %v2666_v20  ;;  %v2667_v32 = vmul.f32 0.03125, %v2651_v3 }
 0xa5b   : > { %6262 = vrsqrt.f32 %v2674_v37  ;;  %v2675_v57 = vadd.f32 1e-05, %v2667_v32 }
 0xa5d   : > { %6264 = vrsqrt.f32 %v2675_v57  ;;  %v8471_v57 = vsub.s32 1, %v6641_v63 }
 0xa5e   : > { %v2654_v54 = vpop.xlane.xlu0 %2653 }
 0xa5f   : > { %v2668_v7 = vmul.f32 0.03125, %v2654_v54  ;;  %v8472_v54 = vsub.s32 0, %v6641_v63 }
 0xa60   : > { %v2657_v61 = vpop.xlane.xlu1 %2656 }
 0xa61   : > { %v6259_v48 = vpop.eup %6258  ;;  %v2676_v18 = vadd.f32 1e-05, %v2668_v7  ;;  %v2669_v22 = vmul.f32 0.03125, %v2657_v61 }
 0xa62   : > { %v2688_v5 = vmul.f32 %v6259_v48, %v7496_v34  ;;  %v2660_v30 = vpop.xlane.xlu0 %2659 }
 0xa63   : > { %v6261_v55 = vpop.eup %6260  ;;  %6266 = vrsqrt.f32 %v2676_v18  ;;  %v2677_v35 = vadd.f32 1e-05, %v2669_v22  ;;  %v2670_v2 = vmul.f32 0.03125, %v2660_v30  ;;  %v7590_v30 = vld [vmem:[%s8448_s4] ss:$0 sm:$0xff] }
 0xa64   : > { %v2702_v41 = vmul.f32 %v4859_v43, %v2688_v5  ;;  %v2689_v46 = vmul.f32 %v6261_v55, %v7499_v52  ;;  %v2663_v36 = vpop.xlane.xlu1 %2662 }
 0xa65   : > { %v6263_v8 = vpop.eup %6262  ;;  %6268 = vrsqrt.f32 %v2677_v35  ;;  %v2671_v11 = vmul.f32 0.03125, %v2663_v36  ;;  %v2678_v44 = vadd.f32 1e-05, %v2670_v2 }
 0xa66   : > { %v2703_v50 = vmul.f32 %v4859_v43, %v2689_v46  ;;  %v2716_v14 = vadd.f32 %v4860_v39, %v2702_v41  ;;  %v2690_v15 = vmul.f32 %v6263_v8, %v7504_v12 }
 0xa67   : > { %v6265_v34 = vpop.eup %6264  ;;  %v2679_v0 = vadd.f32 1e-05, %v2671_v11 }
 0xa68   : > { %v2717_v1 = vadd.f32 %v4860_v39, %v2703_v50  ;;  %v2691_v10 = vmul.f32 %v6265_v34, %v7510_v13  ;;  %v2704_v38 = vmul.f32 %v4859_v43, %v2690_v15 }
 0xa69   : > { %6270 = vrsqrt.f32 %v2679_v0 }
 0xa6a   : > { %v2724_v6 = vpack.c.bf16 %v2717_v1, %v2716_v14  ;;  %v2705_v52 = vmul.f32 %v4859_v43, %v2691_v10  ;;  %6272 = vrsqrt.f32 %v2678_v44  ;;  %v2718_v62 = vadd.f32 %v4860_v39, %v2704_v38 }
 0xa6c   : > { %4870 = vmatmul.mubr.msk.bf16.vlgmr.msra.gmra.mrb[40].mxu1 %vm486_vm0, %v2724_v6  ;;  %v2719_v58 = vadd.f32 %v4860_v39, %v2705_v52 }
 0xa6d   : > { %2820 = vmatprep.mubr.bf16.mxu1 %v6454_v60  ;;  %v6267_v33 = vpop.eup %6266 }
 0xa6e   : > { %v2692_v40 = vmul.f32 %v6267_v33, %v7520_v31  ;;  %v2725_v12 = vpack.c.bf16 %v2719_v58, %v2718_v62 }
 0xa6f   : > { %v6269_v29 = vpop.eup %6268 }
 0xa70   : > { %v2693_v16 = vmul.f32 %v6269_v29, %v7523_v9  ;;  %v2706_v25 = vmul.f32 %v4859_v43, %v2692_v40 }
 0xa72   : > { %v2707_v17 = vmul.f32 %v4859_v43, %v2693_v16  ;;  %v2720_v47 = vadd.f32 %v4860_v39, %v2706_v25 }
 0xa73   : > { %v6271_v13 = vpop.eup %6270 }
 0xa74   : > { %4871 = vmatmul.mubr.msk.bf16.gmra.mrb[44].mxu1 %vm486_vm0, %v2725_v12  ;;  %v6273_v53 = vpop.eup %6272  ;;  %v2695_v24 = vmul.f32 %v6271_v13, %v7534_v45  ;;  %v2721_v51 = vadd.f32 %v4860_v39, %v2707_v17  ;;  %v4865_v45 = vld [vmem:[%s8446_s2 + $0x2] sm:$0x3] }
 0xa75   : > { %2830 = vmatprep.mubr.bf16.mxu1 %v6454_v60  ;;  %v2694_v23 = vmul.f32 %v6273_v53, %v7528_v49  ;;  %v2743_v49 = vrot.slane %v4865_v45, %v8471_v57  ;;  %v2739_v7 = vrot.slane %v4865_v45, %v8472_v54 }
 0xa76   : > { %v2726_v20 = vpack.c.bf16 %v2721_v51, %v2720_v47  ;;  %v2709_v3 = vmul.f32 %v4859_v43, %v2695_v24 }
 0xa77   : > { %v2708_v31 = vmul.f32 %v4859_v43, %v2694_v23 }
 0xa78   : > { %v2723_v9 = vadd.f32 %v4860_v39, %v2709_v3 }
 0xa79   : > { %v2722_v37 = vadd.f32 %v4860_v39, %v2708_v31 }
 0xa7b   : > { %v2727_v32 = vpack.c.bf16 %v2723_v9, %v2722_v37 }
 0xa7c   : > { %4872 = vmatmul.mubr.msk.bf16.gmra.mrb[48].mxu1 %vm486_vm0, %v2726_v20 }
 0xa7d   : > { %2840 = vmatprep.mubr.bf16.mxu1 %v6454_v60 }
 0xa84   : > { %4873 = vmatmul.mubr.msk.bf16.gmra.mrb[52].mxu1 %vm486_vm0, %v2727_v32 }
 0xb3f   : > { %v2812_v48 = vpop.f32.mrb[40].mxu1 }
 0xb40   : > { %v2814_v61 = vpop.f32.mrb[41].mxu1  ;;  %v2813_v5 = vadd.f32 %v2812_v48, %v2739_v7 }
 0xb41   : > { %v7583_v43 = vadd.f32 %v2814_v61, %v2743_v49  ;;  %v2816_v60 = vpop.f32.mrb[42].mxu1 }
 0xb42   : > { %v2817_v18 = vadd.f32 %v2816_v60, %v2739_v7  ;;  %v2818_v22 = vpop.f32.mrb[43].mxu1 }
 0xb43   : > { %v7585_v55 = vadd.f32 %v2818_v22, %v2743_v49  ;;  %v2884_v39 = vmul.f32 %v7590_v30, %v7583_v43 }
 0xb44   : > { %v7594_v63 = vpack.i.bf16 %v2817_v18, %v2813_v5  ;;  %v7596_v41 = vpack.c.bf16 %v2817_v18, %v2813_v5 }
 0xb45   : > { %5474 = vmatprep.mubr.msk.f32.mxu0 %vm486_vm0, %v2884_v39  ;;  %v5978_v46 = vpack.i.bf16 %v7585_v55, %v7583_v43 }
 0xb47   : > { %5979 = vrot.lane.b32.xlu0 %v5978_v46, %s6455_s23  ;;  %v2822_v35 = vpop.f32.mrb[44].mxu1 }
 0xb48   : > { %v2824_v8 = vpop.f32.mrb[45].mxu1  ;;  %v2823_v36 = vadd.f32 %v2822_v35, %v2739_v7 }
 0xb49   : > { %v2826_v2 = vpop.f32.mrb[46].mxu1  ;;  %v7602_v34 = vadd.f32 %v2824_v8, %v2743_v49 }
 0xb4a   : > { %v2827_v50 = vadd.f32 %v2826_v2, %v2739_v7  ;;  %v2828_v11 = vpop.f32.mrb[47].mxu1 }
 0xb4b   : > { %v7604_v14 = vadd.f32 %v2828_v11, %v2743_v49  ;;  %5999 = vrot.lane.b32.xlu0 %v7594_v63, %s6455_s23 }
 0xb4c   : > { %v7608_v44 = vpack.i.bf16 %v2827_v50, %v2823_v36  ;;  %v7612_v0 = vpack.c.bf16 %v2827_v50, %v2823_v36 }
 0xb4d   : > { %v5983_v1 = vpack.i.bf16 %v7604_v14, %v7602_v34  ;;  %v2887_v56 = vmul.f32 %v7590_v30, %v7604_v14 }
 0xb4f   : > { %5984 = vrot.lane.b32.xlu1 %v5983_v1, %s6455_s23  ;;  %v2832_v15 = vpop.f32.mrb[48].mxu1 }
 0xb50   : > { %v2834_v10 = vpop.f32.mrb[49].mxu1  ;;  %v2833_v52 = vadd.f32 %v2832_v15, %v2739_v7 }
 0xb51   : > { %v2836_v6 = vpop.f32.mrb[50].mxu1  ;;  %v7615_v58 = vadd.f32 %v2834_v10, %v2743_v49 }
 0xb52   : > { %v2837_v38 = vadd.f32 %v2836_v6, %v2739_v7  ;;  %v2838_v33 = vpop.f32.mrb[51].mxu1 }
 0xb53   : > { %v7617_v29 = vadd.f32 %v2838_v33, %v2743_v49 }
 0xb54   : > { %v7619_v62 = vpack.i.bf16 %v2837_v38, %v2833_v52  ;;  %v7625_v16 = vpack.c.bf16 %v2837_v38, %v2833_v52 }
 0xb55   : > { %v5988_v40 = vpack.i.bf16 %v7617_v29, %v7615_v58 }
 0xb56   : > { %6009 = vrot.lane.b32.xlu0 %v7619_v62, %s6455_s23 }
 0xb57   : > { %5989 = vrot.lane.b32.xlu1 %v5988_v40, %s6455_s23  ;;  %v2842_v12 = vpop.f32.mrb[52].mxu1 }
 0xb58   : > { %v2844_v17 = vpop.f32.mrb[53].mxu1  ;;  %v2843_v25 = vadd.f32 %v2842_v12, %v2739_v7  ;;  %v2885_v12 = vmul.f32 %v7590_v30, %v7585_v55 }
 0xb59   : > { %v2846_v13 = vpop.f32.mrb[54].mxu1  ;;  %v7630_v51 = vadd.f32 %v2844_v17, %v2743_v49  ;;  %v2886_v17 = vmul.f32 %v7590_v30, %v7602_v34 }
 0xb5a   : > { %v2847_v53 = vadd.f32 %v2846_v13, %v2739_v7  ;;  %6019 = vrot.lane.b32.xlu0 %v7594_v63, %s6456_s24  ;;  %v2848_v24 = vpop.f32.mrb[55].mxu1 }
 0xb5b   : > { %v7632_v23 = vadd.f32 %v2848_v24, %v2743_v49  ;;  %v2890_v24 = vmul.f32 %v7590_v30, %v7630_v51 }
 0xb5c   : > { %v7634_v47 = vpack.i.bf16 %v2847_v53, %v2843_v25  ;;  %v7640_v3 = vpack.c.bf16 %v2847_v53, %v2843_v25  ;;  %v2888_v25 = vmul.f32 %v7590_v30, %v7615_v58  ;;  %v2889_v53 = vmul.f32 %v7590_v30, %v7617_v29 }
 0xb5d   : > { %v5993_v20 = vpack.i.bf16 %v7632_v23, %v7630_v51 }
 0xb5e   : > { %6029 = vrot.lane.b32.xlu0 %v7619_v62, %s6456_s24 }
 0xb5f   : > { %5994 = vrot.lane.b32.xlu1 %v5993_v20, %s6455_s23  ;;  %v2891_v20 = vmul.f32 %v7590_v30, %v7632_v23 }
 0xb63   : > { %6004 = vrot.lane.b32.xlu1 %v7608_v44, %s6455_s23 }
 0xb67   : > { %6014 = vrot.lane.b32.xlu1 %v7634_v47, %s6455_s23 }
 0xb6b   : > { %6024 = vrot.lane.b32.xlu1 %v7608_v44, %s6456_s24 }
 0xbb9   : > { %v5980_v31 = vpop.permute.xlu0 %5979 }
 0xbba   : > { %v5982_v9 = vunpack.i.h.bf16 %v5980_v31  ;;  %v5981_v37 = vunpack.i.l.bf16 %v5980_v31  ;;  %v6443_v31 = vld [vmem:[%s8448_s4 + $0x1] ss:$0 sm:$0xff] }
 0xbbb   : > { %v2895_v30 = vmul.f32 %v6443_v31, %v7604_v14 }
 0xbbc   : > { %v5750_v32 = vpack.c.bf16 %v5982_v9, %v5981_v37  ;;  %v2892_v9 = vmul.f32 %v6443_v31, %v7583_v43  ;;  %v2893_v37 = vmul.f32 %v6443_v31, %v7585_v55 }
 0xbbd   : > { %v6000_v45 = vpop.permute.xlu0 %5999 }
 0xbbe   : > { %v6002_v57 = vunpack.i.h.bf16 %v6000_v45  ;;  %v6001_v49 = vunpack.i.l.bf16 %v6000_v45  ;;  %5752 = vmatprep.subr.msk.bf16.mxu0 %vm6720_vm1, %v5750_v32  ;;  %v2896_v45 = vmul.f32 %v6443_v31, %v7615_v58 }
 0xbbf   : > { %5755 = vmatpush3.bf16.xpose.msk.msra.mxu0 %vm6720_vm1, %v5750_v32  ;;  %v2894_v32 = vmul.f32 %v6443_v31, %v7602_v34 }
 0xbc0   : > { %v5774_v54 = vpack.c.bf16 %v6002_v57, %v6001_v49  ;;  %v2897_v57 = vmul.f32 %v6443_v31, %v7617_v29  ;;  %v2898_v49 = vmul.f32 %v6443_v31, %v7630_v51 }
 0xbc1   : > { %v5985_v7 = vpop.permute.xlu1 %5984 }
 0xbc2   : > { %v5987_v48 = vunpack.i.h.bf16 %v5985_v7  ;;  %v5986_v61 = vunpack.i.l.bf16 %v5985_v7  ;;  %5775 = vmatprep.subr.bf16.mxu1 %v5774_v54  ;;  %v6444_v7 = vld [vmem:[%s8448_s4 + $0x2] ss:$0 sm:$0xff] }
 0xbc3   : > { %5777 = vmatpush3.bf16.msra.mxu1 %v5774_v54  ;;  %v2899_v54 = vmul.f32 %v6443_v31, %v7632_v23 }
 0xbc4   : > { %v5756_v60 = vpack.c.bf16 %v5987_v48, %v5986_v61  ;;  %v2900_v48 = vmul.f32 %v6444_v7, %v7583_v43  ;;  %v2901_v61 = vmul.f32 %v6444_v7, %v7585_v55 }
 0xbc6   : > { %5758 = vmatprep.subr.msk.bf16.mxu0 %vm6720_vm1, %v5756_v60 }
 0xbc7   : > { %5761 = vmatpush3.bf16.xpose.msk.msra.mxu0 %vm6720_vm1, %v5756_v60  ;;  %v2902_v60 = vmul.f32 %v6444_v7, %v7602_v34 }
 0xbc8   : > { %v6010_v2 = vpop.permute.xlu0 %6009 }
 0xbc9   : > { %v5990_v5 = vpop.permute.xlu1 %5989  ;;  %v6012_v11 = vunpack.i.h.bf16 %v6010_v2  ;;  %v6011_v1 = vunpack.i.l.bf16 %v6010_v2 }
 0xbca   : > { %v5992_v18 = vunpack.i.h.bf16 %v5990_v5  ;;  %v5991_v22 = vunpack.i.l.bf16 %v5990_v5  ;;  %v2903_v5 = vmul.f32 %v6444_v7, %v7604_v14 }
 0xbcb   : > { %v5782_v38 = vpack.c.bf16 %v6012_v11, %v6011_v1 }
 0xbcc   : > { %v5762_v39 = vpack.c.bf16 %v5992_v18, %v5991_v22  ;;  %v2904_v18 = vmul.f32 %v6444_v7, %v7615_v58  ;;  %v2905_v22 = vmul.f32 %v6444_v7, %v7617_v29 }
 0xbce   : > { %5764 = vmatprep.subr.msk.bf16.mxu0 %vm6720_vm1, %v5762_v39 }
 0xbcf   : > { %5767 = vmatpush3.bf16.xpose.msk.msra.mxu0 %vm6720_vm1, %v5762_v39  ;;  %v2906_v39 = vmul.f32 %v6444_v7, %v7630_v51 }
 0xbd1   : > { %v5995_v46 = vpop.permute.xlu1 %5994 }
 0xbd2   : > { %v5997_v35 = vunpack.i.h.bf16 %v5995_v46  ;;  %v5996_v8 = vunpack.i.l.bf16 %v5995_v46  ;;  %v2907_v46 = vmul.f32 %v6444_v7, %v7632_v23  ;;  %v4883_v7 = vld [vmem:[%s8447_s3 + $0x148] sm:$0xff] }
 0xbd4   : > { %v5768_v36 = vpack.c.bf16 %v5997_v35, %v5996_v8  ;;  %v6445_v35 = vld [vmem:[%s8448_s4 + $0x3] ss:$0 sm:$0xff] }
 0xbd5   : > { %v6005_v50 = vpop.permute.xlu1 %6004  ;;  %v2908_v8 = vmul.f32 %v6445_v35, %v7583_v43  ;;  %v2909_v2 = vmul.f32 %v6445_v35, %v7585_v55  ;;  %v2912_v11 = vmul.f32 %v6445_v35, %v7615_v58  ;;  %v2913_v43 = vmul.f32 %v6445_v35, %v7617_v29 }
 0xbd6   : > { %v6007_v15 = vunpack.i.h.bf16 %v6005_v50  ;;  %v6006_v10 = vunpack.i.l.bf16 %v6005_v50  ;;  %5770 = vmatprep.subr.msk.bf16.mxu0 %vm6720_vm1, %v5768_v36  ;;  %v2911_v50 = vmul.f32 %v6445_v35, %v7604_v14  ;;  %v2914_v1 = vmul.f32 %v6445_v35, %v7630_v51  ;;  %v4874_v14 = vld [vmem:[%s8447_s3 + $0x100] sm:$0xff] }
 0xbd7   : > { %5773 = vmatpush3.bf16.xpose.msk.msra.mxu0 %vm6720_vm1, %v5768_v36  ;;  %v2910_v36 = vmul.f32 %v6445_v35, %v7602_v34  ;;  %v2915_v55 = vmul.f32 %v6445_v35, %v7632_v23  ;;  %v4875_v34 = vld [vmem:[%s8447_s3 + $0x108] sm:$0xff]  ;;  %v4877_v23 = vld [vmem:[%s8447_s3 + $0x118] sm:$0xff] }
 0xbd8   : > { %v5778_v6 = vpack.c.bf16 %v6007_v15, %v6006_v10 }
 0xbd9   : > { %v6015_v52 = vpop.permute.xlu1 %6014 }
 0xbda   : > { %v6017_v33 = vunpack.i.h.bf16 %v6015_v52  ;;  %v6016_v40 = vunpack.i.l.bf16 %v6015_v52  ;;  %5779 = vmatprep.subr.bf16.mxu1 %v5778_v6 }
 0xbdb   : > { %5781 = vmatpush3.bf16.msra.mxu1 %v5778_v6  ;;  %v4876_v6 = vld [vmem:[%s8447_s3 + $0x110] sm:$0xff] }
 0xbdc   : > { %5783 = vmatprep.subr.bf16.mxu1 %v5782_v38  ;;  %v5786_v13 = vpack.c.bf16 %v6017_v33, %v6016_v40 }
 0xbde   : > { %5475 = vmatmul.mubr.msk.f32.vlgmr.msra.gmra.mrb[32].mxu0 %vm486_vm0, %v2885_v12 }
 0xbdf   : > { %5477 = vmatprep.mubr.msk.f32.mxu0 %vm486_vm0, %v2886_v17  ;;  %5785 = vmatpush3.bf16.msra.mxu1 %v5782_v38  ;;  %v4879_v17 = vld [vmem:[%s8447_s3 + $0x128] sm:$0xff] }
 0xbe0   : > { %5787 = vmatprep.subr.bf16.mxu1 %v5786_v13 }
 0xbe2   : > { %5478 = vmatmul.mubr.msk.f32.gmra.mrb[34].mxu0 %vm486_vm0, %v2887_v56  ;;  %v4878_v56 = vld [vmem:[%s8447_s3 + $0x120] sm:$0xff] }
 0xbe3   : > { %5480 = vmatprep.mubr.msk.f32.mxu0 %vm486_vm0, %v2888_v25  ;;  %5789 = vmatpush3.bf16.msra.mxu1 %v5786_v13 }
 0xbe4   : > { %5791 = vmatprep.subr.bf16.mxu1 %v7596_v41 }
 0xbe6   : > { %5481 = vmatmul.mubr.msk.f32.gmra.mrb[36].mxu0 %vm486_vm0, %v2889_v53 }
 0xbe7   : > { %5483 = vmatprep.mubr.msk.f32.mxu0 %vm486_vm0, %v2890_v24 }
 0xbea   : > { %5484 = vmatmul.mubr.msk.f32.gmra.mrb[38].mxu0 %vm486_vm0, %v2891_v20 }
 0xbeb   : > { %5486 = vmatprep.mubr.msk.f32.mxu0 %vm486_vm0, %v2892_v9  ;;  %v4881_v9 = vld [vmem:[%s8447_s3 + $0x138] sm:$0xff] }
 0xbee   : > { %5487 = vmatmul.mubr.msk.f32.gmra.mrb[40].mxu0 %vm486_vm0, %v2893_v37 }
 0xbef   : > { %5489 = vmatprep.mubr.msk.f32.mxu0 %vm486_vm0, %v2894_v32  ;;  %v4880_v32 = vld [vmem:[%s8447_s3 + $0x130] sm:$0xff] }
 0xbf2   : > { %5490 = vmatmul.mubr.msk.f32.gmra.mrb[42].mxu0 %vm486_vm0, %v2895_v30 }
 0xbf3   : > { %5492 = vmatprep.mubr.msk.f32.mxu0 %vm486_vm0, %v2896_v45 }
 0xbf6   : > { %5493 = vmatmul.mubr.msk.f32.gmra.mrb[44].mxu0 %vm486_vm0, %v2897_v57 }
 0xbf7   : > { %5495 = vmatprep.mubr.msk.f32.mxu0 %vm486_vm0, %v2898_v49 }
 0xbfa   : > { %5496 = vmatmul.mubr.msk.f32.gmra.mrb[46].mxu0 %vm486_vm0, %v2899_v54 }
 0xbfb   : > { %5498 = vmatprep.mubr.msk.f32.mxu0 %vm486_vm0, %v2900_v48 }
 0xbfe   : > { %5499 = vmatmul.mubr.msk.f32.gmra.mrb[48].mxu0 %vm486_vm0, %v2901_v61 }
 0xbff   : > { %5501 = vmatprep.mubr.msk.f32.mxu0 %vm486_vm0, %v2902_v60 }
 0xc02   : > { %5502 = vmatmul.mubr.msk.f32.gmra.mrb[50].mxu0 %vm486_vm0, %v2903_v5 }
 0xc03   : > { %5504 = vmatprep.mubr.msk.f32.mxu0 %vm486_vm0, %v2904_v18 }
 0xc06   : > { %5505 = vmatmul.mubr.msk.f32.gmra.mrb[52].mxu0 %vm486_vm0, %v2905_v22 }
 0xc07   : > { %5507 = vmatprep.mubr.msk.f32.mxu0 %vm486_vm0, %v2906_v39 }
 0xc0a   : > { %5508 = vmatmul.mubr.msk.f32.gmra.mrb[54].mxu0 %vm486_vm0, %v2907_v46 }
 0xc0b   : > { %5510 = vmatprep.mubr.msk.f32.mxu0 %vm486_vm0, %v2908_v8 }
 0xc0e   : > { %5511 = vmatmul.mubr.msk.f32.gmra.mrb[56].mxu0 %vm486_vm0, %v2909_v2 }
 0xc0f   : > { %5513 = vmatprep.mubr.msk.f32.mxu0 %vm486_vm0, %v2910_v36 }
 0xc12   : > { %5514 = vmatmul.mubr.msk.f32.gmra.mrb[58].mxu0 %vm486_vm0, %v2911_v50 }
 0xc13   : > { %5516 = vmatprep.mubr.msk.f32.mxu0 %vm486_vm0, %v2912_v11 }
 0xc16   : > { %5517 = vmatmul.mubr.msk.f32.gmra.mrb[60].mxu0 %vm486_vm0, %v2913_v43 }
 0xc17   : > { %5519 = vmatprep.mubr.msk.f32.mxu0 %vm486_vm0, %v2914_v1 }
 0xc1a   : > { %5520 = vmatmul.mubr.msk.f32.gmra.mrb[62].mxu0 %vm486_vm0, %v2915_v55 }
 0xcb1   : > { %v5476_v58 = vpop.f32.mrb[32].mxu0 }
 0xcb2   : > { %v7750_v29 = vadd.f32 %v5476_v58, %v4875_v34  ;;  %v3118_v51 = vpop.f32.mrb[33].mxu0 }
 0xcb3   : > { %v7752_v15 = vadd.f32 %v4874_v14, %v3118_v51 }
 0xcb4   : > { %v3280_v10 = vsel %vm1194_vm2, %v7750_v29, -inf }
 0xcb5   : > { %3281 = vmax.xlane.f32.xlu1 %v3280_v10  ;;  %v5479_v52 = vpop.f32.mrb[34].mxu0  ;;  %v3277_v38 = vsel %vm1194_vm2, %v7752_v15, -inf }
 0xcb6   : > { %v7764_v33 = vadd.f32 %v5479_v52, %v4877_v23  ;;  %v3128_v40 = vpop.f32.mrb[35].mxu0  ;;  %3278 = vmax.xlane.f32.xlu0 %v3277_v38 }
 0xcb7   : > { %v7766_v12 = vadd.f32 %v4876_v6, %v3128_v40 }
 0xcb8   : > { %v3286_v13 = vsel %vm1194_vm2, %v7764_v33, -inf }
 0xcb9   : > { %3287 = vmax.xlane.f32.xlu1 %v3286_v13  ;;  %v5482_v25 = vpop.f32.mrb[36].mxu0  ;;  %v3283_v53 = vsel %vm1194_vm2, %v7766_v12, -inf }
 0xcba   : > { %v7778_v24 = vadd.f32 %v5482_v25, %v4879_v17  ;;  %v3138_v20 = vpop.f32.mrb[37].mxu0  ;;  %3284 = vmax.xlane.f32.xlu0 %v3283_v53  ;;  %v4882_v17 = vld [vmem:[%s8447_s3 + $0x140] sm:$0xff]  ;;  %v4885_v25 = vld [vmem:[%s8447_s3 + $0x158] sm:$0xff] }
 0xcbb   : > { %v7780_v31 = vadd.f32 %v4878_v56, %v3138_v20  ;;  %v4887_v56 = vld [vmem:[%s8447_s3 + $0x168] sm:$0xff] }
 0xcbc   : > { %v3292_v37 = vsel %vm1194_vm2, %v7778_v24, -inf }
 0xcbd   : > { %3293 = vmax.xlane.f32.xlu1 %v3292_v37  ;;  %v5485_v30 = vpop.f32.mrb[38].mxu0  ;;  %v3289_v45 = vsel %vm1194_vm2, %v7780_v31, -inf }
 0xcbe   : > { %v7792_v57 = vadd.f32 %v5485_v30, %v4881_v9  ;;  %v3148_v49 = vpop.f32.mrb[39].mxu0  ;;  %3290 = vmax.xlane.f32.xlu0 %v3289_v45  ;;  %v4889_v9 = vld [vmem:[%s8447_s3 + $0x178] sm:$0xff] }
 0xcbf   : > { %v7794_v54 = vadd.f32 %v4880_v32, %v3148_v49  ;;  %v4884_v32 = vld [vmem:[%s8447_s3 + $0x150] sm:$0xff] }
 0xcc0   : > { %v3298_v48 = vsel %vm1194_vm2, %v7792_v57, -inf }
 0xcc1   : > { %3299 = vmax.xlane.f32.xlu1 %v3298_v48  ;;  %v5488_v61 = vpop.f32.mrb[40].mxu0  ;;  %v3295_v60 = vsel %vm1194_vm2, %v7794_v54, -inf }
 0xcc2   : > { %v7803_v5 = vadd.f32 %v5488_v61, %v4883_v7  ;;  %v3158_v18 = vpop.f32.mrb[41].mxu0  ;;  %3296 = vmax.xlane.f32.xlu0 %v3295_v60  ;;  %v4891_v7 = vld [vmem:[%s8447_s3 + $0x188] sm:$0xff]  ;;  %v4886_v61 = vld [vmem:[%s8447_s3 + $0x160] sm:$0xff] }
 0xcc3   : > { %v7832_v13 = vadd.f32 %v4882_v17, %v3158_v18  ;;  %v4895_v17 = vld [vmem:[%s8447_s3 + $0x1a8] sm:$0xff] }
 0xcc4   : > { %v3304_v22 = vsel %vm1194_vm2, %v7803_v5, -inf }
 0xcc5   : > { %3305 = vmax.xlane.f32.xlu1 %v3304_v22  ;;  %v5491_v39 = vpop.f32.mrb[42].mxu0  ;;  %v3301_v37 = vsel %vm1194_vm2, %v7832_v13, -inf }
 0xcc6   : > { %v3168_v46 = vpop.f32.mrb[43].mxu0  ;;  %v7842_v20 = vadd.f32 %v5491_v39, %v4885_v25  ;;  %v4893_v39 = vld [vmem:[%s8447_s3 + $0x198] sm:$0xff]  ;;  %v4890_v25 = vld [vmem:[%s8447_s3 + $0x180] sm:$0xff] }
 0xcc7   : > { %v7856_v49 = vadd.f32 %v4884_v32, %v3168_v46 }
 0xcc8   : > { %v3310_v48 = vsel %vm1194_vm2, %v7842_v20, -inf }
 0xcc9   : > { %v5494_v35 = vpop.f32.mrb[44].mxu0  ;;  %v3307_v46 = vsel %vm1194_vm2, %v7856_v49, -inf }
 0xcca   : > { %v3178_v8 = vpop.f32.mrb[45].mxu0  ;;  %v7840_v53 = vadd.f32 %v5494_v35, %v4887_v56  ;;  %v4888_v35 = vld [vmem:[%s8447_s3 + $0x170] sm:$0xff] }
 0xccb   : > { %v7870_v22 = vadd.f32 %v4886_v61, %v3178_v8 }
 0xccc   : > { %v3316_v45 = vsel %vm1194_vm2, %v7840_v53, -inf }
 0xccd   : > { %v5497_v2 = vpop.f32.mrb[46].mxu0  ;;  %v3313_v56 = vsel %vm1194_vm2, %v7870_v22, -inf }
 0xcce   : > { %v3188_v36 = vpop.f32.mrb[47].mxu0  ;;  %v7852_v30 = vadd.f32 %v5497_v2, %v4889_v9 }
 0xccf   : > { %v7884_v8 = vadd.f32 %v4888_v35, %v3188_v36 }
 0xcd0   : > { %v3322_v18 = vsel %vm1194_vm2, %v7852_v30, -inf }
 0xcd1   : > { %v5500_v50 = vpop.f32.mrb[48].mxu0  ;;  %v3319_v32 = vsel %vm1194_vm2, %v7884_v8, -inf }
 0xcd2   : > { %v3198_v11 = vpop.f32.mrb[49].mxu0  ;;  %v7866_v60 = vadd.f32 %v5500_v50, %v4891_v7 }
 0xcd3   : > { %v7898_v36 = vadd.f32 %v4890_v25, %v3198_v11 }
 0xcd4   : > { %v3328_v50 = vsel %vm1194_vm2, %v7866_v60, -inf }
 0xcd5   : > { %v5503_v43 = vpop.f32.mrb[50].mxu0  ;;  %v3325_v61 = vsel %vm1194_vm2, %v7898_v36, -inf }
 0xcd6   : > { %6034 = vrot.lane.b32.xlu1 %v7634_v47, %s6456_s24  ;;  %v3208_v1 = vpop.f32.mrb[51].mxu0  ;;  %v7880_v2 = vadd.f32 %v5503_v43, %v4893_v39 }
 0xcd8   : > { %6039 = vrot.lane.b32.xlu0 %v7594_v63, %s6457_s19  ;;  %v3334_v9 = vsel %vm1194_vm2, %v7880_v2, -inf }
 0xcd9   : > { %v5506_v55 = vpop.f32.mrb[52].mxu0 }
 0xcda   : > { %v7811_v34 = vpop.f32.mrb[53].mxu0  ;;  %v7894_v43 = vadd.f32 %v5506_v55, %v4895_v17 }
 0xcdc   : > { %v3340_v7 = vsel %vm1194_vm2, %v7894_v43, -inf }
 0xcdd   : > { %v5509_v14 = vpop.f32.mrb[54].mxu0 }
 0xcde   : > { %v7813_v58 = vpop.f32.mrb[55].mxu0 }
 0xce1   : > { %v5512_v51 = vpop.f32.mrb[56].mxu0 }
 0xce2   : > { %v7815_v23 = vpop.f32.mrb[57].mxu0 }
 0xce5   : > { %v7817_v10 = vpop.f32.mrb[58].mxu0 }
 0xce6   : > { %v7819_v6 = vpop.f32.mrb[59].mxu0 }
 0xce9   : > { %v7821_v52 = vpop.f32.mrb[60].mxu0 }
 0xcea   : > { %v7823_v38 = vpop.f32.mrb[61].mxu0 }
 0xced   : > { %v7825_v40 = vpop.f32.mrb[62].mxu0 }
 0xcee   : > { %v7827_v63 = vpop.f32.mrb[63].mxu0 }
 0xcf7   : > { %3302 = vmax.xlane.f32.xlu0 %v3301_v37  ;;  %v4897_v37 = vld [vmem:[%s8447_s3 + $0x1b8] sm:$0xff] }
 0xcf8   : > { %v7908_v55 = vadd.f32 %v5509_v14, %v4897_v37 }
 0xcfa   : > { %3317 = vmax.xlane.f32.xlu1 %v3316_v45  ;;  %v4892_v45 = vld [vmem:[%s8447_s3 + $0x190] sm:$0xff]  ;;  %v3346_v39 = vsel %vm1194_vm2, %v7908_v55, -inf }
 0xcfb   : > { %3311 = vmax.xlane.f32.xlu0 %v3310_v48  ;;  %v7912_v11 = vadd.f32 %v4892_v45, %v3208_v1  ;;  %v4899_v48 = vld [vmem:[%s8447_s3 + $0x1c8] sm:$0xff] }
 0xcfc   : > { %v7922_v14 = vadd.f32 %v5512_v51, %v4899_v48 }
 0xcfd   : > { %v3331_v35 = vsel %vm1194_vm2, %v7912_v11, -inf }
 0xcfe   : > { %3323 = vmax.xlane.f32.xlu1 %v3322_v18  ;;  %v4894_v18 = vld [vmem:[%s8447_s3 + $0x1a0] sm:$0xff] }
 0xcff   : > { %3308 = vmax.xlane.f32.xlu0 %v3307_v46  ;;  %v7927_v1 = vadd.f32 %v4894_v18, %v7811_v34  ;;  %v4901_v46 = vld [vmem:[%s8447_s3 + $0x1d8] sm:$0xff]  ;;  %v3352_v34 = vsel %vm1194_vm2, %v7922_v14, -inf  ;;  %v4902_v18 = vld [vmem:[%s8447_s3 + $0x1e0] sm:$0xff] }
 0xd00   : > { %v7938_v51 = vadd.f32 %v7817_v10, %v4901_v46  ;;  %v4904_v46 = vld [vmem:[%s8447_s3 + $0x1f0] sm:$0xff] }
 0xd01   : > { %v3337_v25 = vsel %vm1194_vm2, %v7927_v1, -inf }
 0xd02   : > { %3329 = vmax.xlane.f32.xlu1 %v3328_v50  ;;  %v4896_v50 = vld [vmem:[%s8447_s3 + $0x1b0] sm:$0xff] }
 0xd03   : > { %3314 = vmax.xlane.f32.xlu0 %v3313_v56  ;;  %v7943_v17 = vadd.f32 %v4896_v50, %v7813_v58  ;;  %v4903_v56 = vld [vmem:[%s8447_s3 + $0x1e8] sm:$0xff]  ;;  %v3358_v58 = vsel %vm1194_vm2, %v7938_v51, -inf }
 0xd04   : > { %v7954_v10 = vadd.f32 %v7821_v52, %v4903_v56  ;;  %v8001_v56 = vpop.permute.xlu1 %6024 }
 0xd05   : > { %v3343_v45 = vsel %vm1194_vm2, %v7943_v17, -inf }
 0xd06   : > { %3335 = vmax.xlane.f32.xlu1 %v3334_v9  ;;  %v4898_v9 = vld [vmem:[%s8447_s3 + $0x1c0] sm:$0xff] }
 0xd07   : > { %3320 = vmax.xlane.f32.xlu0 %v3319_v32  ;;  %v7959_v37 = vadd.f32 %v4898_v9, %v7815_v23  ;;  %v4905_v32 = vld [vmem:[%s8447_s3 + $0x1f8] sm:$0xff]  ;;  %v3364_v23 = vsel %vm1194_vm2, %v7954_v10, -inf }
 0xd08   : > { %v7970_v52 = vadd.f32 %v7825_v40, %v4905_v32  ;;  %v7985_v40 = vadd.f32 %v4902_v18, %v7823_v38 }
 0xd0a   : > { %3341 = vmax.xlane.f32.xlu1 %v3340_v7  ;;  %v4900_v7 = vld [vmem:[%s8447_s3 + $0x1d0] sm:$0xff]  ;;  %v3361_v50 = vsel %vm1194_vm2, %v7985_v40, -inf }
 0xd0b   : > { %3326 = vmax.xlane.f32.xlu0 %v3325_v61  ;;  %v7975_v48 = vadd.f32 %v4900_v7, %v7819_v6  ;;  %v3349_v61 = vsel %vm1194_vm2, %v7959_v37, -inf }
 0xd0d   : > { %v3355_v6 = vsel %vm1194_vm2, %v7975_v48, -inf }
 0xd0e   : > { %3347 = vmax.xlane.f32.xlu1 %v3346_v39  ;;  %v3370_v39 = vsel %vm1194_vm2, %v7970_v52, -inf }
 0xd0f   : > { %3332 = vmax.xlane.f32.xlu0 %v3331_v35  ;;  %v7993_v35 = vadd.f32 %v4904_v46, %v7827_v63 }
 0xd11   : > { %v3367_v38 = vsel %vm1194_vm2, %v7993_v35, -inf }
 0xd12   : > { %3353 = vmax.xlane.f32.xlu1 %v3352_v34  ;;  %v7999_v34 = vpop.permute.xlu0 %6019 }
 0xd13   : > { %3338 = vmax.xlane.f32.xlu0 %v3337_v25 }
 0xd16   : > { %3359 = vmax.xlane.f32.xlu1 %v3358_v58  ;;  %v8003_v25 = vpop.permute.xlu0 %6029 }
 0xd17   : > { %3344 = vmax.xlane.f32.xlu0 %v3343_v45 }
 0xd1a   : > { %3365 = vmax.xlane.f32.xlu1 %v3364_v23 }
 0xd1b   : > { %3350 = vmax.xlane.f32.xlu0 %v3349_v61 }
 0xd1e   : > { %3371 = vmax.xlane.f32.xlu1 %v3370_v39 }
 0xd1f   : > { %3356 = vmax.xlane.f32.xlu0 %v3355_v6 }
 0xd23   : > { %3362 = vmax.xlane.f32.xlu0 %v3361_v50 }
 0xd27   : > { %3368 = vmax.xlane.f32.xlu0 %v3367_v38 }
 0xd42   : > { %v3282_v9 = vpop.xlane.xlu1 %3281 }
 0xd43   : > { %v3374_v58 = vsub.f32 %v7750_v29, %v3282_v9  ;;  %v3279_v32 = vpop.xlane.xlu0 %3278 }
 0xd44   : > { %v3373_v63 = vsub.f32 %v7752_v15, %v3279_v32 }
 0xd45   : > { %v3407_v45 = vmul.f32 1.442695, %v3374_v58 }
 0xd46   : > { %v3405_v7 = vmul.f32 1.442695, %v3373_v63  ;;  %v3288_v23 = vpop.xlane.xlu1 %3287 }
 0xd47   : > { %6274 = vpow2.f32 %v3407_v45  ;;  %v3376_v61 = vsub.f32 %v7764_v33, %v3288_v23  ;;  %v3285_v18 = vpop.xlane.xlu0 %3284 }
 0xd48   : > { %6276 = vpow2.f32 %v3405_v7  ;;  %v3375_v39 = vsub.f32 %v7766_v12, %v3285_v18 }
 0xd49   : > { %v3411_v6 = vmul.f32 1.442695, %v3376_v61 }
 0xd4a   : > { %v3409_v46 = vmul.f32 1.442695, %v3375_v39  ;;  %v3294_v50 = vpop.xlane.xlu1 %3293 }
 0xd4b   : > { %6278 = vpow2.f32 %v3411_v6  ;;  %v3378_v38 = vsub.f32 %v7778_v24, %v3294_v50  ;;  %v3291_v29 = vpop.xlane.xlu0 %3290 }
 0xd4c   : > { %v3377_v9 = vsub.f32 %v7780_v31, %v3291_v29  ;;  %6280 = vpow2.f32 %v3409_v46 }
 0xd4d   : > { %v3415_v15 = vmul.f32 1.442695, %v3378_v38 }
 0xd4e   : > { %v3413_v58 = vmul.f32 1.442695, %v3377_v9  ;;  %v3300_v32 = vpop.xlane.xlu1 %3299 }
 0xd4f   : > { %v3380_v63 = vsub.f32 %v7792_v57, %v3300_v32  ;;  %v3297_v33 = vpop.xlane.xlu0 %3296 }
 0xd50   : > { %6282 = vpow2.f32 %v3413_v58  ;;  %v3379_v45 = vsub.f32 %v7794_v54, %v3297_v33 }
 0xd51   : > { %v8013_v12 = vpop.eup %6274  ;;  %6284 = vpow2.f32 %v3415_v15  ;;  %v3419_v7 = vmul.f32 1.442695, %v3380_v63 }
 0xd52   : > { %v8015_v23 = vpop.eup %6276  ;;  %v3417_v24 = vmul.f32 1.442695, %v3379_v45  ;;  %v3306_v61 = vpop.xlane.xlu1 %3305  ;;  %v3472_v31 = vsel %vm1194_vm2, %v8013_v12, 0.0 }
 0xd53   : > { %6286 = vpow2.f32 %v3419_v7  ;;  %v3382_v18 = vsub.f32 %v7803_v5, %v3306_v61  ;;  %3473 = vadd.xlane.f32.xlu1 %v3472_v31  ;;  %v3469_v57 = vsel %vm1194_vm2, %v8015_v23, 0.0  ;;  %v8050_v7 = vpop.permute.xlu0 %6039 }
 0xd54   : > { %3470 = vadd.xlane.f32.xlu0 %v3469_v57  ;;  %6288 = vpow2.f32 %v3417_v24 }
 0xd55   : > { %v8022_v54 = vpop.eup %6278  ;;  %v3423_v39 = vmul.f32 1.442695, %v3382_v18 }
 0xd56   : > { %v3478_v6 = vsel %vm1194_vm2, %v8022_v54, 0.0  ;;  %v8026_v46 = vpop.eup %6280  ;;  %v8052_v24 = vpop.permute.xlu1 %6034 }
 0xd57   : > { %6290 = vpow2.f32 %v3423_v39  ;;  %3479 = vadd.xlane.f32.xlu1 %v3478_v6  ;;  %v3475_v5 = vsel %vm1194_vm2, %v8026_v46, 0.0 }
 0xd5a   : > { %v8028_v50 = vpop.eup %6282 }
 0xd5b   : > { %v8032_v38 = vpop.eup %6284  ;;  %3476 = vadd.xlane.f32.xlu1 %v3475_v5  ;;  %v3481_v29 = vsel %vm1194_vm2, %v8028_v50, 0.0 }
 0xd5c   : > { %3482 = vadd.xlane.f32.xlu0 %v3481_v29  ;;  %v3484_v15 = vsel %vm1194_vm2, %v8032_v38, 0.0 }
 0xd5d   : > { %v8036_v9 = vpop.eup %6286 }
 0xd5e   : > { %v3490_v58 = vsel %vm1194_vm2, %v8036_v9, 0.0  ;;  %v8042_v32 = vpop.eup %6288 }
 0xd5f   : > { %3485 = vadd.xlane.f32.xlu1 %v3484_v15  ;;  %v3487_v45 = vsel %vm1194_vm2, %v8042_v32, 0.0 }
 0xd60   : > { %3491 = vadd.xlane.f32.xlu0 %v3490_v58 }
 0xd61   : > { %v8044_v63 = vpop.eup %6290 }
 0xd62   : > { %v3496_v33 = vsel %vm1194_vm2, %v8044_v63, 0.0 }
 0xd63   : > { %3497 = vadd.xlane.f32.xlu1 %v3496_v33 }
 0xd64   : > { %3488 = vadd.xlane.f32.xlu0 %v3487_v45 }
 0xd84   : > { %v3303_v61 = vpop.xlane.xlu0 %3302 }
 0xd85   : > { %v3381_v31 = vsub.f32 %v7832_v13, %v3303_v61 }
 0xd87   : > { %v3421_v18 = vmul.f32 1.442695, %v3381_v31  ;;  %v3318_v57 = vpop.xlane.xlu1 %3317 }
 0xd88   : > { %v3386_v39 = vsub.f32 %v7840_v53, %v3318_v57  ;;  %v3312_v6 = vpop.xlane.xlu0 %3311 }
 0xd89   : > { %6292 = vpow2.f32 %v3421_v18  ;;  %v3384_v5 = vsub.f32 %v7842_v20, %v3312_v6 }
 0xd8a   : > { %v3431_v29 = vmul.f32 1.442695, %v3386_v39 }
 0xd8b   : > { %v3427_v15 = vmul.f32 1.442695, %v3384_v5  ;;  %v3324_v58 = vpop.xlane.xlu1 %3323 }
 0xd8c   : > { %v3388_v33 = vsub.f32 %v7852_v30, %v3324_v58  ;;  %v3309_v45 = vpop.xlane.xlu0 %3308 }
 0xd8d   : > { %6294 = vpow2.f32 %v3427_v15  ;;  %v3383_v27 = vsub.f32 %v7856_v49, %v3309_v45 }
 0xd8e   : > { %6296 = vpow2.f32 %v3431_v29  ;;  %v3435_v28 = vmul.f32 1.442695, %v3388_v33 }
 0xd8f   : > { %v3425_v13 = vmul.f32 1.442695, %v3383_v27  ;;  %v8059_v61 = vpop.xlane.xlu1 %3329 }
 0xd90   : > { %v3315_v31 = vpop.xlane.xlu0 %3314 }
 0xd91   : > { %6298 = vpow2.f32 %v3425_v13  ;;  %v3385_v53 = vsub.f32 %v7870_v22, %v3315_v31 }
 0xd92   : > { %6300 = vpow2.f32 %v3435_v28 }
 0xd93   : > { %v8062_v18 = vpop.eup %6292  ;;  %v3429_v20 = vmul.f32 1.442695, %v3385_v53  ;;  %v3336_v57 = vpop.xlane.xlu1 %3335 }
 0xd94   : > { %v3392_v30 = vsub.f32 %v7880_v2, %v3336_v57  ;;  %v3321_v39 = vpop.xlane.xlu0 %3320  ;;  %v3493_v49 = vsel %vm1194_vm2, %v8062_v18, 0.0 }
 0xd95   : > { %6302 = vpow2.f32 %v3429_v20  ;;  %v3387_v27 = vsub.f32 %v7884_v8, %v3321_v39  ;;  %3494 = vadd.xlane.f32.xlu0 %v3493_v49 }
 0xd96   : > { %v3443_v5 = vmul.f32 1.442695, %v3392_v30 }
 0xd97   : > { %v8068_v6 = vpop.eup %6294  ;;  %v3433_v29 = vmul.f32 1.442695, %v3387_v27  ;;  %v3342_v22 = vpop.xlane.xlu1 %3341 }
 0xd98   : > { %v3394_v15 = vsub.f32 %v7894_v43, %v3342_v22  ;;  %v8071_v28 = vpop.xlane.xlu0 %3326  ;;  %v3502_v2 = vsel %vm1194_vm2, %v8068_v6, 0.0  ;;  %v8075_v58 = vpop.eup %6296 }
 0xd99   : > { %6304 = vpow2.f32 %v3433_v29  ;;  %3503 = vadd.xlane.f32.xlu1 %v3502_v2  ;;  %v3508_v43 = vsel %vm1194_vm2, %v8075_v58, 0.0 }
 0xd9a   : > { %6306 = vpow2.f32 %v3443_v5  ;;  %v3447_v8 = vmul.f32 1.442695, %v3394_v15 }
 0xd9b   : > { %v8077_v33 = vpop.eup %6298  ;;  %v3348_v45 = vpop.xlane.xlu1 %3347 }
 0xd9c   : > { %v3396_v13 = vsub.f32 %v7908_v55, %v3348_v45  ;;  %v8080_v31 = vpop.xlane.xlu0 %3332  ;;  %v3499_v53 = vsel %vm1194_vm2, %v8077_v33, 0.0  ;;  %v8086_v20 = vpop.eup %6300  ;;  %6308 = vpow2.f32 %v3447_v8 }
 0xd9d   : > { %3509 = vadd.xlane.f32.xlu1 %v3508_v43  ;;  %3500 = vadd.xlane.f32.xlu0 %v3499_v53  ;;  %v3514_v55 = vsel %vm1194_vm2, %v8086_v20, 0.0 }
 0xd9e   : > { %v3451_v30 = vmul.f32 1.442695, %v3396_v13 }
 0xd9f   : > { %v8088_v57 = vpop.eup %6302  ;;  %v3354_v39 = vpop.xlane.xlu1 %3353 }
 0xda0   : > { %v8090_v49 = vpop.xlane.xlu0 %3338  ;;  %v3505_v27 = vsel %vm1194_vm2, %v8088_v57, 0.0  ;;  %6310 = vpow2.f32 %v3451_v30  ;;  %v3398_v29 = vsub.f32 %v7922_v14, %v3354_v39 }
 0xda1   : > { %3515 = vadd.xlane.f32.xlu1 %v3514_v55  ;;  %3506 = vadd.xlane.f32.xlu0 %v3505_v27 }
 0xda2   : > { %v3455_v13 = vmul.f32 1.442695, %v3398_v29 }
 0xda3   : > { %v8096_v5 = vpop.eup %6304  ;;  %v3360_v22 = vpop.xlane.xlu1 %3359 }
 0xda4   : > { %v3345_v15 = vpop.xlane.xlu0 %3344  ;;  %v3511_v2 = vsel %vm1194_vm2, %v8096_v5, 0.0  ;;  %v8101_v8 = vpop.eup %6306  ;;  %v3400_v43 = vsub.f32 %v7938_v51, %v3360_v22 }
 0xda5   : > { %v3395_v45 = vsub.f32 %v7943_v17, %v3345_v15  ;;  %3512 = vadd.xlane.f32.xlu1 %v3511_v2  ;;  %v3526_v30 = vsel %vm1194_vm2, %v8101_v8, 0.0 }
 0xda6   : > { %v8109_v14 = vpop.eup %6308  ;;  %v3459_v27 = vmul.f32 1.442695, %v3400_v43 }
 0xda7   : > { %v3449_v53 = vmul.f32 1.442695, %v3395_v45  ;;  %v3366_v39 = vpop.xlane.xlu1 %3365  ;;  %v3532_v17 = vsel %vm1194_vm2, %v8109_v14, 0.0 }
 0xda8   : > { %v8105_v55 = vpop.xlane.xlu0 %3350  ;;  %v3402_v22 = vsub.f32 %v7954_v10, %v3366_v39 }
 0xda9   : > { %6312 = vpow2.f32 %v3449_v53  ;;  %3527 = vadd.xlane.f32.xlu1 %v3526_v30 }
 0xdaa   : > { %6314 = vpow2.f32 %v3455_v13  ;;  %v8113_v29 = vpop.eup %6310  ;;  %v3463_v43 = vmul.f32 1.442695, %v3402_v22 }
 0xdab   : > { %6316 = vpow2.f32 %v3459_v27  ;;  %v3372_v2 = vpop.xlane.xlu1 %3371  ;;  %v3538_v53 = vsel %vm1194_vm2, %v8113_v29, 0.0 }
 0xdac   : > { %v3357_v26 = vpop.xlane.xlu0 %3356  ;;  %v3404_v30 = vsub.f32 %v7970_v52, %v3372_v2  ;;  %v3389_v2 = vsub.f32 %v7898_v36, %v8071_v28  ;;  %v3393_v36 = vsub.f32 %v7927_v1, %v8090_v49 }
 0xdad   : > { %v3399_v51 = vsub.f32 %v7975_v48, %v3357_v26  ;;  %3533 = vadd.xlane.f32.xlu1 %v3532_v17 }
 0xdae   : > { %v3467_v10 = vmul.f32 1.442695, %v3404_v30  ;;  %v3437_v30 = vmul.f32 1.442695, %v3389_v2 }
 0xdaf   : > { %v3457_v15 = vmul.f32 1.442695, %v3399_v51 }
 0xdb0   : > { %v3363_v45 = vpop.xlane.xlu0 %3362 }
 0xdb1   : > { %3539 = vadd.xlane.f32.xlu1 %v3538_v53  ;;  %6318 = vpow2.f32 %v3457_v15 }
 0xdb2   : > { %6320 = vpow2.f32 %v3463_v43 }
 0xdb3   : > { %v8119_v13 = vpop.eup %6312  ;;  %6322 = vpow2.f32 %v3467_v10 }
 0xdb4   : > { %v3369_v42 = vpop.xlane.xlu0 %3368  ;;  %v3535_v26 = vsel %vm1194_vm2, %v8119_v13, 0.0  ;;  %v8124_v48 = vpop.eup %6314 }
 0xdb5   : > { %3536 = vadd.xlane.f32.xlu1 %v3535_v26  ;;  %v3403_v39 = vsub.f32 %v7993_v35, %v3369_v42  ;;  %v3544_v27 = vsel %vm1194_vm2, %v8124_v48, 0.0  ;;  %v8131_v17 = vpop.eup %6316  ;;  %v3390_v42 = vsub.f32 %v7866_v60, %v8059_v61  ;;  %v3391_v60 = vsub.f32 %v7912_v11, %v8080_v31 }
 0xdb6   : > { %v3550_v51 = vsel %vm1194_vm2, %v8131_v17, 0.0  ;;  %v3397_v11 = vsub.f32 %v7959_v37, %v8105_v55 }
 0xdb7   : > { %6044 = vrot.lane.b32.xlu0 %v7608_v44, %s6457_s19  ;;  %v3465_v52 = vmul.f32 1.442695, %v3403_v39  ;;  %v3439_v15 = vmul.f32 1.442695, %v3390_v42  ;;  %v3441_v10 = vmul.f32 1.442695, %v3391_v60 }
 0xdb8   : > { %v3445_v39 = vmul.f32 1.442695, %v3393_v36 }
 0xdb9   : > { %3545 = vadd.xlane.f32.xlu1 %v3544_v27  ;;  %6324 = vpow2.f32 %v3465_v52  ;;  %v3453_v27 = vmul.f32 1.442695, %v3397_v11  ;;  %v3401_v52 = vsub.f32 %v7985_v40, %v3363_v45 }
 0xdba   : > { %6326 = vpow2.f32 %v3439_v15 }
 0xdbb   : > { %v8135_v22 = vpop.eup %6318  ;;  %6328 = vpow2.f32 %v3437_v30  ;;  %v3461_v1 = vmul.f32 1.442695, %v3401_v52 }
 0xdbc   : > { %v3547_v44 = vsel %vm1194_vm2, %v8135_v22, 0.0  ;;  %v8141_v35 = vpop.eup %6320  ;;  %6330 = vpow2.f32 %v3441_v10 }
 0xdbd   : > { %3551 = vadd.xlane.f32.xlu1 %v3550_v51  ;;  %v3556_v53 = vsel %vm1194_vm2, %v8141_v35, 0.0  ;;  %v8147_v43 = vpop.eup %6322  ;;  %6332 = vpow2.f32 %v3445_v39 }
 0xdbe   : > { %v3562_v61 = vsel %vm1194_vm2, %v8147_v43, 0.0  ;;  %6334 = vpow2.f32 %v3453_v27 }
 0xdbf   : > { %6336 = vpow2.f32 %v3461_v1 }
 0xdc1   : > { %3548 = vadd.xlane.f32.xlu1 %v3547_v44 }
 0xdc3   : > { %v8153_v26 = vpop.eup %6324 }
 0xdc4   : > { %v3559_v28 = vsel %vm1194_vm2, %v8153_v26, 0.0  ;;  %v8161_v31 = vpop.eup %6326 }
 0xdc5   : > { %3557 = vadd.xlane.f32.xlu1 %v3556_v53  ;;  %v3520_v51 = vsel %vm1194_vm2, %v8161_v31, 0.0  ;;  %v8166_v42 = vpop.eup %6328 }
 0xdc6   : > { %v3517_v49 = vsel %vm1194_vm2, %v8166_v42, 0.0  ;;  %v8170_v44 = vpop.eup %6330 }
 0xdc7   : > { %v3523_v37 = vsel %vm1194_vm2, %v8170_v44, 0.0  ;;  %v8174_v55 = vpop.eup %6332 }
 0xdc8   : > { %v3529_v40 = vsel %vm1194_vm2, %v8174_v55, 0.0  ;;  %v8180_v45 = vpop.eup %6334 }
 0xdc9   : > { %3563 = vadd.xlane.f32.xlu1 %v3562_v61  ;;  %v3541_v15 = vsel %vm1194_vm2, %v8180_v45, 0.0  ;;  %v8184_v2 = vpop.eup %6336 }
 0xdca   : > { %v3553_v53 = vsel %vm1194_vm2, %v8184_v2, 0.0 }
 0xdcd   : > { %3560 = vadd.xlane.f32.xlu1 %v3559_v28 }
 0xdd6   : > { %3521 = vadd.xlane.f32.xlu0 %v3520_v51 }
 0xdda   : > { %3518 = vadd.xlane.f32.xlu0 %v3517_v49 }
 0xdde   : > { %3524 = vadd.xlane.f32.xlu0 %v3523_v37  ;;  %6049 = vrot.lane.b32.xlu1 %v7619_v62, %s6457_s19 }
 0xde0   : > { %v3474_v62 = vpop.xlane.xlu1 %3473 }
 0xde1   : > { %v3471_v60 = vpop.xlane.xlu0 %3470 }
 0xde2   : > { %3530 = vadd.xlane.f32.xlu0 %v3529_v40 }
 0xde4   : > { %v3480_v30 = vpop.xlane.xlu1 %3479 }
 0xde6   : > { %3542 = vadd.xlane.f32.xlu0 %v3541_v15 }
 0xde8   : > { %v3477_v10 = vpop.xlane.xlu1 %3476 }
 0xde9   : > { %v3483_v61 = vpop.xlane.xlu0 %3482 }
 0xdea   : > { %3554 = vadd.xlane.f32.xlu0 %v3553_v53 }
 0xdec   : > { %v3486_v28 = vpop.xlane.xlu1 %3485 }
 0xded   : > { %v8190_v36 = vpop.xlane.xlu0 %3491 }
 0xdf0   : > { %v3498_v11 = vpop.xlane.xlu1 %3497 }
 0xdf1   : > { %v3489_v39 = vpop.xlane.xlu0 %3488  ;;  %6338 = vrcp.f32 %v3498_v11 }
 0xdfb   : > { %v6339_v49 = vpop.eup %6338 }
 0xdfc   : > { %v3606_v53 = vmul.f32 %v6339_v49, %v8044_v63  ;;  %v6021_v49 = vunpack.i.l.bf16 %v7999_v34 }
 0xe00   : > { %6054 = vrot.lane.b32.xlu0 %v7634_v47, %s6457_s19 }
 0xe22   : > { %v3495_v27 = vpop.xlane.xlu0 %3494 }
 0xe23   : > { %6340 = vrcp.f32 %v3495_v27 }
 0xe26   : > { %v3504_v52 = vpop.xlane.xlu1 %3503 }
 0xe27   : > { %6342 = vrcp.f32 %v3504_v52 }
 0xe2a   : > { %v3510_v51 = vpop.xlane.xlu1 %3509  ;;  %v3501_v1 = vpop.xlane.xlu0 %3500 }
 0xe2b   : > { %6344 = vrcp.f32 %v3501_v1 }
 0xe2c   : > { %6346 = vrcp.f32 %v3510_v51 }
 0xe2d   : > { %v6341_v47 = vpop.eup %6340 }
 0xe2e   : > { %v3516_v37 = vpop.xlane.xlu1 %3515  ;;  %v3507_v40 = vpop.xlane.xlu0 %3506  ;;  %v3605_v15 = vmul.f32 %v6341_v47, %v8062_v18 }
 0xe2f   : > { %6348 = vrcp.f32 %v3507_v40  ;;  %v6026_v40 = vunpack.i.l.bf16 %v8001_v56 }
 0xe30   : > { %5538 = vmatprep.mubr.msk.f32.mxu1 %vm1194_vm2, %v3605_v15  ;;  %6350 = vrcp.f32 %v3516_v37  ;;  %v6027_v37 = vunpack.i.h.bf16 %v8001_v56  ;;  %v6031_v15 = vunpack.i.l.bf16 %v8003_v25 }
 0xe31   : > { %5539 = vmatmul.mubr.msk.f32.vlgmr.msra.gmra.mrb[56].mxu1 %vm1194_vm2, %v3606_v53  ;;  %v6343_v27 = vpop.eup %6342 }
 0xe32   : > { %5793 = vmatpush3.bf16.msra.mxu1 %v7596_v41  ;;  %v3513_v11 = vpop.xlane.xlu1 %3512  ;;  %v3608_v51 = vmul.f32 %v6343_v27, %v8068_v6  ;;  %v5810_v53 = vpack.c.bf16 %v6027_v37, %v6026_v40 }
 0xe33   : > { %6352 = vrcp.f32 %v3513_v11  ;;  %5795 = vmatprep.subr.bf16.mxu1 %v7612_v0 }
 0xe34   : > { %6354 = vrcp.f32 %v3471_v60  ;;  %v6022_v60 = vunpack.i.h.bf16 %v7999_v34 }
 0xe35   : > { %v6345_v52 = vpop.eup %6344  ;;  %6356 = vrcp.f32 %v3474_v62 }
 0xe36   : > { %5797 = vmatpush3.bf16.msra.mxu1 %v7612_v0  ;;  %v8199_v63 = vpop.xlane.xlu1 %3527  ;;  %v3607_v18 = vmul.f32 %v6345_v52, %v8077_v33  ;;  %6358 = vrcp.f32 %v3477_v10  ;;  %v6347_v41 = vpop.eup %6346  ;;  %v5806_v34 = vpack.c.bf16 %v6022_v60, %v6021_v49  ;;  %v6037_v52 = vunpack.i.h.bf16 %v8052_v24 }
 0xe37   : > { %5799 = vmatprep.subr.bf16.mxu1 %v7625_v16  ;;  %6360 = vrcp.f32 %v3480_v30  ;;  %v3610_v6 = vmul.f32 %v6347_v41, %v8075_v58  ;;  %v6042_v41 = vunpack.i.h.bf16 %v8050_v7 }
 0xe38   : > { %5541 = vmatprep.mubr.msk.f32.mxu1 %vm1194_vm2, %v3607_v18  ;;  %6362 = vrcp.f32 %v3483_v61  ;;  %v6036_v18 = vunpack.i.l.bf16 %v8052_v24 }
 0xe39   : > { %v6349_v1 = vpop.eup %6348  ;;  %5542 = vmatmul.mubr.msk.f32.gmra.mrb[58].mxu1 %vm1194_vm2, %v3608_v51  ;;  %6364 = vrcp.f32 %v3486_v28 }
 0xe3a   : > { %5801 = vmatpush3.bf16.msra.mxu1 %v7625_v16  ;;  %v3609_v0 = vmul.f32 %v6349_v1, %v8088_v57  ;;  %v6351_v62 = vpop.eup %6350  ;;  %v8212_v10 = vpop.xlane.xlu1 %3533  ;;  %6366 = vrcp.f32 %v3489_v39  ;;  %v5818_v1 = vpack.c.bf16 %v6037_v52, %v6036_v18 }
 0xe3b   : > { %5803 = vmatprep.subr.bf16.mxu1 %v7640_v3  ;;  %v3612_v16 = vmul.f32 %v6351_v62, %v8086_v20  ;;  %6368 = vrcp.f32 %v8190_v36 }
 0xe3c   : > { %5544 = vmatprep.mubr.msk.f32.mxu1 %vm1194_vm2, %v3609_v0  ;;  %v6045_v0 = vpop.permute.xlu0 %6044 }
 0xe3d   : > { %v6353_v33 = vpop.eup %6352  ;;  %5545 = vmatmul.mubr.msk.f32.gmra.mrb[60].mxu1 %vm1194_vm2, %v3610_v6 }
 0xe3e   : > { %v6355_v47 = vpop.eup %6354  ;;  %v3611_v30 = vmul.f32 %v6353_v33, %v8096_v5  ;;  %5805 = vmatpush3.bf16.msra.mxu1 %v7640_v3  ;;  %v3540_v5 = vpop.xlane.xlu1 %3539 }
 0xe3f   : > { %5807 = vmatprep.subr.bf16.mxu1 %v5806_v34  ;;  %v6357_v58 = vpop.eup %6356  ;;  %v3597_v57 = vmul.f32 %v6355_v47, %v8015_v23  ;;  %v6032_v23 = vunpack.i.h.bf16 %v8003_v25 }
 0xe40   : > { %5547 = vmatprep.mubr.msk.f32.mxu1 %vm1194_vm2, %v3611_v30  ;;  %v6359_v61 = vpop.eup %6358  ;;  %v3598_v3 = vmul.f32 %v6357_v58, %v8013_v12  ;;  %v6047_v58 = vunpack.i.h.bf16 %v6045_v0 }
 0xe41   : > { %5548 = vmatmul.mubr.msk.f32.gmra.mrb[62].mxu1 %vm1194_vm2, %v3612_v16  ;;  %v6361_v28 = vpop.eup %6360  ;;  %v3599_v20 = vmul.f32 %v6359_v61, %v8026_v46  ;;  %v5814_v46 = vpack.c.bf16 %v6032_v23, %v6031_v15 }
 0xe42   : > { %5566 = vmatprep.mubr.msk.f32.mxu1 %vm1194_vm2, %v3597_v57  ;;  %v6363_v39 = vpop.eup %6362  ;;  %v3600_v56 = vmul.f32 %v6361_v28, %v8022_v54  ;;  %v3537_v11 = vpop.xlane.xlu1 %3536  ;;  %v6046_v57 = vunpack.i.l.bf16 %v6045_v0 }
 0xe43   : > { %v6365_v36 = vpop.eup %6364  ;;  %v3601_v12 = vmul.f32 %v6363_v39, %v8028_v50  ;;  %v6041_v50 = vunpack.i.l.bf16 %v8050_v7 }
 0xe44   : > { %v6367_v27 = vpop.eup %6366  ;;  %v3602_v25 = vmul.f32 %v6365_v36, %v8032_v38 }
 0xe45   : > { %5567 = vmatmul.mubr.msk.f32.vlgmr.msra.gmra.mrb[56].mxu1 %vm1194_vm2, %v3598_v3  ;;  %v6369_v51 = vpop.eup %6368  ;;  %v3603_v54 = vmul.f32 %v6367_v27, %v8042_v32  ;;  %v5822_v49 = vpack.c.bf16 %v6042_v41, %v6041_v50 }
 0xe46   : > { %5809 = vmatpush3.bf16.msra.mxu1 %v5806_v34  ;;  %5569 = vmatprep.mubr.msk.f32.mxu1 %vm1194_vm2, %v3599_v20  ;;  %v3546_v60 = vpop.xlane.xlu1 %3545  ;;  %v3604_v24 = vmul.f32 %v6369_v51, %v8036_v9 }
 0xe47   : > { %5811 = vmatprep.subr.bf16.mxu1 %v5810_v53 }
 0xe49   : > { %5570 = vmatmul.mubr.msk.f32.gmra.mrb[58].mxu1 %vm1194_vm2, %v3600_v56 }
 0xe4a   : > { %5813 = vmatpush3.bf16.msra.mxu1 %v5810_v53  ;;  %5572 = vmatprep.mubr.msk.f32.mxu1 %vm1194_vm2, %v3601_v12  ;;  %v3552_v38 = vpop.xlane.xlu1 %3551 }
 0xe4b   : > { %5815 = vmatprep.subr.bf16.mxu1 %v5814_v46 }
 0xe4d   : > { %5573 = vmatmul.mubr.msk.f32.gmra.mrb[60].mxu1 %vm1194_vm2, %v3602_v25 }
 0xe4e   : > { %5817 = vmatpush3.bf16.msra.mxu1 %v5814_v46  ;;  %5575 = vmatprep.mubr.msk.f32.mxu1 %vm1194_vm2, %v3603_v54  ;;  %v3549_v32 = vpop.xlane.xlu1 %3548 }
 0xe4f   : > { %5819 = vmatprep.subr.bf16.mxu1 %v5818_v1 }
 0xe51   : > { %5576 = vmatmul.mubr.msk.f32.gmra.mrb[62].mxu1 %vm1194_vm2, %v3604_v24 }
 0xe52   : > { %5821 = vmatpush3.bf16.msra.mxu1 %v5818_v1  ;;  %v3558_v62 = vpop.xlane.xlu1 %3557 }
 0xe53   : > { %5823 = vmatprep.subr.bf16.mxu1 %v5822_v49 }
 0xe56   : > { %v8246_v6 = vpop.xlane.xlu1 %3563 }
 0xe5a   : > { %v3561_v9 = vpop.xlane.xlu1 %3560 }
 0xe5e   : > { %v6050_v61 = vpop.permute.xlu1 %6049 }
 0xe5f   : > { %v6052_v20 = vunpack.i.h.bf16 %v6050_v61  ;;  %v6051_v39 = vunpack.i.l.bf16 %v6050_v61 }
 0xe61   : > { %v5830_v56 = vpack.c.bf16 %v6052_v20, %v6051_v39  ;;  %v8476_v39 = vld [vmem:[#allocation3_spill] sm:$0xff] }
 0xe63   : > { %v3522_v7 = vpop.xlane.xlu0 %3521 }
 0xe64   : > { %6370 = vrcp.f32 %v3522_v7 }
 0xe67   : > { %v3519_v33 = vpop.xlane.xlu0 %3518 }
 0xe68   : > { %6372 = vrcp.f32 %v3519_v33 }
 0xe69   : > { %6374 = vrcp.f32 %v8199_v63 }
 0xe6b   : > { %v3525_v47 = vpop.xlane.xlu0 %3524 }
 0xe6c   : > { %6376 = vrcp.f32 %v3525_v47 }
 0xe6d   : > { %6378 = vrcp.f32 %v8212_v10  ;;  %v5826_v10 = vpack.c.bf16 %v6047_v58, %v6046_v57  ;;  %v8474_v57 = vld [vmem:[#allocation5_spill] sm:$0xff] }
 0xe6e   : > { %6380 = vrcp.f32 %v3537_v11  ;;  %v6371_v30 = vpop.eup %6370 }
 0xe6f   : > { %v3531_v34 = vpop.xlane.xlu0 %3530  ;;  %v3614_v3 = vmul.f32 %v6371_v30, %v8161_v31 }
 0xe70   : > { %6382 = vrcp.f32 %v3531_v34 }
 0xe71   : > { %6384 = vrcp.f32 %v3540_v5 }
 0xe72   : > { %v6373_v16 = vpop.eup %6372 }
 0xe73   : > { %v3543_v37 = vpop.xlane.xlu0 %3542  ;;  %v3613_v40 = vmul.f32 %v6373_v16, %v8166_v42  ;;  %v6375_v63 = vpop.eup %6374 }
 0xe74   : > { %6386 = vrcp.f32 %v3543_v37  ;;  %v3616_v31 = vmul.f32 %v6375_v63, %v8101_v8 }
 0xe75   : > { %5594 = vmatprep.mubr.msk.f32.mxu1 %vm1194_vm2, %v3613_v40  ;;  %6388 = vrcp.f32 %v3546_v60  ;;  %v8475_v40 = vld [vmem:[#allocation2_spill] sm:$0xff] }
 0xe76   : > { %v6377_v28 = vpop.eup %6376  ;;  %5595 = vmatmul.mubr.msk.f32.vlgmr.msra.gmra.mrb[56].mxu1 %vm1194_vm2, %v3614_v3  ;;  %6390 = vrcp.f32 %v3549_v32 }
 0xe77   : > { %5825 = vmatpush3.bf16.msra.mxu1 %v5822_v49  ;;  %v3555_v23 = vpop.xlane.xlu0 %3554  ;;  %v3615_v5 = vmul.f32 %v6377_v28, %v8170_v44  ;;  %v6379_v15 = vpop.eup %6378  ;;  %6392 = vrcp.f32 %v3552_v38 }
 0xe78   : > { %5827 = vmatprep.subr.bf16.mxu1 %v5826_v10  ;;  %v6381_v42 = vpop.eup %6380  ;;  %6394 = vrcp.f32 %v3555_v23  ;;  %v3618_v27 = vmul.f32 %v6379_v15, %v8109_v14 }
 0xe79   : > { %5597 = vmatprep.mubr.msk.f32.mxu1 %vm1194_vm2, %v3615_v5  ;;  %v3619_v8 = vmul.f32 %v6381_v42, %v8119_v13  ;;  %6396 = vrcp.f32 %v3558_v62 }
 0xe7a   : > { %v6383_v53 = vpop.eup %6382  ;;  %5598 = vmatmul.mubr.msk.f32.gmra.mrb[58].mxu1 %vm1194_vm2, %v3616_v31  ;;  %6398 = vrcp.f32 %v3561_v9 }
 0xe7b   : > { %5829 = vmatpush3.bf16.msra.mxu1 %v5826_v10  ;;  %v6055_v36 = vpop.permute.xlu0 %6054  ;;  %v3617_v11 = vmul.f32 %v6383_v53, %v8174_v55  ;;  %v6385_v46 = vpop.eup %6384  ;;  %6400 = vrcp.f32 %v8246_v6  ;;  %v6076_v53 = vld [vmem:[%s8454_s10 + $0x10] sm:$0xff]  }
 0xe7c   : > { %v6057_v12 = vunpack.i.h.bf16 %v6055_v36  ;;  %v6056_v44 = vunpack.i.l.bf16 %v6055_v36  ;;  %5831 = vmatprep.subr.bf16.mxu1 %v5830_v56  ;;  %v3620_v55 = vmul.f32 %v6385_v46, %v8113_v29  ;;  %5634 = vmatprep.subr.bf16.mxu0 %v6076_v53 }
 0xe7d   : > { %5600 = vmatprep.mubr.msk.f32.mxu1 %vm1194_vm2, %v3617_v11  ;;  %5635 = vmatpush3.bf16.msra.mxu0 %v6076_v53 }
 0xe7e   : > { %v6387_v52 = vpop.eup %6386  ;;  %v5834_v18 = vpack.c.bf16 %v6057_v12, %v6056_v44  ;;  %5601 = vmatmul.mubr.msk.f32.gmra.mrb[60].mxu1 %vm1194_vm2, %v3618_v27 }
 0xe7f   : > { %5833 = vmatpush3.bf16.msra.mxu1 %v5830_v56  ;;  %5603 = vmatprep.mubr.msk.f32.mxu1 %vm1194_vm2, %v3619_v8  ;;  %v6389_v25 = vpop.eup %6388  ;;  %v3621_v14 = vmul.f32 %v6387_v52, %v8180_v45 }
 0xe80   : > { %5835 = vmatprep.subr.bf16.mxu1 %v5834_v18  ;;  %v6391_v51 = vpop.eup %6390  ;;  %v3622_v13 = vmul.f32 %v6389_v25, %v8124_v48 }
 0xe81   : > { %v6393_v54 = vpop.eup %6392  ;;  %v3623_v41 = vmul.f32 %v6391_v51, %v8135_v22 }
 0xe82   : > { %5604 = vmatmul.mubr.msk.f32.gmra.mrb[62].mxu1 %vm1194_vm2, %v3620_v55  ;;  %v6395_v50 = vpop.eup %6394  ;;  %v3624_v29 = vmul.f32 %v6393_v54, %v8131_v17 }
 0xe83   : > { %5837 = vmatpush3.bf16.msra.mxu1 %v5834_v18  ;;  %5622 = vmatprep.mubr.msk.f32.mxu1 %vm1194_vm2, %v3621_v14  ;;  %v6397_v45 = vpop.eup %6396  ;;  %v3625_v1 = vmul.f32 %v6395_v50, %v8184_v2  ;;  %v4979_v2 = vld [vmem:[%s8451_s7 + $0x1] ss:$0 sm:$0xff] }
 0xe84   : > { %v6399_v60 = vpop.eup %6398  ;;  %v3626_v48 = vmul.f32 %v6397_v45, %v8141_v35 }
 0xe85   : > { %v6401_v24 = vpop.eup %6400  ;;  %v3627_v22 = vmul.f32 %v6399_v60, %v8153_v26 }
 0xe86   : > { %5623 = vmatmul.mubr.msk.f32.vlgmr.msra.gmra.mrb[56].mxu1 %vm1194_vm2, %v3622_v13  ;;  %v3628_v49 = vmul.f32 %v6401_v24, %v8147_v43 }
 0xe87   : > { %5625 = vmatprep.mubr.msk.f32.mxu1 %vm1194_vm2, %v3623_v41 }
 0xe8a   : > { %5626 = vmatmul.mubr.msk.f32.gmra.mrb[58].mxu1 %vm1194_vm2, %v3624_v29 }
 0xe8b   : > { %5628 = vmatprep.mubr.msk.f32.mxu1 %vm1194_vm2, %v3625_v1 }
 0xe8e   : > { %5629 = vmatmul.mubr.msk.f32.gmra.mrb[60].mxu1 %vm1194_vm2, %v3626_v48 }
 0xe8f   : > { %5631 = vmatprep.mubr.msk.f32.mxu1 %vm1194_vm2, %v3627_v22 }
 0xe92   : > { %5632 = vmatmul.mubr.msk.f32.gmra.mrb[62].mxu1 %vm1194_vm2, %v3628_v49 }
 0xf59   : > { %v5624_v17 = vpop.f32.mrb[56].mxu1 }
 0xf5a   : > { %v4242_v38 = vadd.f32 %v5624_v17, %v7462_v4  ;;  %v4194_v32 = vpop.f32.mrb[57].mxu1 }
 0xf5b   : > { %v4241_v35 = vadd.f32 %v4194_v32, %v7456_v59 }
 0xf5c   : > { %v8288_v0 = vadd.f32 %v4979_v2, %v4242_v38 }
 0xf5d   : > { %v8290_v26 = vadd.f32 %v4979_v2, %v4241_v35  ;;  %v5627_v62 = vpop.f32.mrb[58].mxu1 }
 0xf5e   : > { %v4244_v7 = vadd.f32 %v5627_v62, %v7467_v19  ;;  %v4204_v43 = vpop.f32.mrb[59].mxu1  ;;  %v4272_v6 = vsel %vm486_vm0, %v8288_v0, 0.0  ;;  %v8473_v19 = vld [vmem:[#allocation4_spill] sm:$0xff] }
 0xf5f   : > { %v4243_v33 = vadd.f32 %v4204_v43, %v7459_v21  ;;  %4273 = vadd.xlane.f32.xlu1 %v4272_v6  ;;  %v4269_v4 = vsel %vm486_vm0, %v8290_v26, 0.0 }
 0xf60   : > { %v8298_v47 = vadd.f32 %v4979_v2, %v4244_v7  ;;  %4270 = vadd.xlane.f32.xlu0 %v4269_v4 }
 0xf61   : > { %v5630_v59 = vpop.f32.mrb[60].mxu1  ;;  %v8302_v30 = vadd.f32 %v4979_v2, %v4243_v33 }
 0xf62   : > { %v4214_v9 = vpop.f32.mrb[61].mxu1  ;;  %v4278_v34 = vsel %vm486_vm0, %v8298_v47, 0.0  ;;  %v4246_v16 = vadd.f32 %v5630_v59, %v8473_v19  ;;  %v6077_v19 = vld [vmem:[%s8454_s10 + $0x18] sm:$0xff]  }
 0xf63   : > { %v4245_v3 = vadd.f32 %v4214_v9, %v8475_v40  ;;  %v4275_v63 = vsel %vm486_vm0, %v8302_v30, 0.0  ;;  %5636 = vmatprep.subr.bf16.mxu0 %v6077_v19 }
 0xf64   : > { %4279 = vadd.xlane.f32.xlu0 %v4278_v34  ;;  %v8306_v37 = vadd.f32 %v4979_v2, %v4246_v16  ;;  %5637 = vmatpush3.bf16.msra.mxu0 %v6077_v19 }
 0xf65   : > { %v5633_v58 = vpop.f32.mrb[62].mxu1  ;;  %v8315_v20 = vadd.f32 %v4979_v2, %v4245_v3 }
 0xf66   : > { %v4248_v21 = vadd.f32 %v5633_v58, %v8474_v57  ;;  %v4224_v61 = vpop.f32.mrb[63].mxu1  ;;  %v4284_v5 = vsel %vm486_vm0, %v8306_v37, 0.0 }
 0xf67   : > { %v4247_v23 = vadd.f32 %v4224_v61, %v8476_v39  ;;  %v4281_v31 = vsel %vm486_vm0, %v8315_v20, 0.0 }
 0xf68   : > { %v8311_v28 = vadd.f32 %v4979_v2, %v4248_v21  ;;  %4276 = vadd.xlane.f32.xlu0 %v4275_v63 }
 0xf69   : > { %v8320_v15 = vadd.f32 %v4979_v2, %v4247_v23 }
 0xf6a   : > { %v4290_v10 = vsel %vm486_vm0, %v8311_v28, 0.0 }
 0xf6b   : > { %4291 = vadd.xlane.f32.xlu1 %v4290_v10  ;;  %v4287_v42 = vsel %vm486_vm0, %v8320_v15, 0.0 }
 0xf6c   : > { %4285 = vadd.xlane.f32.xlu0 %v4284_v5 }
 0xf70   : > { %4282 = vadd.xlane.f32.xlu0 %v4281_v31 }
 0xf74   : > { %4288 = vadd.xlane.f32.xlu0 %v4287_v42 }
 0xfec   : > { %v4274_v56 = vpop.xlane.xlu1 %4273 }
 0xfed   : > { %v4294_v36 = vmul.f32 0.03125, %v4274_v56  ;;  %v4271_v11 = vpop.xlane.xlu0 %4270  ;;  %v4982_v56 = vld [vmem:[%s8452_s8 + $0x1] ss:$0 sm:$0xff] }
 0xfee   : > { %v4293_v12 = vmul.f32 0.03125, %v4271_v11 }
 0xfef   : > { %v8330_v44 = vsub.f32 %v8288_v0, %v4294_v36 }
 0xff0   : > { %v8333_v27 = vsub.f32 %v8290_v26, %v4293_v12 }
 0xff1   : > { %v4280_v46 = vpop.xlane.xlu0 %4279  ;;  %v4310_v8 = vmul.f32 %v8330_v44, %v8330_v44 }
 0xff2   : > { %v4296_v52 = vmul.f32 0.03125, %v4280_v46  ;;  %v4309_v18 = vmul.f32 %v8333_v27, %v8333_v27 }
 0xff3   : > { %v4320_v55 = vsel %vm486_vm0, %v4310_v8, 0.0  ;;  %v4983_v8 = vld [vmem:[%s8453_s9 + $0x1] ss:$0 sm:$0xff] }
 0xff4   : > { %v8341_v25 = vsub.f32 %v8298_v47, %v4296_v52  ;;  %4321 = vadd.xlane.f32.xlu1 %v4320_v55  ;;  %v4317_v14 = vsel %vm486_vm0, %v4309_v18, 0.0 }
 0xff5   : > { %v4277_v51 = vpop.xlane.xlu0 %4276  ;;  %4318 = vadd.xlane.f32.xlu0 %v4317_v14 }
 0xff6   : > { %v4295_v13 = vmul.f32 0.03125, %v4277_v51  ;;  %v4312_v54 = vmul.f32 %v8341_v25, %v8341_v25 }
 0xff8   : > { %v8347_v41 = vsub.f32 %v8302_v30, %v4295_v13  ;;  %v4292_v50 = vpop.xlane.xlu1 %4291  ;;  %v4326_v29 = vsel %vm486_vm0, %v4312_v54, 0.0 }
 0xff9   : > { %v4300_v45 = vmul.f32 0.03125, %v4292_v50  ;;  %v4286_v1 = vpop.xlane.xlu0 %4285  ;;  %4327 = vadd.xlane.f32.xlu1 %v4326_v29 }
 0xffa   : > { %v4298_v60 = vmul.f32 0.03125, %v4286_v1  ;;  %v4311_v48 = vmul.f32 %v8347_v41, %v8347_v41 }
 0xffb   : > { %v8353_v24 = vsub.f32 %v8311_v28, %v4300_v45 }
 0xffc   : > { %v8356_v22 = vsub.f32 %v8306_v37, %v4298_v60  ;;  %v4323_v49 = vsel %vm486_vm0, %v4311_v48, 0.0 }
 0xffd   : > { %v4283_v17 = vpop.xlane.xlu0 %4282  ;;  %4324 = vadd.xlane.f32.xlu0 %v4323_v49  ;;  %v4316_v62 = vmul.f32 %v8353_v24, %v8353_v24 }
 0xffe   : > { %v4297_v2 = vmul.f32 0.03125, %v4283_v17  ;;  %v4314_v38 = vmul.f32 %v8356_v22, %v8356_v22 }
 0xfff   : > { %v4338_v4 = vsel %vm486_vm0, %v4316_v62, 0.0 }
0x1000   : > { %v8362_v32 = vsub.f32 %v8315_v20, %v4297_v2  ;;  %v4332_v35 = vsel %vm486_vm0, %v4314_v38, 0.0 }
0x1001   : > { %4333 = vadd.xlane.f32.xlu1 %v4332_v35  ;;  %v4289_v7 = vpop.xlane.xlu0 %4288 }
0x1002   : > { %v4299_v43 = vmul.f32 0.03125, %v4289_v7  ;;  %v4313_v6 = vmul.f32 %v8362_v32, %v8362_v32 }
0x1004   : > { %v8370_v33 = vsub.f32 %v8320_v15, %v4299_v43  ;;  %v4329_v59 = vsel %vm486_vm0, %v4313_v6, 0.0 }
0x1005   : > { %4339 = vadd.xlane.f32.xlu1 %v4338_v4  ;;  %4330 = vadd.xlane.f32.xlu0 %v4329_v59 }
0x1006   : > { %v4315_v9 = vmul.f32 %v8370_v33, %v8370_v33 }
0x1008   : > { %v4335_v34 = vsel %vm486_vm0, %v4315_v9, 0.0 }
0x1009   : > { %4336 = vadd.xlane.f32.xlu0 %v4335_v34 }
0x1081   : > { %v4322_v16 = vpop.xlane.xlu1 %4321 }
0x1082   : > { %v4342_v58 = vmul.f32 0.03125, %v4322_v16  ;;  %v4319_v57 = vpop.xlane.xlu0 %4318 }
0x1083   : > { %v4341_v21 = vmul.f32 0.03125, %v4319_v57 }
0x1084   : > { %v4350_v61 = vadd.f32 1e-05, %v4342_v58 }
0x1085   : > { %v4349_v40 = vadd.f32 1e-05, %v4341_v21 }
0x1086   : > { %6402 = vrsqrt.f32 %v4350_v61  ;;  %v4328_v3 = vpop.xlane.xlu1 %4327 }
0x1087   : > { %6404 = vrsqrt.f32 %v4349_v40  ;;  %v4344_v63 = vmul.f32 0.03125, %v4328_v3 }
0x1089   : > { %v4352_v10 = vadd.f32 1e-05, %v4344_v63 }
0x108a   : > { %v4325_v39 = vpop.xlane.xlu0 %4324 }
0x108b   : > { %6406 = vrsqrt.f32 %v4352_v10  ;;  %v4343_v23 = vmul.f32 0.03125, %v4325_v39  ;;  %v6081_v39 = vld [vmem:[%s8456_s12 + $0x38] sm:$0xff]  }
0x108d   : > { %v4351_v5 = vadd.f32 1e-05, %v4343_v23  ;;  %v4989_v23 = vld [vmem:[%s8455_s11 + $0x1] ss:$0 sm:$0xff] }
0x108e   : > { %v4334_v31 = vpop.xlane.xlu1 %4333 }
0x108f   : > { %6408 = vrsqrt.f32 %v4351_v5  ;;  %v4346_v42 = vmul.f32 0.03125, %v4334_v31 }
0x1090   : > { %v6403_v53 = vpop.eup %6402 }
0x1091   : > { %v6405_v36 = vpop.eup %6404  ;;  %v4366_v11 = vmul.f32 %v6403_v53, %v8330_v44  ;;  %v4354_v12 = vadd.f32 1e-05, %v4346_v42 }
0x1092   : > { %v4365_v46 = vmul.f32 %v6405_v36, %v8333_v27  ;;  %v4340_v52 = vpop.xlane.xlu1 %4339  ;;  %v4331_v18 = vpop.xlane.xlu0 %4330 }
0x1093   : > { %6410 = vrsqrt.f32 %v4354_v12  ;;  %v4348_v55 = vmul.f32 0.03125, %v4340_v52  ;;  %v4345_v14 = vmul.f32 0.03125, %v4331_v18  ;;  %v4380_v51 = vmul.f32 %v4982_v56, %v4366_v11 }
0x1094   : > { %v4379_v13 = vmul.f32 %v4982_v56, %v4365_v46 }
0x1095   : > { %v6407_v54 = vpop.eup %6406  ;;  %v4356_v50 = vadd.f32 1e-05, %v4348_v55  ;;  %v4353_v29 = vadd.f32 1e-05, %v4345_v14  ;;  %v4394_v45 = vadd.f32 %v4983_v8, %v4380_v51 }
0x1096   : > { %v4368_v44 = vmul.f32 %v6407_v54, %v8341_v25  ;;  %v4337_v1 = vpop.xlane.xlu0 %4336  ;;  %v4393_v60 = vadd.f32 %v4983_v8, %v4379_v13 }
0x1097   : > { %6412 = vrsqrt.f32 %v4356_v50  ;;  %v4347_v27 = vmul.f32 0.03125, %v4337_v1 }
0x1098   : > { %6414 = vrsqrt.f32 %v4353_v29  ;;  %v4401_v48 = vpack.c.bf16 %v4394_v45, %v4393_v60  ;;  %v4382_v2 = vmul.f32 %v4982_v56, %v4368_v44 }
0x1099   : > { %v6409_v49 = vpop.eup %6408  ;;  %v4355_v17 = vadd.f32 1e-05, %v4347_v27 }
0x109a   : > { %v4367_v38 = vmul.f32 %v6409_v49, %v8347_v41  ;;  %5638 = vmatprep.mubr.msk.bf16.mxu0 %vm486_vm0, %v4401_v48  ;;  %v4396_v7 = vadd.f32 %v4983_v8, %v4382_v2 }
0x109b   : > { %6416 = vrsqrt.f32 %v4355_v17 }
0x109c   : > { %v4381_v35 = vmul.f32 %v4982_v56, %v4367_v38 }
0x109d   : > { %v6411_v62 = vpop.eup %6410 }
0x109e   : > { %v4395_v43 = vadd.f32 %v4983_v8, %v4381_v35  ;;  %v4370_v25 = vmul.f32 %v6411_v62, %v8356_v22 }
0x10a0   : > { %v4402_v6 = vpack.c.bf16 %v4396_v7, %v4395_v43  ;;  %v4384_v19 = vmul.f32 %v4982_v56, %v4370_v25 }
0x10a1   : > { %v6413_v4 = vpop.eup %6412 }
0x10a2   : > { %v6415_v59 = vpop.eup %6414  ;;  %v4372_v9 = vmul.f32 %v6413_v4, %v8353_v24  ;;  %5639 = vmatmul.mubr.msk.bf16.vlgmr.msra.gmra.mrb[64].mxu0 %vm486_vm0, %v4402_v6  ;;  %v4398_v61 = vadd.f32 %v4983_v8, %v4384_v19  ;;  %v6078_v24 = vld [vmem:[%s8456_s12 + $0x20] sm:$0xff]  }
0x10a3   : > { %v4369_v34 = vmul.f32 %v6415_v59, %v8362_v32  ;;  %5646 = vmatprep.subr.bf16.mxu1 %v6078_v24  ;;  %v6079_v32 = vld [vmem:[%s8456_s12 + $0x28] sm:$0xff]  }
0x10a4   : > { %v4386_v57 = vmul.f32 %v4982_v56, %v4372_v9  ;;  %5647 = vmatpush3.bf16.msra.mxu1 %v6078_v24 }
0x10a5   : > { %v6417_v41 = vpop.eup %6416  ;;  %v4383_v16 = vmul.f32 %v4982_v56, %v4369_v34  ;;  %5648 = vmatprep.subr.bf16.mxu1 %v6079_v32 }
0x10a6   : > { %v4371_v58 = vmul.f32 %v6417_v41, %v8370_v33  ;;  %v4400_v63 = vadd.f32 %v4983_v8, %v4386_v57  ;;  %v6080_v33 = vld [vmem:[%s8456_s12 + $0x30] sm:$0xff]  }
0x10a7   : > { %v4397_v21 = vadd.f32 %v4983_v8, %v4383_v16 }
0x10a8   : > { %v4385_v40 = vmul.f32 %v4982_v56, %v4371_v58  ;;  %5649 = vmatpush3.bf16.msra.mxu1 %v6079_v32 }
0x10a9   : > { %v4403_v3 = vpack.c.bf16 %v4398_v61, %v4397_v21  ;;  %5650 = vmatprep.subr.bf16.mxu1 %v6080_v33 }
0x10aa   : > { %v4399_v22 = vadd.f32 %v4983_v8, %v4385_v40 }
0x10ab   : > { %5642 = vmatprep.mubr.msk.bf16.mxu0 %vm486_vm0, %v4403_v3 }
0x10ac   : > { %v4404_v10 = vpack.c.bf16 %v4400_v63, %v4399_v22  ;;  %5651 = vmatpush3.bf16.msra.mxu1 %v6080_v33 }
0x10ad   : > { %5652 = vmatprep.subr.bf16.mxu1 %v6081_v39 }
0x10ae   : > { %5643 = vmatmul.mubr.msk.bf16.gmra.mrb[68].mxu0 %vm486_vm0, %v4404_v10 }
0x10b0   : > { %5653 = vmatpush3.bf16.msra.mxu1 %v6081_v39 }
0x1175   : > { %v5640_v5 = vpop.f32.mrb[64].mxu0 }
0x1176   : > { %v4485_v31 = vadd.f32 %v5640_v5, %v4989_v23  ;;  %v4476_v42 = vpop.f32.mrb[65].mxu0 }
0x1177   : > { %v4477_v53 = vadd.f32 %v4989_v23, %v4476_v42  ;;  %v5641_v56 = vpop.f32.mrb[66].mxu0 }
0x1178   : > { %v4517_v36 = vmul.f32 0.70710677, %v4485_v31  ;;  %v4488_v11 = vadd.f32 %v5641_v56, %v4989_v23  ;;  %v4479_v12 = vpop.f32.mrb[67].mxu0  ;;  %v4509_v17 = vmul.f32 0.5, %v4485_v31  ;;  %v5005_v56 = vld [vmem:[%s8457_s13 + $0x1] ss:$0 sm:$0xff] }
0x1179   : > { %v4515_v46 = vmul.f32 0.70710677, %v4477_v53  ;;  %v4480_v8 = vadd.f32 %v4989_v23, %v4479_v12  ;;  %v4507_v62 = vmul.f32 0.5, %v4477_v53 }
0x117a   : > { %6418 = verf.f32 %v4517_v36  ;;  %v4518_v52 = vmul.f32 0.70710677, %v4488_v11  ;;  %v4510_v7 = vmul.f32 0.5, %v4488_v11 }
0x117b   : > { %6420 = verf.f32 %v4515_v46  ;;  %v4516_v18 = vmul.f32 0.70710677, %v4480_v8  ;;  %v4508_v25 = vmul.f32 0.5, %v4480_v8 }
0x117c   : > { %6422 = verf.f32 %v4518_v52 }
0x117d   : > { %6424 = verf.f32 %v4516_v18 }
0x1181   : > { %v5644_v55 = vpop.f32.mrb[68].mxu0 }
0x1182   : > { %v4501_v14 = vadd.f32 %v5644_v55, %v4989_v23  ;;  %v4492_v51 = vpop.f32.mrb[69].mxu0 }
0x1183   : > { %v4493_v13 = vadd.f32 %v4989_v23, %v4492_v51  ;;  %v5645_v54 = vpop.f32.mrb[70].mxu0 }
0x1184   : > { %v6419_v50 = vpop.eup %6418  ;;  %v4521_v29 = vmul.f32 0.70710677, %v4501_v14  ;;  %v4504_v45 = vadd.f32 %v5645_v54, %v4989_v23  ;;  %v4495_v44 = vpop.f32.mrb[71].mxu0  ;;  %v4513_v40 = vmul.f32 0.5, %v4501_v14 }
0x1185   : > { %v6421_v1 = vpop.eup %6420  ;;  %v4533_v60 = vadd.f32 1.0, %v6419_v50  ;;  %v4519_v27 = vmul.f32 0.70710677, %v4493_v13  ;;  %v4496_v48 = vadd.f32 %v4989_v23, %v4495_v44  ;;  %v4511_v24 = vmul.f32 0.5, %v4493_v13 }
0x1186   : > { %v6423_v49 = vpop.eup %6422  ;;  %v4531_v2 = vadd.f32 1.0, %v6421_v1  ;;  %6426 = verf.f32 %v4521_v29  ;;  %v4522_v38 = vmul.f32 0.70710677, %v4504_v45  ;;  %v4514_v22 = vmul.f32 0.5, %v4504_v45 }
0x1187   : > { %v6425_v35 = vpop.eup %6424  ;;  %v4534_v43 = vadd.f32 1.0, %v6423_v49  ;;  %6428 = verf.f32 %v4519_v27  ;;  %v4520_v4 = vmul.f32 0.70710677, %v4496_v48  ;;  %v4541_v59 = vmul.f32 %v4533_v60, %v4509_v17 }
0x1188   : > { %v4532_v6 = vadd.f32 1.0, %v6425_v35  ;;  %6430 = verf.f32 %v4522_v38  ;;  %v4539_v34 = vmul.f32 %v4531_v2, %v4507_v62  ;;  %v4512_v39 = vmul.f32 0.5, %v4496_v48 }
0x1189   : > { %v4542_v9 = vmul.f32 %v4534_v43, %v4510_v7  ;;  %6432 = verf.f32 %v4520_v4 }
0x118a   : > { %v4540_v19 = vmul.f32 %v4532_v6, %v4508_v25 }
0x118b   : > { %v4548_v41 = vpack.c.bf16 %v4542_v9, %v4541_v59 }
0x118c   : > { %v4547_v16 = vpack.c.bf16 %v4540_v19, %v4539_v34 }
0x118e   : > { %5654 = vmatprep.mubr.msk.bf16.mxu1 %vm1194_vm2, %v4547_v16 }
0x118f   : > { %5655 = vmatmul.mubr.msk.bf16.vlgmr.msra.gmra.mrb[64].mxu1 %vm1194_vm2, %v4548_v41 }
0x1190   : > { %v6427_v58 = vpop.eup %6426 }
0x1191   : > { %v6429_v57 = vpop.eup %6428  ;;  %v4537_v21 = vadd.f32 1.0, %v6427_v58 }
0x1192   : > { %v6431_v61 = vpop.eup %6430  ;;  %v4535_v3 = vadd.f32 1.0, %v6429_v57 }
0x1193   : > { %v4538_v63 = vadd.f32 1.0, %v6431_v61  ;;  %v6433_v10 = vpop.eup %6432  ;;  %v4545_v32 = vmul.f32 %v4537_v21, %v4513_v40 }
0x1194   : > { %v4536_v23 = vadd.f32 1.0, %v6433_v10  ;;  %v4543_v5 = vmul.f32 %v4535_v3, %v4511_v24 }
0x1195   : > { %v4546_v33 = vmul.f32 %v4538_v63, %v4514_v22 }
0x1196   : > { %v4544_v42 = vmul.f32 %v4536_v23, %v4512_v39 }
0x1197   : > { %v4550_v31 = vpack.c.bf16 %v4546_v33, %v4545_v32 }
0x1198   : > { %v4549_v53 = vpack.c.bf16 %v4544_v42, %v4543_v5 }
0x119a   : > { %5658 = vmatprep.mubr.msk.bf16.mxu1 %vm1194_vm2, %v4549_v53 }
0x119b   : > { %5659 = vmatmul.mubr.msk.bf16.gmra.mrb[68].mxu1 %vm1194_vm2, %v4550_v31 }
0x1262   : > { %v5656_v36 = vpop.f32.mrb[64].mxu1 }
0x1263   : > { %v4647_v11 = vadd.f32 %v5656_v36, %v5005_v56  ;;  %v4638_v12 = vpop.f32.mrb[65].mxu1 }
0x1264   : > { %v4639_v46 = vadd.f32 %v5005_v56, %v4638_v12  ;;  %v5657_v8 = vpop.f32.mrb[66].mxu1 }
0x1265   : > { %v4671_v52 = vadd.f32 %v4647_v11, %v8302_v30  ;;  %v4650_v18 = vadd.f32 %v5657_v8, %v5005_v56  ;;  %v4641_v55 = vpop.f32.mrb[67].mxu1 }
0x1266   : > { %v4669_v14 = vadd.f32 %v4639_v46, %v8290_v26  ;;  %v4642_v51 = vadd.f32 %v5005_v56, %v4641_v55 }
0x1267   : > { %4679 = vst.msk [vmem:[%s467_s25 + $0x10] sm:$0xff] %vm486_vm0, %v4671_v52  ;;  %v4672_v13 = vadd.f32 %v4650_v18, %v8298_v47 }
0x1268   : > { %4677 = vst.msk [vmem:[%s467_s25] sm:$0xff] %vm486_vm0, %v4669_v14  ;;  %v4670_v54 = vadd.f32 %v4642_v51, %v8288_v0 }
0x1269   : > { %4680 = vst.msk [vmem:[%s467_s25 + $0x18] sm:$0xff] %vm486_vm0, %v4672_v13 }
0x126a   : > { %4678 = vst.msk [vmem:[%s467_s25 + $0x8] sm:$0xff] %vm486_vm0, %v4670_v54 }
0x126e   : > { %v5660_v50 = vpop.f32.mrb[68].mxu1 }
0x126f   : > { %v4663_v29 = vadd.f32 %v5660_v50, %v5005_v56  ;;  %v4654_v30 = vpop.f32.mrb[69].mxu1 }
0x1270   : > { %v4655_v45 = vadd.f32 %v5005_v56, %v4654_v30  ;;  %v5661_v44 = vpop.f32.mrb[70].mxu1 }
0x1271   : > { %v4675_v26 = vadd.f32 %v4663_v29, %v8320_v15  ;;  %v4666_v1 = vadd.f32 %v5661_v44, %v5005_v56  ;;  %v4657_v60 = vpop.f32.mrb[71].mxu1 }
0x1272   : > { %v4673_v27 = vadd.f32 %v4655_v45, %v8315_v20  ;;  %v4658_v47 = vadd.f32 %v5005_v56, %v4657_v60 }
0x1273   : > { %4683 = vst.msk [vmem:[%s467_s25 + $0x30] sm:$0xff] %vm486_vm0, %v4675_v26  ;;  %v4676_v0 = vadd.f32 %v4666_v1, %v8311_v28 }
0x1274   : > { %4681 = vst.msk [vmem:[%s467_s25 + $0x20] sm:$0xff] %vm486_vm0, %v4673_v27  ;;  %v4674_v48 = vadd.f32 %v4658_v47, %v8306_v37 }
0x1275   : > { %4684 = vst.msk [vmem:[%s467_s25 + $0x38] sm:$0xff] %vm486_vm0, %v4676_v0 }
0x1276   : > { %4682 = vst.msk [vmem:[%s467_s25 + $0x28] sm:$0xff] %vm486_vm0, %v4674_v48 }
0x1277 PF: > { %s24_s29 = sadd.s32 1, %s6452_s29  }
0x1278   : > { %p21_p4 = scmp.ge.s32.totalorder %s24_s29, 4  }
0x127a   :  { %23 = sbr.rel (!%p21_p4) target bundleno = 1 (0x1), region = 121 }

</bundles_post_ra>
